<compile_context>
chip_gen: v7x
topology: tpu7x:2x2x1
jax: 0.10.0
libtpu: 0.0.40
codegen_flags: <defaults>
</compile_context>

<pallas_src>
import functools
import math

import jax
import jax.numpy as jnp
from jax.experimental import pallas as pl
from jax.experimental.pallas import tpu as pltpu

VMEM = pltpu.MemorySpace.VMEM
LN_EPS = 1e-5
NEG_INF = -1e30           # finite mask value avoids (-inf) - (-inf) NaN paths
TOKEN_TILE = 128          # token-row / q tile (>=2 tiles at CLIP L for v7x's 2 TCs)
FC_RESIDENT_BUDGET = 20 * 1024 * 1024   # double-buffered bf16 fc-weight budget


def _vmem_limit():
    # ~half of physical VMEM, clamped to [32, 64] MiB (v7x: 32 MiB, v5e/v6e: 64 MiB).
    try:
        cap = pltpu.get_tpu_info().vmem_capacity_bytes
    except Exception:
        cap = 128 * 1024 * 1024
    return max(32 * 1024 * 1024, min(64 * 1024 * 1024, cap // 2))


VMEM_LIMIT = _vmem_limit()


# ------------------------------ small helpers -------------------------------

def _round_up(x, m):
    return (x + m - 1) // m * m


def _pick_tile(dim, pref):
    """Largest tile <= pref that divides dim and is a multiple of 8; else the full dim."""
    if dim <= pref:
        return dim
    for t in range(pref, 7, -8):
        if dim % t == 0:
            return t
    return dim


def _fc_chunk(d_model, d_ff):
    """Hidden-dim chunk for the MLP: full residency when the (double-buffered) bf16 fc
    weights fit the budget, else the largest 128-multiple divisor that fits (v7x)."""
    def chunk_bytes(c):
        return 2 * (d_model * c * 2) * 2          # w1 + w2 chunk, bf16, double-buffered
    if chunk_bytes(d_ff) <= FC_RESIDENT_BUDGET:
        return d_ff
    for c in range(d_ff - 128, 127, -128):
        if d_ff % c == 0 and chunk_bytes(c) <= FC_RESIDENT_BUDGET:
            return c
    return d_ff


def _rep_spec(shape):
    """BlockSpec that keeps a weight/bias array resident at every grid step."""
    idx = (0,) * len(shape)
    return pl.BlockSpec(shape, lambda *_: idx)


def _row_spec(tl, d):
    """(1, tl, d) token-row tile of a (B, L, d) activation, grid = (B, L_tiles)."""
    return pl.BlockSpec((1, tl, d), lambda b, i: (b, i, 0))


def _cparams(*sem):
    return pltpu.CompilerParams(dimension_semantics=sem,
                                vmem_limit_bytes=VMEM_LIMIT)


def _layernorm(x, g, b):
    mu = jnp.mean(x, axis=-1, keepdims=True)
    var = jnp.mean((x - mu) ** 2, axis=-1, keepdims=True)
    return (x - mu) * jax.lax.rsqrt(var + LN_EPS) * g + b


# ------------------------------ Pallas kernels -------------------------------

def patch_embed_kernel(p_ref, w_ref, o_ref):
    # p: (1, tn, Kp) bf16, w: (Kp, D) bf16 -> (tn, D) bf16 (no mask path)
    o_ref[0] = jnp.dot(p_ref[0], w_ref[...],
                       preferred_element_type=jnp.float32).astype(o_ref.dtype)


def patch_embed_blend_kernel(p_ref, w_ref, m_ref, e_ref, o_ref):
    # conv-as-matmul fused with the mask blend: y*m + mask_embedding*(1-m)
    y = jnp.dot(p_ref[0], w_ref[...], preferred_element_type=jnp.float32)
    m = m_ref[0]
    o_ref[0] = (y * m + e_ref[0] * (1.0 - m)).astype(o_ref.dtype)


def add_pos_ln_kernel(x_ref, p_ref, g_ref, b_ref, o_ref):
    # LN(x + pos) over the last dim (eps = 1e-5, PyTorch default).
    x = x_ref[0].astype(jnp.float32) + p_ref[0]
    o_ref[0] = _layernorm(x, g_ref[...], b_ref[...]).astype(o_ref.dtype)


def ln_kernel(x_ref, g_ref, b_ref, o_ref):
    o_ref[0] = _layernorm(x_ref[0].astype(jnp.float32),
                          g_ref[...], b_ref[...]).astype(o_ref.dtype)


def ln_qkv_kernel(x_ref, g_ref, b_ref, w_ref, bias_ref, q_ref, k_ref, v_ref):
    # Fused LN1 + packed QKV projection; one (tl, D) x (D, 3D) MXU call (better 256-wide
    # MXU fill, one resident weight).  The softmax scale is pre-folded into the q third
    # of w/bias, so q needs no extra multiply.
    d = q_ref.shape[-1]
    x = x_ref[0].astype(jnp.float32)
    h = _layernorm(x, g_ref[...], b_ref[...]).astype(jnp.bfloat16)
    qkv = jnp.dot(h, w_ref[...], preferred_element_type=jnp.float32) + bias_ref[...]
    qkv = qkv.astype(jnp.bfloat16)
    q_ref[0] = qkv[:, :d]
    k_ref[0] = qkv[:, d:2 * d]
    v_ref[0] = qkv[:, 2 * d:]


def attn_proj_res_kernel(q_ref, k_ref, v_ref, wo_ref, bo_ref, r_ref, o_ref,
                         *, n_head, dh, seq_len):
    # Full-kv attention (the whole padded sequence fits one VMEM block at ViT lengths)
    # fused with the out-projection + residual add.  The per-head lane slice happens
    # once per (q-tile, head) -- not per kv step -- and heads are merged by accumulating
    # attn_h @ w_out[h] directly, so there is no concatenate and no extra HBM pass.
    q = q_ref[0]                        # (tq, D) bf16, scale folded in
    k = k_ref[0]                        # (Lp, D) bf16
    v = v_ref[0]                        # (Lp, D) bf16
    kv_valid = jax.lax.broadcasted_iota(jnp.int32, (1, k.shape[0]), 1) < seq_len
    acc = r_ref[0].astype(jnp.float32) + bo_ref[...]            # (tq, D) f32
    for h in range(n_head):
        sl = slice(h * dh, (h + 1) * dh)
        s = jax.lax.dot_general(q[:, sl], k[:, sl], (((1,), (1,)), ((), ())),
                                preferred_element_type=jnp.float32)   # (tq, Lp)
        s = jnp.where(kv_valid, s, NEG_INF)
        m = jnp.max(s, axis=-1, keepdims=True)
        p = jnp.exp(s - m)
        denom = pl.reciprocal(jnp.sum(p, axis=-1, keepdims=True), approx=True)
        attn = jnp.dot(p.astype(v.dtype), v[:, sl],
                       preferred_element_type=jnp.float32) * denom     # (tq, dh)
        acc = acc + jnp.dot(attn.astype(jnp.bfloat16), wo_ref[h],
                            preferred_element_type=jnp.float32)
    o_ref[0] = acc.astype(o_ref.dtype)


def ln_mlp_kernel(x_ref, g_ref, b_ref, w1_ref, b1_ref, w2_ref, b2_ref, o_ref, acc_ref):
    # Fused LN2 + Linear(D,4D) + QuickGELU + Linear(4D,D) + residual.  The hidden dim is
    # chunked along the trailing "arbitrary" grid axis; at small/medium D the chunk axis
    # has extent 1 and the fc weights stay fully resident (same as an unchunked kernel).
    c = pl.program_id(2)
    x = x_ref[0].astype(jnp.float32)

    @pl.when(c == 0)
    def _():
        acc_ref[...] = x + b2_ref[...]

    h = _layernorm(x, g_ref[...], b_ref[...]).astype(jnp.bfloat16)
    u = jnp.dot(h, w1_ref[...], preferred_element_type=jnp.float32) + b1_ref[...]
    u = (u * jax.nn.sigmoid(1.702 * u)).astype(jnp.bfloat16)       # QuickGELU, f32 EUP
    acc_ref[...] += jnp.dot(u, w2_ref[...], preferred_element_type=jnp.float32)

    @pl.when(c == pl.num_programs(2) - 1)
    def _():
        o_ref[0] = acc_ref[...].astype(o_ref.dtype)


def ln_proj_kernel(x_ref, g_ref, b_ref, w_ref, o_ref):
    # ln_post + visual projection on the class token (tiny: single block).
    h = _layernorm(x_ref[...].astype(jnp.float32),
                   g_ref[...], b_ref[...]).astype(jnp.bfloat16)
    o_ref[...] = jnp.dot(h, w_ref[...],
                         preferred_element_type=jnp.float32).astype(o_ref.dtype)


# ------------------------------ kernel wrappers ------------------------------

def _patch_embed(patches, w, mask, emb):
    B, N, Kp = patches.shape
    D = w.shape[1]
    tn = _pick_tile(N, 2 * TOKEN_TILE)
    grid = (B, N // tn)
    if mask is None:
        return pl.pallas_call(
            patch_embed_kernel,
            out_shape=jax.ShapeDtypeStruct((B, N, D), jnp.bfloat16),
            grid=grid,
            in_specs=[pl.BlockSpec((1, tn, Kp), lambda b, i: (b, i, 0)),
                      _rep_spec(w.shape)],
            out_specs=pl.BlockSpec((1, tn, D), lambda b, i: (b, i, 0)),
            compiler_params=_cparams("parallel", "parallel"),
        )(patches, w)
    return pl.pallas_call(
        patch_embed_blend_kernel,
        out_shape=jax.ShapeDtypeStruct((B, N, D), jnp.bfloat16),
        grid=grid,
        in_specs=[pl.BlockSpec((1, tn, Kp), lambda b, i: (b, i, 0)),
                  _rep_spec(w.shape),
                  pl.BlockSpec((1, tn, 1), lambda b, i: (b, i, 0)),
                  pl.BlockSpec((1, tn, D), lambda b, i: (0, i, 0))],
        out_specs=pl.BlockSpec((1, tn, D), lambda b, i: (b, i, 0)),
        compiler_params=_cparams("parallel", "parallel"),
    )(patches, w, mask, emb)


def _add_pos_ln(x, pos, g, b):
    B, L, D = x.shape
    tl = _pick_tile(L, TOKEN_TILE)
    return pl.pallas_call(
        add_pos_ln_kernel,
        out_shape=jax.ShapeDtypeStruct((B, L, D), jnp.bfloat16),
        grid=(B, L // tl),
        in_specs=[_row_spec(tl, D),
                  pl.BlockSpec((1, tl, D), lambda bb, i: (0, i, 0)),
                  _rep_spec(g.shape), _rep_spec(b.shape)],
        out_specs=_row_spec(tl, D),
        compiler_params=_cparams("parallel", "parallel"),
    )(x, pos, g, b)


def _ln(x, g, b):
    B, L, D = x.shape
    tl = _pick_tile(L, TOKEN_TILE)
    return pl.pallas_call(
        ln_kernel,
        out_shape=jax.ShapeDtypeStruct((B, L, D), jnp.float32),
        grid=(B, L // tl),
        in_specs=[_row_spec(tl, D), _rep_spec(g.shape), _rep_spec(b.shape)],
        out_specs=_row_spec(tl, D),
        compiler_params=_cparams("parallel", "parallel"),
    )(x, g, b)


def _ln_qkv(x, g, b, w_in, b_in):
    B, L, D = x.shape
    tl = _pick_tile(L, TOKEN_TILE)
    out_sd = jax.ShapeDtypeStruct((B, L, D), jnp.bfloat16)
    return pl.pallas_call(
        ln_qkv_kernel,
        out_shape=(out_sd, out_sd, out_sd),
        grid=(B, L // tl),
        in_specs=[_row_spec(tl, D), _rep_spec(g.shape), _rep_spec(b.shape),
                  _rep_spec(w_in.shape), _rep_spec(b_in.shape)],
        out_specs=(_row_spec(tl, D), _row_spec(tl, D), _row_spec(tl, D)),
        compiler_params=_cparams("parallel", "parallel"),
    )(x, g, b, w_in, b_in)


def _attention(q, k, v, w_out_h, b_out, resid, n_head, seq_len):
    B, L, D = q.shape
    dh = D // n_head
    tq = _pick_tile(L, TOKEN_TILE)
    return pl.pallas_call(
        functools.partial(attn_proj_res_kernel, n_head=n_head, dh=dh, seq_len=seq_len),
        out_shape=jax.ShapeDtypeStruct((B, L, D), jnp.bfloat16),
        grid=(B, L // tq),
        in_specs=[
            pl.BlockSpec((1, tq, D), lambda b, i: (b, i, 0)),    # q tile
            pl.BlockSpec((1, L, D), lambda b, i: (b, 0, 0)),     # full-length k
            pl.BlockSpec((1, L, D), lambda b, i: (b, 0, 0)),     # full-length v
            _rep_spec(w_out_h.shape),                            # (n_head, dh, D)
            _rep_spec(b_out.shape),
            pl.BlockSpec((1, tq, D), lambda b, i: (b, i, 0)),    # residual
        ],
        out_specs=pl.BlockSpec((1, tq, D), lambda b, i: (b, i, 0)),
        compiler_params=_cparams("parallel", "parallel"),
    )(q, k, v, w_out_h, b_out, resid)


def _ln_mlp(x, g, b, w1, b1, w2, b2):
    B, L, D = x.shape
    dff = w1.shape[1]
    tl = _pick_tile(L, TOKEN_TILE)
    fct = _fc_chunk(D, dff)
    n_fc = dff // fct
    return pl.pallas_call(
        ln_mlp_kernel,
        out_shape=jax.ShapeDtypeStruct((B, L, D), jnp.bfloat16),
        grid=(B, L // tl, n_fc),
        in_specs=[pl.BlockSpec((1, tl, D), lambda b, i, c: (b, i, 0)),
                  _rep_spec(g.shape), _rep_spec(b.shape),
                  pl.BlockSpec((D, fct), lambda b, i, c: (0, c)),
                  pl.BlockSpec((1, fct), lambda b, i, c: (0, c)),
                  pl.BlockSpec((fct, D), lambda b, i, c: (c, 0)),
                  _rep_spec(b2.shape)],
        out_specs=pl.BlockSpec((1, tl, D), lambda b, i, c: (b, i, 0)),
        scratch_shapes=[pltpu.VMEM((tl, D), jnp.float32)],
        compiler_params=_cparams("parallel", "parallel", "arbitrary"),
    )(x, g, b, w1, b1, w2, b2)


def _ln_proj(x, g, b, w):
    B, D = x.shape
    out_dim = w.shape[1]
    return pl.pallas_call(
        ln_proj_kernel,
        out_shape=jax.ShapeDtypeStruct((B, out_dim), jnp.float32),
        in_specs=[pl.BlockSpec(memory_space=VMEM)] * 4,
        out_specs=pl.BlockSpec(memory_space=VMEM),
    )(x, g, b, w)


# ------------------------------ parameters -----------------------------------

def init_raw_params(key, *, C, P, D, n_head, layers, N, L, out_dim):
    keys = iter(jax.random.split(key, 16 + 16 * layers))

    def rnd(shape, scale=0.02):
        return scale * jax.random.normal(next(keys), shape, jnp.float32)

    params = {
        "conv_w": rnd((D, C, P, P)),            # conv1.weight (no bias in CLIP)
        "class_emb": rnd((D,)),                 # class_embedding
        "pos_emb": rnd((L, D)),                 # positional_embedding (target size)
        "mask_embedding": rnd((1, N, D)),       # mask_embedding
        "ln_pre_g": jnp.ones((D,), jnp.float32), "ln_pre_b": jnp.zeros((D,), jnp.float32),
        "ln_post_g": jnp.ones((D,), jnp.float32), "ln_post_b": jnp.zeros((D,), jnp.float32),
        "proj": rnd((D, out_dim)),
        "blocks": [],
    }
    for _ in range(layers):
        params["blocks"].append({
            "ln1_g": jnp.ones((D,), jnp.float32), "ln1_b": jnp.zeros((D,), jnp.float32),
            "w_in": rnd((D, 3 * D)), "b_in": jnp.zeros((3 * D,), jnp.float32),
            "w_out": rnd((D, D)), "b_out": jnp.zeros((D,), jnp.float32),
            "ln2_g": jnp.ones((D,), jnp.float32), "ln2_b": jnp.zeros((D,), jnp.float32),
            "w1": rnd((D, 4 * D)), "b1": jnp.zeros((4 * D,), jnp.float32),
            "w2": rnd((4 * D, D)), "b2": jnp.zeros((D,), jnp.float32),
        })
    return params


def prepare_params(raw, n_head):
    """One-time conversion to the kernel layout: padded/transposed patch weight, packed
    QKV weight with the softmax scale folded into the q third, head-split out-proj
    weight, bf16 weights, (1, D) biases/LN params."""
    D, C, P, _ = raw["conv_w"].shape
    K = C * P * P
    Kp = _round_up(K, 128)
    w_patch = raw["conv_w"].reshape(D, K).T                        # (K, D)
    w_patch = jnp.pad(w_patch, ((0, Kp - K), (0, 0))).astype(jnp.bfloat16)
    dh = D // n_head
    scale = 1.0 / math.sqrt(dh)

    p = {
        "w_patch": w_patch,
        "class_emb": raw["class_emb"].astype(jnp.float32),
        "pos_emb": raw["pos_emb"].astype(jnp.float32),
        "ln_pre_g": raw["ln_pre_g"].reshape(1, D), "ln_pre_b": raw["ln_pre_b"].reshape(1, D),
        "ln_post_g": raw["ln_post_g"].reshape(1, D), "ln_post_b": raw["ln_post_b"].reshape(1, D),
        "proj": raw["proj"].astype(jnp.bfloat16),
        "blocks": [],
    }
    for b in raw["blocks"]:
        w_in = b["w_in"]                                            # (D, 3D)
        b_in = b["b_in"]                                            # (3D,)
        w_in = jnp.concatenate([w_in[:, :D] * scale, w_in[:, D:]], axis=1)
        b_in = jnp.concatenate([b_in[:D] * scale, b_in[D:]])
        p["blocks"].append({
            "ln1_g": b["ln1_g"].reshape(1, D), "ln1_b": b["ln1_b"].reshape(1, D),
            "w_in": w_in.astype(jnp.bfloat16), "b_in": b_in.reshape(1, 3 * D),
            "w_out": b["w_out"].reshape(n_head, dh, D).astype(jnp.bfloat16),
            "b_out": b["b_out"].reshape(1, D),
            "ln2_g": b["ln2_g"].reshape(1, D), "ln2_b": b["ln2_b"].reshape(1, D),
            "w1": b["w1"].astype(jnp.bfloat16), "b1": b["b1"].reshape(1, 4 * D),
            "w2": b["w2"].astype(jnp.bfloat16), "b2": b["b2"].reshape(1, D),
        })
    return p


# ------------------------------ forward pass ---------------------------------

@functools.partial(jax.jit,
                   static_argnames=("n_head", "patch_size", "pos_embedding", "return_token"))
def image_encoder_forward(x, mask, mask_embedding, params, *, n_head, patch_size,
                          pos_embedding=True, return_token=False):
    """Mirrors ImageEncoder.forward. x is NCHW float32."""
    B, C, H, W = x.shape
    P = patch_size
    Kp, D = params["w_patch"].shape
    gh, gw = H // P, W // P
    N = gh * gw
    L = N + 1
    L_pad = _round_up(L, 8) if L <= TOKEN_TILE else _round_up(L, TOKEN_TILE)

    # conv1 (kernel = stride = patch, no bias) == patchify + matmul; mask blend fused in.
    patches = (x.reshape(B, C, gh, P, gw, P)
               .transpose(0, 2, 4, 1, 3, 5)
               .reshape(B, N, C * P * P))
    K = C * P * P
    if Kp != K:
        patches = jnp.pad(patches, ((0, 0), (0, 0), (0, Kp - K)))
    patches = patches.astype(jnp.bfloat16)

    if mask is None:
        xe = _patch_embed(patches, params["w_patch"], None, None)       # (B, N, D) bf16
    else:
        mask_f = mask.astype(jnp.float32)
        emb = mask_embedding[0][None].astype(jnp.float32)
        xe = _patch_embed(patches, params["w_patch"], mask_f, emb)

    # prepend class token and pad the sequence (padded kv masked inside attention)
    cls = jnp.broadcast_to(params["class_emb"][None, None, :], (B, 1, D)).astype(jnp.bfloat16)
    xc = jnp.concatenate([cls, xe], axis=1)                              # (B, L, D)
    if L_pad != L:
        xc = jnp.pad(xc, ((0, 0), (0, L_pad - L), (0, 0)))

    # positional embedding (bicubic resize is identity; see TODO at top) + ln_pre, fused
    if pos_embedding:
        pos = jnp.pad(params["pos_emb"], ((0, L_pad - L), (0, 0)))[None]
    else:
        pos = jnp.zeros((1, L_pad, D), jnp.float32)
    xc = _add_pos_ln(xc, pos, params["ln_pre_g"], params["ln_pre_b"])    # bf16 residual

    # transformer (torch permute(1,0,2) is just seq-major layout; math identical)
    for blk in params["blocks"]:
        q, k, v = _ln_qkv(xc, blk["ln1_g"], blk["ln1_b"], blk["w_in"], blk["b_in"])
        xc = _attention(q, k, v, blk["w_out"], blk["b_out"], xc, n_head, L)
        xc = _ln_mlp(xc, blk["ln2_g"], blk["ln2_b"],
                     blk["w1"], blk["b1"], blk["w2"], blk["b2"])

    # ln_post + projection on the class token
    out = _ln_proj(xc[:, 0, :], params["ln_post_g"], params["ln_post_b"], params["proj"])

    if return_token:
        tok = _ln(xc, params["ln_post_g"], params["ln_post_b"])[:, 1:L, :]
        return out, tok
    return out


# --------------------------------- main ---------------------------------------

if __name__ == "__main__":
    key = jax.random.PRNGKey(0)
    k_param, k_x, k_mask = jax.random.split(key, 3)

    # small synthetic CLIP visual config
    B, C, H, W = 2, 3, 16, 16
    P, D, n_head, layers, out_dim = 8, 32, 4, 2, 16
    gh = H // P
    N = gh * gh            # 4 patches
    L = N + 1              # +class token

    raw = init_raw_params(k_param, C=C, P=P, D=D, n_head=n_head,
                          layers=layers, N=N, L=L, out_dim=out_dim)
    params = prepare_params(raw, n_head)

    x = jax.random.normal(k_x, (B, C, H, W), jnp.float32)
    mask = (jax.random.uniform(k_mask, (B, N, 1)) > 0.5).astype(jnp.float32)
    mask_embedding = raw["mask_embedding"]                 # (1, N, D)

    out = image_encoder_forward(x, mask, mask_embedding, params,
                                n_head=n_head, patch_size=P,
                                pos_embedding=True, return_token=False)
    out = jax.block_until_ready(out)
    assert out.shape == (B, out_dim), out.shape
    print("KERNEL_OK")
</pallas_src>

<mosaic_0001>
module attributes {stable_mosaic.version = 11 : i64} {
  func.func @patch_embed_blend_kernel(%arg0: i32, %arg1: i32, %arg2: memref<1x4x256xbf16, #tpu.memory_space<vmem>>, %arg3: memref<256x32xbf16, #tpu.memory_space<vmem>>, %arg4: memref<1x4x1xf32, #tpu.memory_space<vmem>>, %arg5: memref<1x4x32xf32, #tpu.memory_space<vmem>>, %arg6: memref<1x4x32xbf16, #tpu.memory_space<vmem>>) attributes {dimension_semantics = [#tpu.dimension_semantics<parallel>, #tpu.dimension_semantics<parallel>], iteration_bounds = array<i64: 2, 1>, scalar_prefetch = 0 : i64, scratch_operands = 0 : i64, tpu.core_type = #tpu.core_type<tc>, window_params = [{transform_indices = @transform_0, window_bounds = array<i64: 1, 4, 256>}, {pipeline_mode = #tpu.pipeline_mode<synchronous>, transform_indices = @transform_1, window_bounds = array<i64: 256, 32>}, {transform_indices = @transform_2, window_bounds = array<i64: 1, 4, 1>}, {transform_indices = @transform_3, window_bounds = array<i64: 1, 4, 32>}, {transform_indices = @transform_4, window_bounds = array<i64: 1, 4, 32>}]} {
    %c0 = arith.constant 0 : index
    %c0_0 = arith.constant 0 : index
    %c0_1 = arith.constant 0 : index
    %0 = vector.load %arg2[%c0, %c0_0, %c0_1] : memref<1x4x256xbf16, #tpu.memory_space<vmem>>, vector<1x4x256xbf16>
    %1 = vector.shape_cast %0 : vector<1x4x256xbf16> to vector<4x256xbf16>
    %c0_2 = arith.constant 0 : index
    %c0_3 = arith.constant 0 : index
    %2 = vector.load %arg3[%c0_2, %c0_3] : memref<256x32xbf16, #tpu.memory_space<vmem>>, vector<256x32xbf16>
    %cst = arith.constant dense<0.000000e+00> : vector<4x32xf32>
    %3 = tpu.matmul %1, %2, %cst {dimension_numbers = #tpu.dot_dimension_numbers<[1], [0], [0], [1], [0, 0, 1, 1], [], []>} : vector<4x256xbf16>, vector<256x32xbf16>, vector<4x32xf32> -> vector<4x32xf32>
    %c0_4 = arith.constant 0 : index
    %c0_5 = arith.constant 0 : index
    %c0_6 = arith.constant 0 : index
    %4 = vector.load %arg4[%c0_4, %c0_5, %c0_6] : memref<1x4x1xf32, #tpu.memory_space<vmem>>, vector<1x4x1xf32>
    %5 = vector.shape_cast %4 : vector<1x4x1xf32> to vector<4x1xf32>
    %6 = vector.broadcast %5 : vector<4x1xf32> to vector<4x32xf32>
    %7 = arith.mulf %3, %6 : vector<4x32xf32>
    %c0_7 = arith.constant 0 : index
    %c0_8 = arith.constant 0 : index
    %c0_9 = arith.constant 0 : index
    %8 = vector.load %arg5[%c0_7, %c0_8, %c0_9] : memref<1x4x32xf32, #tpu.memory_space<vmem>>, vector<1x4x32xf32>
    %9 = vector.shape_cast %8 : vector<1x4x32xf32> to vector<4x32xf32>
    %cst_10 = arith.constant 1.000000e+00 : f32
    %10 = vector.broadcast %cst_10 : f32 to vector<4x1xf32>
    %11 = arith.subf %10, %5 : vector<4x1xf32>
    %12 = vector.broadcast %11 : vector<4x1xf32> to vector<4x32xf32>
    %13 = arith.mulf %9, %12 : vector<4x32xf32>
    %14 = arith.addf %7, %13 : vector<4x32xf32>
    %15 = arith.truncf %14 : vector<4x32xf32> to vector<4x32xbf16>
    %c0_11 = arith.constant 0 : index
    %c0_12 = arith.constant 0 : index
    %c0_13 = arith.constant 0 : index
    %16 = vector.load %arg6[%c0_11, %c0_12, %c0_13] : memref<1x4x32xbf16, #tpu.memory_space<vmem>>, vector<1x4x32xbf16>
    %17 = vector.shape_cast %16 : vector<1x4x32xbf16> to vector<4x32xbf16>
    %18 = vector.shape_cast %15 : vector<4x32xbf16> to vector<1x4x32xbf16>
    tpu.vector_store %arg6[%c0_11, %c0_12, %c0_13], %18 {strides = array<i32>} : memref<1x4x32xbf16, #tpu.memory_space<vmem>>, vector<1x4x32xbf16>,
    return
  }
  func.func @transform_0(%arg0: i32, %arg1: i32) -> (i32, i32, i32) {
    %c0_i32 = arith.constant 0 : i32
    %c0_i32_0 = arith.constant 0 : i32
    return %arg0, %arg1, %c0_i32 : i32, i32, i32
  }
  func.func @transform_1(%arg0: i32, %arg1: i32) -> (i32, i32) {
    %c0_i32 = arith.constant 0 : i32
    %c0_i32_0 = arith.constant 0 : i32
    %c0_i32_1 = arith.constant 0 : i32
    return %c0_i32, %c0_i32_0 : i32, i32
  }
  func.func @transform_2(%arg0: i32, %arg1: i32) -> (i32, i32, i32) {
    %c0_i32 = arith.constant 0 : i32
    %c0_i32_0 = arith.constant 0 : i32
    return %arg0, %arg1, %c0_i32 : i32, i32, i32
  }
  func.func @transform_3(%arg0: i32, %arg1: i32) -> (i32, i32, i32) {
    %c0_i32 = arith.constant 0 : i32
    %c0_i32_0 = arith.constant 0 : i32
    %c0_i32_1 = arith.constant 0 : i32
    return %c0_i32, %arg1, %c0_i32_0 : i32, i32, i32
  }
  func.func @transform_4(%arg0: i32, %arg1: i32) -> (i32, i32, i32) {
    %c0_i32 = arith.constant 0 : i32
    %c0_i32_0 = arith.constant 0 : i32
    return %arg0, %arg1, %c0_i32 : i32, i32, i32
  }
}

module attributes {stable_mosaic.version = 11 : i64} {
  func.func @add_pos_ln_kernel(%arg0: i32, %arg1: i32, %arg2: memref<1x8x32xbf16, #tpu.memory_space<vmem>>, %arg3: memref<1x8x32xf32, #tpu.memory_space<vmem>>, %arg4: memref<1x32xf32, #tpu.memory_space<vmem>>, %arg5: memref<1x32xf32, #tpu.memory_space<vmem>>, %arg6: memref<1x8x32xbf16, #tpu.memory_space<vmem>>) attributes {dimension_semantics = [#tpu.dimension_semantics<parallel>, #tpu.dimension_semantics<parallel>], iteration_bounds = array<i64: 2, 1>, scalar_prefetch = 0 : i64, scratch_operands = 0 : i64, tpu.core_type = #tpu.core_type<tc>, window_params = [{transform_indices = @transform_0, window_bounds = array<i64: 1, 8, 32>}, {transform_indices = @transform_1, window_bounds = array<i64: 1, 8, 32>}, {pipeline_mode = #tpu.pipeline_mode<synchronous>, transform_indices = @transform_2, window_bounds = array<i64: 1, 32>}, {pipeline_mode = #tpu.pipeline_mode<synchronous>, transform_indices = @transform_3, window_bounds = array<i64: 1, 32>}, {transform_indices = @transform_4, window_bounds = array<i64: 1, 8, 32>}]} {
    %c0 = arith.constant 0 : index
    %c0_0 = arith.constant 0 : index
    %c0_1 = arith.constant 0 : index
    %0 = vector.load %arg2[%c0, %c0_0, %c0_1] : memref<1x8x32xbf16, #tpu.memory_space<vmem>>, vector<1x8x32xbf16>
    %1 = vector.shape_cast %0 : vector<1x8x32xbf16> to vector<8x32xbf16>
    %2 = arith.extf %1 : vector<8x32xbf16> to vector<8x32xf32>
    %c0_2 = arith.constant 0 : index
    %c0_3 = arith.constant 0 : index
    %c0_4 = arith.constant 0 : index
    %3 = vector.load %arg3[%c0_2, %c0_3, %c0_4] : memref<1x8x32xf32, #tpu.memory_space<vmem>>, vector<1x8x32xf32>
    %4 = vector.shape_cast %3 : vector<1x8x32xf32> to vector<8x32xf32>
    %5 = arith.addf %2, %4 : vector<8x32xf32>
    %c0_5 = arith.constant 0 : index
    %c0_6 = arith.constant 0 : index
    %6 = vector.load %arg4[%c0_5, %c0_6] : memref<1x32xf32, #tpu.memory_space<vmem>>, vector<1x32xf32>
    %c0_7 = arith.constant 0 : index
    %c0_8 = arith.constant 0 : index
    %7 = vector.load %arg5[%c0_7, %c0_8] : memref<1x32xf32, #tpu.memory_space<vmem>>, vector<1x32xf32>
    %cst = arith.constant dense<0.000000e+00> : vector<8xf32>
    %8 = vector.multi_reduction <add>, %5, %cst [1] : vector<8x32xf32> to vector<8xf32>
    %9 = vector.shape_cast %8 : vector<8xf32> to vector<8x1xf32>
    %cst_9 = arith.constant 3.200000e+01 : f32
    %10 = vector.broadcast %cst_9 : f32 to vector<8x1xf32>
    %11 = arith.divf %9, %10 : vector<8x1xf32>
    %12 = vector.broadcast %11 : vector<8x1xf32> to vector<8x32xf32>
    %13 = arith.subf %5, %12 : vector<8x32xf32>
    %14 = arith.mulf %13, %13 : vector<8x32xf32>
    %cst_10 = arith.constant dense<0.000000e+00> : vector<8xf32>
    %15 = vector.multi_reduction <add>, %14, %cst_10 [1] : vector<8x32xf32> to vector<8xf32>
    %16 = vector.shape_cast %15 : vector<8xf32> to vector<8x1xf32>
    %cst_11 = arith.constant 3.200000e+01 : f32
    %17 = vector.broadcast %cst_11 : f32 to vector<8x1xf32>
    %18 = arith.divf %16, %17 : vector<8x1xf32>
    %19 = vector.broadcast %11 : vector<8x1xf32> to vector<8x32xf32>
    %20 = arith.subf %5, %19 : vector<8x32xf32>
    %cst_12 = arith.constant 9.99999974E-6 : f32
    %21 = vector.broadcast %cst_12 : f32 to vector<8x1xf32>
    %22 = arith.addf %18, %21 : vector<8x1xf32>
    %23 = math.rsqrt %22 : vector<8x1xf32>
    %24 = vector.broadcast %23 : vector<8x1xf32> to vector<8x32xf32>
    %25 = arith.mulf %20, %24 : vector<8x32xf32>
    %26 = vector.broadcast %6 : vector<1x32xf32> to vector<8x32xf32>
    %27 = arith.mulf %25, %26 : vector<8x32xf32>
    %28 = vector.broadcast %7 : vector<1x32xf32> to vector<8x32xf32>
    %29 = arith.addf %27, %28 : vector<8x32xf32>
    %30 = arith.truncf %29 : vector<8x32xf32> to vector<8x32xbf16>
    %c0_13 = arith.constant 0 : index
    %c0_14 = arith.constant 0 : index
    %c0_15 = arith.constant 0 : index
    %31 = vector.load %arg6[%c0_13, %c0_14, %c0_15] : memref<1x8x32xbf16, #tpu.memory_space<vmem>>, vector<1x8x32xbf16>
    %32 = vector.shape_cast %31 : vector<1x8x32xbf16> to vector<8x32xbf16>
    %33 = vector.shape_cast %30 : vector<8x32xbf16> to vector<1x8x32xbf16>
    tpu.vector_store %arg6[%c0_13, %c0_14, %c0_15], %33 {strides = array<i32>} : memref<1x8x32xbf16, #tpu.memory_space<vmem>>, vector<1x8x32xbf16>,
    return
  }
  func.func @transform_0(%arg0: i32, %arg1: i32) -> (i32, i32, i32) {
    %c0_i32 = arith.constant 0 : i32
    %c0_i32_0 = arith.constant 0 : i32
    return %arg0, %arg1, %c0_i32 : i32, i32, i32
  }
  func.func @transform_1(%arg0: i32, %arg1: i32) -> (i32, i32, i32) {
    %c0_i32 = arith.constant 0 : i32
    %c0_i32_0 = arith.constant 0 : i32
    %c0_i32_1 = arith.constant 0 : i32
    return %c0_i32, %arg1, %c0_i32_0 : i32, i32, i32
  }
  func.func @transform_2(%arg0: i32, %arg1: i32) -> (i32, i32) {
    %c0_i32 = arith.constant 0 : i32
    %c0_i32_0 = arith.constant 0 : i32
    %c0_i32_1 = arith.constant 0 : i32
    return %c0_i32, %c0_i32_0 : i32, i32
  }
  func.func @transform_3(%arg0: i32, %arg1: i32) -> (i32, i32) {
    %c0_i32 = arith.constant 0 : i32
    %c0_i32_0 = arith.constant 0 : i32
    %c0_i32_1 = arith.constant 0 : i32
    return %c0_i32, %c0_i32_0 : i32, i32
  }
  func.func @transform_4(%arg0: i32, %arg1: i32) -> (i32, i32, i32) {
    %c0_i32 = arith.constant 0 : i32
    %c0_i32_0 = arith.constant 0 : i32
    return %arg0, %arg1, %c0_i32 : i32, i32, i32
  }
}

module attributes {stable_mosaic.version = 11 : i64} {
  func.func @ln_qkv_kernel(%arg0: i32, %arg1: i32, %arg2: memref<1x8x32xbf16, #tpu.memory_space<vmem>>, %arg3: memref<1x32xf32, #tpu.memory_space<vmem>>, %arg4: memref<1x32xf32, #tpu.memory_space<vmem>>, %arg5: memref<32x96xbf16, #tpu.memory_space<vmem>>, %arg6: memref<1x96xf32, #tpu.memory_space<vmem>>, %arg7: memref<1x8x32xbf16, #tpu.memory_space<vmem>>, %arg8: memref<1x8x32xbf16, #tpu.memory_space<vmem>>, %arg9: memref<1x8x32xbf16, #tpu.memory_space<vmem>>) attributes {dimension_semantics = [#tpu.dimension_semantics<parallel>, #tpu.dimension_semantics<parallel>], iteration_bounds = array<i64: 2, 1>, scalar_prefetch = 0 : i64, scratch_operands = 0 : i64, tpu.core_type = #tpu.core_type<tc>, window_params = [{transform_indices = @transform_0, window_bounds = array<i64: 1, 8, 32>}, {pipeline_mode = #tpu.pipeline_mode<synchronous>, transform_indices = @transform_1, window_bounds = array<i64: 1, 32>}, {pipeline_mode = #tpu.pipeline_mode<synchronous>, transform_indices = @transform_2, window_bounds = array<i64: 1, 32>}, {pipeline_mode = #tpu.pipeline_mode<synchronous>, transform_indices = @transform_3, window_bounds = array<i64: 32, 96>}, {pipeline_mode = #tpu.pipeline_mode<synchronous>, transform_indices = @transform_4, window_bounds = array<i64: 1, 96>}, {transform_indices = @transform_5, window_bounds = array<i64: 1, 8, 32>}, {transform_indices = @transform_6, window_bounds = array<i64: 1, 8, 32>}, {transform_indices = @transform_7, window_bounds = array<i64: 1, 8, 32>}]} {
    %c0 = arith.constant 0 : index
    %c0_0 = arith.constant 0 : index
    %c0_1 = arith.constant 0 : index
    %0 = vector.load %arg2[%c0, %c0_0, %c0_1] : memref<1x8x32xbf16, #tpu.memory_space<vmem>>, vector<1x8x32xbf16>
    %1 = vector.shape_cast %0 : vector<1x8x32xbf16> to vector<8x32xbf16>
    %2 = arith.extf %1 : vector<8x32xbf16> to vector<8x32xf32>
    %c0_2 = arith.constant 0 : index
    %c0_3 = arith.constant 0 : index
    %3 = vector.load %arg3[%c0_2, %c0_3] : memref<1x32xf32, #tpu.memory_space<vmem>>, vector<1x32xf32>
    %c0_4 = arith.constant 0 : index
    %c0_5 = arith.constant 0 : index
    %4 = vector.load %arg4[%c0_4, %c0_5] : memref<1x32xf32, #tpu.memory_space<vmem>>, vector<1x32xf32>
    %cst = arith.constant dense<0.000000e+00> : vector<8xf32>
    %5 = vector.multi_reduction <add>, %2, %cst [1] : vector<8x32xf32> to vector<8xf32>
    %6 = vector.shape_cast %5 : vector<8xf32> to vector<8x1xf32>
    %cst_6 = arith.constant 3.200000e+01 : f32
    %7 = vector.broadcast %cst_6 : f32 to vector<8x1xf32>
    %8 = arith.divf %6, %7 : vector<8x1xf32>
    %9 = vector.broadcast %8 : vector<8x1xf32> to vector<8x32xf32>
    %10 = arith.subf %2, %9 : vector<8x32xf32>
    %11 = arith.mulf %10, %10 : vector<8x32xf32>
    %cst_7 = arith.constant dense<0.000000e+00> : vector<8xf32>
    %12 = vector.multi_reduction <add>, %11, %cst_7 [1] : vector<8x32xf32> to vector<8xf32>
    %13 = vector.shape_cast %12 : vector<8xf32> to vector<8x1xf32>
    %cst_8 = arith.constant 3.200000e+01 : f32
    %14 = vector.broadcast %cst_8 : f32 to vector<8x1xf32>
    %15 = arith.divf %13, %14 : vector<8x1xf32>
    %16 = vector.broadcast %8 : vector<8x1xf32> to vector<8x32xf32>
    %17 = arith.subf %2, %16 : vector<8x32xf32>
    %cst_9 = arith.constant 9.99999974E-6 : f32
    %18 = vector.broadcast %cst_9 : f32 to vector<8x1xf32>
    %19 = arith.addf %15, %18 : vector<8x1xf32>
    %20 = math.rsqrt %19 : vector<8x1xf32>
    %21 = vector.broadcast %20 : vector<8x1xf32> to vector<8x32xf32>
    %22 = arith.mulf %17, %21 : vector<8x32xf32>
    %23 = vector.broadcast %3 : vector<1x32xf32> to vector<8x32xf32>
    %24 = arith.mulf %22, %23 : vector<8x32xf32>
    %25 = vector.broadcast %4 : vector<1x32xf32> to vector<8x32xf32>
    %26 = arith.addf %24, %25 : vector<8x32xf32>
    %27 = arith.truncf %26 : vector<8x32xf32> to vector<8x32xbf16>
    %c0_10 = arith.constant 0 : index
    %c0_11 = arith.constant 0 : index
    %28 = vector.load %arg5[%c0_10, %c0_11] : memref<32x96xbf16, #tpu.memory_space<vmem>>, vector<32x96xbf16>
    %cst_12 = arith.constant dense<0.000000e+00> : vector<8x96xf32>
    %29 = tpu.matmul %27, %28, %cst_12 {dimension_numbers = #tpu.dot_dimension_numbers<[1], [0], [0], [1], [0, 0, 1, 1], [], []>} : vector<8x32xbf16>, vector<32x96xbf16>, vector<8x96xf32> -> vector<8x96xf32>
    %c0_13 = arith.constant 0 : index
    %c0_14 = arith.constant 0 : index
    %30 = vector.load %arg6[%c0_13, %c0_14] : memref<1x96xf32, #tpu.memory_space<vmem>>, vector<1x96xf32>
    %31 = vector.broadcast %30 : vector<1x96xf32> to vector<8x96xf32>
    %32 = arith.addf %29, %31 : vector<8x96xf32>
    %33 = arith.truncf %32 : vector<8x96xf32> to vector<8x96xbf16>
    %34 = vector.extract_strided_slice %33 {offsets = [0, 0], sizes = [8, 32], strides = [1, 1]} : vector<8x96xbf16> to vector<8x32xbf16>
    %c0_15 = arith.constant 0 : index
    %c0_16 = arith.constant 0 : index
    %c0_17 = arith.constant 0 : index
    %35 = vector.load %arg7[%c0_15, %c0_16, %c0_17] : memref<1x8x32xbf16, #tpu.memory_space<vmem>>, vector<1x8x32xbf16>
    %36 = vector.shape_cast %35 : vector<1x8x32xbf16> to vector<8x32xbf16>
    %37 = vector.shape_cast %34 : vector<8x32xbf16> to vector<1x8x32xbf16>
    tpu.vector_store %arg7[%c0_15, %c0_16, %c0_17], %37 {strides = array<i32>} : memref<1x8x32xbf16, #tpu.memory_space<vmem>>, vector<1x8x32xbf16>,
    %38 = vector.extract_strided_slice %33 {offsets = [0, 32], sizes = [8, 32], strides = [1, 1]} : vector<8x96xbf16> to vector<8x32xbf16>
    %c0_18 = arith.constant 0 : index
    %c0_19 = arith.constant 0 : index
    %c0_20 = arith.constant 0 : index
    %39 = vector.load %arg8[%c0_18, %c0_19, %c0_20] : memref<1x8x32xbf16, #tpu.memory_space<vmem>>, vector<1x8x32xbf16>
    %40 = vector.shape_cast %39 : vector<1x8x32xbf16> to vector<8x32xbf16>
    %41 = vector.shape_cast %38 : vector<8x32xbf16> to vector<1x8x32xbf16>
    tpu.vector_store %arg8[%c0_18, %c0_19, %c0_20], %41 {strides = array<i32>} : memref<1x8x32xbf16, #tpu.memory_space<vmem>>, vector<1x8x32xbf16>,
    %42 = vector.extract_strided_slice %33 {offsets = [0, 64], sizes = [8, 32], strides = [1, 1]} : vector<8x96xbf16> to vector<8x32xbf16>
    %c0_21 = arith.constant 0 : index
    %c0_22 = arith.constant 0 : index
    %c0_23 = arith.constant 0 : index
    %43 = vector.load %arg9[%c0_21, %c0_22, %c0_23] : memref<1x8x32xbf16, #tpu.memory_space<vmem>>, vector<1x8x32xbf16>
    %44 = vector.shape_cast %43 : vector<1x8x32xbf16> to vector<8x32xbf16>
    %45 = vector.shape_cast %42 : vector<8x32xbf16> to vector<1x8x32xbf16>
    tpu.vector_store %arg9[%c0_21, %c0_22, %c0_23], %45 {strides = array<i32>} : memref<1x8x32xbf16, #tpu.memory_space<vmem>>, vector<1x8x32xbf16>,
    return
  }
  func.func @transform_0(%arg0: i32, %arg1: i32) -> (i32, i32, i32) {
    %c0_i32 = arith.constant 0 : i32
    %c0_i32_0 = arith.constant 0 : i32
    return %arg0, %arg1, %c0_i32 : i32, i32, i32
  }
  func.func @transform_1(%arg0: i32, %arg1: i32) -> (i32, i32) {
    %c0_i32 = arith.constant 0 : i32
    %c0_i32_0 = arith.constant 0 : i32
    %c0_i32_1 = arith.constant 0 : i32
    return %c0_i32, %c0_i32_0 : i32, i32
  }
  func.func @transform_2(%arg0: i32, %arg1: i32) -> (i32, i32) {
    %c0_i32 = arith.constant 0 : i32
    %c0_i32_0 = arith.constant 0 : i32
    %c0_i32_1 = arith.constant 0 : i32
    return %c0_i32, %c0_i32_0 : i32, i32
  }
  func.func @transform_3(%arg0: i32, %arg1: i32) -> (i32, i32) {
    %c0_i32 = arith.constant 0 : i32
    %c0_i32_0 = arith.constant 0 : i32
    %c0_i32_1 = arith.constant 0 : i32
    return %c0_i32, %c0_i32_0 : i32, i32
  }
  func.func @transform_4(%arg0: i32, %arg1: i32) -> (i32, i32) {
    %c0_i32 = arith.constant 0 : i32
    %c0_i32_0 = arith.constant 0 : i32
    %c0_i32_1 = arith.constant 0 : i32
    return %c0_i32, %c0_i32_0 : i32, i32
  }
  func.func @transform_5(%arg0: i32, %arg1: i32) -> (i32, i32, i32) {
    %c0_i32 = arith.constant 0 : i32
    %c0_i32_0 = arith.constant 0 : i32
    return %arg0, %arg1, %c0_i32 : i32, i32, i32
  }
  func.func @transform_6(%arg0: i32, %arg1: i32) -> (i32, i32, i32) {
    %c0_i32 = arith.constant 0 : i32
    %c0_i32_0 = arith.constant 0 : i32
    return %arg0, %arg1, %c0_i32 : i32, i32, i32
  }
  func.func @transform_7(%arg0: i32, %arg1: i32) -> (i32, i32, i32) {
    %c0_i32 = arith.constant 0 : i32
    %c0_i32_0 = arith.constant 0 : i32
    return %arg0, %arg1, %c0_i32 : i32, i32, i32
  }
}

module attributes {stable_mosaic.version = 11 : i64} {
  func.func @attn_proj_res_kernel(%arg0: i32, %arg1: i32, %arg2: memref<1x8x32xbf16, #tpu.memory_space<vmem>>, %arg3: memref<1x8x32xbf16, #tpu.memory_space<vmem>>, %arg4: memref<1x8x32xbf16, #tpu.memory_space<vmem>>, %arg5: memref<4x8x32xbf16, #tpu.memory_space<vmem>>, %arg6: memref<1x32xf32, #tpu.memory_space<vmem>>, %arg7: memref<1x8x32xbf16, #tpu.memory_space<vmem>>, %arg8: memref<1x8x32xbf16, #tpu.memory_space<vmem>>) attributes {dimension_semantics = [#tpu.dimension_semantics<parallel>, #tpu.dimension_semantics<parallel>], iteration_bounds = array<i64: 2, 1>, scalar_prefetch = 0 : i64, scratch_operands = 0 : i64, tpu.core_type = #tpu.core_type<tc>, window_params = [{transform_indices = @transform_0, window_bounds = array<i64: 1, 8, 32>}, {transform_indices = @transform_1, window_bounds = array<i64: 1, 8, 32>}, {transform_indices = @transform_2, window_bounds = array<i64: 1, 8, 32>}, {pipeline_mode = #tpu.pipeline_mode<synchronous>, transform_indices = @transform_3, window_bounds = array<i64: 4, 8, 32>}, {pipeline_mode = #tpu.pipeline_mode<synchronous>, transform_indices = @transform_4, window_bounds = array<i64: 1, 32>}, {transform_indices = @transform_5, window_bounds = array<i64: 1, 8, 32>}, {transform_indices = @transform_6, window_bounds = array<i64: 1, 8, 32>}]} {
    %c0 = arith.constant 0 : index
    %c0_0 = arith.constant 0 : index
    %c0_1 = arith.constant 0 : index
    %0 = vector.load %arg2[%c0, %c0_0, %c0_1] : memref<1x8x32xbf16, #tpu.memory_space<vmem>>, vector<1x8x32xbf16>
    %1 = vector.shape_cast %0 : vector<1x8x32xbf16> to vector<8x32xbf16>
    %c0_2 = arith.constant 0 : index
    %c0_3 = arith.constant 0 : index
    %c0_4 = arith.constant 0 : index
    %2 = vector.load %arg3[%c0_2, %c0_3, %c0_4] : memref<1x8x32xbf16, #tpu.memory_space<vmem>>, vector<1x8x32xbf16>
    %3 = vector.shape_cast %2 : vector<1x8x32xbf16> to vector<8x32xbf16>
    %c0_5 = arith.constant 0 : index
    %c0_6 = arith.constant 0 : index
    %c0_7 = arith.constant 0 : index
    %4 = vector.load %arg4[%c0_5, %c0_6, %c0_7] : memref<1x8x32xbf16, #tpu.memory_space<vmem>>, vector<1x8x32xbf16>
    %5 = vector.shape_cast %4 : vector<1x8x32xbf16> to vector<8x32xbf16>
    %6 = tpu.iota {dimensions = array<i32: 1>} : vector<1x8xi32>
    %c5_i32 = arith.constant 5 : i32
    %7 = vector.broadcast %c5_i32 : i32 to vector<1x8xi32>
    %8 = arith.cmpi slt, %6, %7 : vector<1x8xi32>
    %c0_8 = arith.constant 0 : index
    %c0_9 = arith.constant 0 : index
    %c0_10 = arith.constant 0 : index
    %9 = vector.load %arg7[%c0_8, %c0_9, %c0_10] : memref<1x8x32xbf16, #tpu.memory_space<vmem>>, vector<1x8x32xbf16>
    %10 = vector.shape_cast %9 : vector<1x8x32xbf16> to vector<8x32xbf16>
    %11 = arith.extf %10 : vector<8x32xbf16> to vector<8x32xf32>
    %c0_11 = arith.constant 0 : index
    %c0_12 = arith.constant 0 : index
    %12 = vector.load %arg6[%c0_11, %c0_12] : memref<1x32xf32, #tpu.memory_space<vmem>>, vector<1x32xf32>
    %13 = vector.broadcast %12 : vector<1x32xf32> to vector<8x32xf32>
    %14 = arith.addf %11, %13 : vector<8x32xf32>
    %15 = vector.extract_strided_slice %1 {offsets = [0, 0], sizes = [8, 8], strides = [1, 1]} : vector<8x32xbf16> to vector<8x8xbf16>
    %16 = vector.extract_strided_slice %3 {offsets = [0, 0], sizes = [8, 8], strides = [1, 1]} : vector<8x32xbf16> to vector<8x8xbf16>
    %cst = arith.constant dense<0.000000e+00> : vector<8x8xf32>
    %17 = tpu.matmul %15, %16, %cst {dimension_numbers = #tpu.dot_dimension_numbers<[1], [1], [0], [0], [0, 0, 1, 0], [], []>} : vector<8x8xbf16>, vector<8x8xbf16>, vector<8x8xf32> -> vector<8x8xf32>
    %cst_13 = arith.constant -1.000000e+30 : f32
    %18 = vector.shape_cast %8 : vector<1x8xi1> to vector<1x8xi1>
    %19 = vector.broadcast %18 : vector<1x8xi1> to vector<8x8xi1>
    %20 = vector.broadcast %cst_13 : f32 to vector<8x8xf32>
    %21 = arith.select %19, %17, %20 : vector<8x8xi1>, vector<8x8xf32>
    %cst_14 = arith.constant dense<0xFF800000> : vector<8xf32>
    %22 = vector.multi_reduction <maximumf>, %21, %cst_14 [1] : vector<8x8xf32> to vector<8xf32>
    %23 = vector.shape_cast %22 : vector<8xf32> to vector<8x1xf32>
    %24 = vector.broadcast %23 : vector<8x1xf32> to vector<8x8xf32>
    %25 = arith.subf %21, %24 : vector<8x8xf32>
    %26 = math.exp %25 : vector<8x8xf32>
    %cst_15 = arith.constant dense<0.000000e+00> : vector<8xf32>
    %27 = vector.multi_reduction <add>, %26, %cst_15 [1] : vector<8x8xf32> to vector<8xf32>
    %28 = vector.shape_cast %27 : vector<8xf32> to vector<8x1xf32>
    %29 = tpu.reciprocal %28 {approx = true} : vector<8x1xf32> -> vector<8x1xf32>
    %30 = arith.truncf %26 : vector<8x8xf32> to vector<8x8xbf16>
    %31 = vector.extract_strided_slice %5 {offsets = [0, 0], sizes = [8, 8], strides = [1, 1]} : vector<8x32xbf16> to vector<8x8xbf16>
    %cst_16 = arith.constant dense<0.000000e+00> : vector<8x8xf32>
    %32 = tpu.matmul %30, %31, %cst_16 {dimension_numbers = #tpu.dot_dimension_numbers<[1], [0], [0], [1], [0, 0, 1, 1], [], []>} : vector<8x8xbf16>, vector<8x8xbf16>, vector<8x8xf32> -> vector<8x8xf32>
    %33 = vector.broadcast %29 : vector<8x1xf32> to vector<8x8xf32>
    %34 = arith.mulf %32, %33 : vector<8x8xf32>
    %35 = arith.truncf %34 : vector<8x8xf32> to vector<8x8xbf16>
    %c0_17 = arith.constant 0 : index
    %c0_18 = arith.constant 0 : index
    %c0_19 = arith.constant 0 : index
    %36 = vector.load %arg5[%c0_17, %c0_18, %c0_19] : memref<4x8x32xbf16, #tpu.memory_space<vmem>>, vector<1x8x32xbf16>
    %37 = vector.shape_cast %36 : vector<1x8x32xbf16> to vector<8x32xbf16>
    %cst_20 = arith.constant dense<0.000000e+00> : vector<8x32xf32>
    %38 = tpu.matmul %35, %37, %cst_20 {dimension_numbers = #tpu.dot_dimension_numbers<[1], [0], [0], [1], [0, 0, 1, 1], [], []>} : vector<8x8xbf16>, vector<8x32xbf16>, vector<8x32xf32> -> vector<8x32xf32>
    %39 = arith.addf %14, %38 : vector<8x32xf32>
    %40 = vector.extract_strided_slice %1 {offsets = [0, 8], sizes = [8, 8], strides = [1, 1]} : vector<8x32xbf16> to vector<8x8xbf16>
    %41 = vector.extract_strided_slice %3 {offsets = [0, 8], sizes = [8, 8], strides = [1, 1]} : vector<8x32xbf16> to vector<8x8xbf16>
    %cst_21 = arith.constant dense<0.000000e+00> : vector<8x8xf32>
    %42 = tpu.matmul %40, %41, %cst_21 {dimension_numbers = #tpu.dot_dimension_numbers<[1], [1], [0], [0], [0, 0, 1, 0], [], []>} : vector<8x8xbf16>, vector<8x8xbf16>, vector<8x8xf32> -> vector<8x8xf32>
    %cst_22 = arith.constant -1.000000e+30 : f32
    %43 = vector.shape_cast %8 : vector<1x8xi1> to vector<1x8xi1>
    %44 = vector.broadcast %43 : vector<1x8xi1> to vector<8x8xi1>
    %45 = vector.broadcast %cst_22 : f32 to vector<8x8xf32>
    %46 = arith.select %44, %42, %45 : vector<8x8xi1>, vector<8x8xf32>
    %cst_23 = arith.constant dense<0xFF800000> : vector<8xf32>
    %47 = vector.multi_reduction <maximumf>, %46, %cst_23 [1] : vector<8x8xf32> to vector<8xf32>
    %48 = vector.shape_cast %47 : vector<8xf32> to vector<8x1xf32>
    %49 = vector.broadcast %48 : vector<8x1xf32> to vector<8x8xf32>
    %50 = arith.subf %46, %49 : vector<8x8xf32>
    %51 = math.exp %50 : vector<8x8xf32>
    %cst_24 = arith.constant dense<0.000000e+00> : vector<8xf32>
    %52 = vector.multi_reduction <add>, %51, %cst_24 [1] : vector<8x8xf32> to vector<8xf32>
    %53 = vector.shape_cast %52 : vector<8xf32> to vector<8x1xf32>
    %54 = tpu.reciprocal %53 {approx = true} : vector<8x1xf32> -> vector<8x1xf32>
    %55 = arith.truncf %51 : vector<8x8xf32> to vector<8x8xbf16>
    %56 = vector.extract_strided_slice %5 {offsets = [0, 8], sizes = [8, 8], strides = [1, 1]} : vector<8x32xbf16> to vector<8x8xbf16>
    %cst_25 = arith.constant dense<0.000000e+00> : vector<8x8xf32>
    %57 = tpu.matmul %55, %56, %cst_25 {dimension_numbers = #tpu.dot_dimension_numbers<[1], [0], [0], [1], [0, 0, 1, 1], [], []>} : vector<8x8xbf16>, vector<8x8xbf16>, vector<8x8xf32> -> vector<8x8xf32>
    %58 = vector.broadcast %54 : vector<8x1xf32> to vector<8x8xf32>
    %59 = arith.mulf %57, %58 : vector<8x8xf32>
    %60 = arith.truncf %59 : vector<8x8xf32> to vector<8x8xbf16>
    %c1 = arith.constant 1 : index
    %c0_26 = arith.constant 0 : index
    %c0_27 = arith.constant 0 : index
    %61 = vector.load %arg5[%c1, %c0_26, %c0_27] : memref<4x8x32xbf16, #tpu.memory_space<vmem>>, vector<1x8x32xbf16>
    %62 = vector.shape_cast %61 : vector<1x8x32xbf16> to vector<8x32xbf16>
    %cst_28 = arith.constant dense<0.000000e+00> : vector<8x32xf32>
    %63 = tpu.matmul %60, %62, %cst_28 {dimension_numbers = #tpu.dot_dimension_numbers<[1], [0], [0], [1], [0, 0, 1, 1], [], []>} : vector<8x8xbf16>, vector<8x32xbf16>, vector<8x32xf32> -> vector<8x32xf32>
    %64 = arith.addf %39, %63 : vector<8x32xf32>
    %65 = vector.extract_strided_slice %1 {offsets = [0, 16], sizes = [8, 8], strides = [1, 1]} : vector<8x32xbf16> to vector<8x8xbf16>
    %66 = vector.extract_strided_slice %3 {offsets = [0, 16], sizes = [8, 8], strides = [1, 1]} : vector<8x32xbf16> to vector<8x8xbf16>
    %cst_29 = arith.constant dense<0.000000e+00> : vector<8x8xf32>
    %67 = tpu.matmul %65, %66, %cst_29 {dimension_numbers = #tpu.dot_dimension_numbers<[1], [1], [0], [0], [0, 0, 1, 0], [], []>} : vector<8x8xbf16>, vector<8x8xbf16>, vector<8x8xf32> -> vector<8x8xf32>
    %cst_30 = arith.constant -1.000000e+30 : f32
    %68 = vector.shape_cast %8 : vector<1x8xi1> to vector<1x8xi1>
    %69 = vector.broadcast %68 : vector<1x8xi1> to vector<8x8xi1>
    %70 = vector.broadcast %cst_30 : f32 to vector<8x8xf32>
    %71 = arith.select %69, %67, %70 : vector<8x8xi1>, vector<8x8xf32>
    %cst_31 = arith.constant dense<0xFF800000> : vector<8xf32>
    %72 = vector.multi_reduction <maximumf>, %71, %cst_31 [1] : vector<8x8xf32> to vector<8xf32>
    %73 = vector.shape_cast %72 : vector<8xf32> to vector<8x1xf32>
    %74 = vector.broadcast %73 : vector<8x1xf32> to vector<8x8xf32>
    %75 = arith.subf %71, %74 : vector<8x8xf32>
    %76 = math.exp %75 : vector<8x8xf32>
    %cst_32 = arith.constant dense<0.000000e+00> : vector<8xf32>
    %77 = vector.multi_reduction <add>, %76, %cst_32 [1] : vector<8x8xf32> to vector<8xf32>
    %78 = vector.shape_cast %77 : vector<8xf32> to vector<8x1xf32>
    %79 = tpu.reciprocal %78 {approx = true} : vector<8x1xf32> -> vector<8x1xf32>
    %80 = arith.truncf %76 : vector<8x8xf32> to vector<8x8xbf16>
    %81 = vector.extract_strided_slice %5 {offsets = [0, 16], sizes = [8, 8], strides = [1, 1]} : vector<8x32xbf16> to vector<8x8xbf16>
    %cst_33 = arith.constant dense<0.000000e+00> : vector<8x8xf32>
    %82 = tpu.matmul %80, %81, %cst_33 {dimension_numbers = #tpu.dot_dimension_numbers<[1], [0], [0], [1], [0, 0, 1, 1], [], []>} : vector<8x8xbf16>, vector<8x8xbf16>, vector<8x8xf32> -> vector<8x8xf32>
    %83 = vector.broadcast %79 : vector<8x1xf32> to vector<8x8xf32>
    %84 = arith.mulf %82, %83 : vector<8x8xf32>
    %85 = arith.truncf %84 : vector<8x8xf32> to vector<8x8xbf16>
    %c2 = arith.constant 2 : index
    %c0_34 = arith.constant 0 : index
    %c0_35 = arith.constant 0 : index
    %86 = vector.load %arg5[%c2, %c0_34, %c0_35] : memref<4x8x32xbf16, #tpu.memory_space<vmem>>, vector<1x8x32xbf16>
    %87 = vector.shape_cast %86 : vector<1x8x32xbf16> to vector<8x32xbf16>
    %cst_36 = arith.constant dense<0.000000e+00> : vector<8x32xf32>
    %88 = tpu.matmul %85, %87, %cst_36 {dimension_numbers = #tpu.dot_dimension_numbers<[1], [0], [0], [1], [0, 0, 1, 1], [], []>} : vector<8x8xbf16>, vector<8x32xbf16>, vector<8x32xf32> -> vector<8x32xf32>
    %89 = arith.addf %64, %88 : vector<8x32xf32>
    %90 = vector.extract_strided_slice %1 {offsets = [0, 24], sizes = [8, 8], strides = [1, 1]} : vector<8x32xbf16> to vector<8x8xbf16>
    %91 = vector.extract_strided_slice %3 {offsets = [0, 24], sizes = [8, 8], strides = [1, 1]} : vector<8x32xbf16> to vector<8x8xbf16>
    %cst_37 = arith.constant dense<0.000000e+00> : vector<8x8xf32>
    %92 = tpu.matmul %90, %91, %cst_37 {dimension_numbers = #tpu.dot_dimension_numbers<[1], [1], [0], [0], [0, 0, 1, 0], [], []>} : vector<8x8xbf16>, vector<8x8xbf16>, vector<8x8xf32> -> vector<8x8xf32>
    %cst_38 = arith.constant -1.000000e+30 : f32
    %93 = vector.shape_cast %8 : vector<1x8xi1> to vector<1x8xi1>
    %94 = vector.broadcast %93 : vector<1x8xi1> to vector<8x8xi1>
    %95 = vector.broadcast %cst_38 : f32 to vector<8x8xf32>
    %96 = arith.select %94, %92, %95 : vector<8x8xi1>, vector<8x8xf32>
    %cst_39 = arith.constant dense<0xFF800000> : vector<8xf32>
    %97 = vector.multi_reduction <maximumf>, %96, %cst_39 [1] : vector<8x8xf32> to vector<8xf32>
    %98 = vector.shape_cast %97 : vector<8xf32> to vector<8x1xf32>
    %99 = vector.broadcast %98 : vector<8x1xf32> to vector<8x8xf32>
    %100 = arith.subf %96, %99 : vector<8x8xf32>
    %101 = math.exp %100 : vector<8x8xf32>
    %cst_40 = arith.constant dense<0.000000e+00> : vector<8xf32>
    %102 = vector.multi_reduction <add>, %101, %cst_40 [1] : vector<8x8xf32> to vector<8xf32>
    %103 = vector.shape_cast %102 : vector<8xf32> to vector<8x1xf32>
    %104 = tpu.reciprocal %103 {approx = true} : vector<8x1xf32> -> vector<8x1xf32>
    %105 = arith.truncf %101 : vector<8x8xf32> to vector<8x8xbf16>
    %106 = vector.extract_strided_slice %5 {offsets = [0, 24], sizes = [8, 8], strides = [1, 1]} : vector<8x32xbf16> to vector<8x8xbf16>
    %cst_41 = arith.constant dense<0.000000e+00> : vector<8x8xf32>
    %107 = tpu.matmul %105, %106, %cst_41 {dimension_numbers = #tpu.dot_dimension_numbers<[1], [0], [0], [1], [0, 0, 1, 1], [], []>} : vector<8x8xbf16>, vector<8x8xbf16>, vector<8x8xf32> -> vector<8x8xf32>
    %108 = vector.broadcast %104 : vector<8x1xf32> to vector<8x8xf32>
    %109 = arith.mulf %107, %108 : vector<8x8xf32>
    %110 = arith.truncf %109 : vector<8x8xf32> to vector<8x8xbf16>
    %c3 = arith.constant 3 : index
    %c0_42 = arith.constant 0 : index
    %c0_43 = arith.constant 0 : index
    %111 = vector.load %arg5[%c3, %c0_42, %c0_43] : memref<4x8x32xbf16, #tpu.memory_space<vmem>>, vector<1x8x32xbf16>
    %112 = vector.shape_cast %111 : vector<1x8x32xbf16> to vector<8x32xbf16>
    %cst_44 = arith.constant dense<0.000000e+00> : vector<8x32xf32>
    %113 = tpu.matmul %110, %112, %cst_44 {dimension_numbers = #tpu.dot_dimension_numbers<[1], [0], [0], [1], [0, 0, 1, 1], [], []>} : vector<8x8xbf16>, vector<8x32xbf16>, vector<8x32xf32> -> vector<8x32xf32>
    %114 = arith.addf %89, %113 : vector<8x32xf32>
    %115 = arith.truncf %114 : vector<8x32xf32> to vector<8x32xbf16>
    %c0_45 = arith.constant 0 : index
    %c0_46 = arith.constant 0 : index
    %c0_47 = arith.constant 0 : index
    %116 = vector.load %arg8[%c0_45, %c0_46, %c0_47] : memref<1x8x32xbf16, #tpu.memory_space<vmem>>, vector<1x8x32xbf16>
    %117 = vector.shape_cast %116 : vector<1x8x32xbf16> to vector<8x32xbf16>
    %118 = vector.shape_cast %115 : vector<8x32xbf16> to vector<1x8x32xbf16>
    tpu.vector_store %arg8[%c0_45, %c0_46, %c0_47], %118 {strides = array<i32>} : memref<1x8x32xbf16, #tpu.memory_space<vmem>>, vector<1x8x32xbf16>,
    return
  }
  func.func @transform_0(%arg0: i32, %arg1: i32) -> (i32, i32, i32) {
    %c0_i32 = arith.constant 0 : i32
    %c0_i32_0 = arith.constant 0 : i32
    return %arg0, %arg1, %c0_i32 : i32, i32, i32
  }
  func.func @transform_1(%arg0: i32, %arg1: i32) -> (i32, i32, i32) {
    %c0_i32 = arith.constant 0 : i32
    %c0_i32_0 = arith.constant 0 : i32
    %c0_i32_1 = arith.constant 0 : i32
    return %arg0, %c0_i32, %c0_i32_0 : i32, i32, i32
  }
  func.func @transform_2(%arg0: i32, %arg1: i32) -> (i32, i32, i32) {
    %c0_i32 = arith.constant 0 : i32
    %c0_i32_0 = arith.constant 0 : i32
    %c0_i32_1 = arith.constant 0 : i32
    return %arg0, %c0_i32, %c0_i32_0 : i32, i32, i32
  }
  func.func @transform_3(%arg0: i32, %arg1: i32) -> (i32, i32, i32) {
    %c0_i32 = arith.constant 0 : i32
    %c0_i32_0 = arith.constant 0 : i32
    %c0_i32_1 = arith.constant 0 : i32
    %c0_i32_2 = arith.constant 0 : i32
    return %c0_i32, %c0_i32_0, %c0_i32_1 : i32, i32, i32
  }
  func.func @transform_4(%arg0: i32, %arg1: i32) -> (i32, i32) {
    %c0_i32 = arith.constant 0 : i32
    %c0_i32_0 = arith.constant 0 : i32
    %c0_i32_1 = arith.constant 0 : i32
    return %c0_i32, %c0_i32_0 : i32, i32
  }
  func.func @transform_5(%arg0: i32, %arg1: i32) -> (i32, i32, i32) {
    %c0_i32 = arith.constant 0 : i32
    %c0_i32_0 = arith.constant 0 : i32
    return %arg0, %arg1, %c0_i32 : i32, i32, i32
  }
  func.func @transform_6(%arg0: i32, %arg1: i32) -> (i32, i32, i32) {
    %c0_i32 = arith.constant 0 : i32
    %c0_i32_0 = arith.constant 0 : i32
    return %arg0, %arg1, %c0_i32 : i32, i32, i32
  }
}

module attributes {stable_mosaic.version = 11 : i64} {
  func.func @ln_mlp_kernel(%arg0: i32, %arg1: i32, %arg2: i32, %arg3: memref<1x8x32xbf16, #tpu.memory_space<vmem>>, %arg4: memref<1x32xf32, #tpu.memory_space<vmem>>, %arg5: memref<1x32xf32, #tpu.memory_space<vmem>>, %arg6: memref<32x128xbf16, #tpu.memory_space<vmem>>, %arg7: memref<1x128xf32, #tpu.memory_space<vmem>>, %arg8: memref<128x32xbf16, #tpu.memory_space<vmem>>, %arg9: memref<1x32xf32, #tpu.memory_space<vmem>>, %arg10: memref<1x8x32xbf16, #tpu.memory_space<vmem>>, %arg11: memref<8x32xf32, #tpu.memory_space<vmem>>) attributes {dimension_semantics = [#tpu.dimension_semantics<parallel>, #tpu.dimension_semantics<parallel>, #tpu.dimension_semantics<arbitrary>], iteration_bounds = array<i64: 2, 1, 1>, scalar_prefetch = 0 : i64, scratch_operands = 1 : i64, tpu.core_type = #tpu.core_type<tc>, window_params = [{transform_indices = @transform_0, window_bounds = array<i64: 1, 8, 32>}, {pipeline_mode = #tpu.pipeline_mode<synchronous>, transform_indices = @transform_1, window_bounds = array<i64: 1, 32>}, {pipeline_mode = #tpu.pipeline_mode<synchronous>, transform_indices = @transform_2, window_bounds = array<i64: 1, 32>}, {transform_indices = @transform_3, window_bounds = array<i64: 32, 128>}, {transform_indices = @transform_4, window_bounds = array<i64: 1, 128>}, {transform_indices = @transform_5, window_bounds = array<i64: 128, 32>}, {pipeline_mode = #tpu.pipeline_mode<synchronous>, transform_indices = @transform_6, window_bounds = array<i64: 1, 32>}, {transform_indices = @transform_7, window_bounds = array<i64: 1, 8, 32>}]} {
    %c0 = arith.constant 0 : index
    %c0_0 = arith.constant 0 : index
    %c0_1 = arith.constant 0 : index
    %0 = vector.load %arg3[%c0, %c0_0, %c0_1] : memref<1x8x32xbf16, #tpu.memory_space<vmem>>, vector<1x8x32xbf16>
    %1 = vector.shape_cast %0 : vector<1x8x32xbf16> to vector<8x32xbf16>
    %2 = arith.extf %1 : vector<8x32xbf16> to vector<8x32xf32>
    %c0_i32 = arith.constant 0 : i32
    %3 = arith.cmpi eq, %arg2, %c0_i32 : i32
    %4 = arith.extui %3 : i1 to i32
    %c0_i32_2 = arith.constant 0 : i32
    %5 = arith.cmpi ne, %4, %c0_i32_2 : i32
    scf.if %5 {
      %c0_27 = arith.constant 0 : index
      %c0_28 = arith.constant 0 : index
      %53 = vector.load %arg9[%c0_27, %c0_28] : memref<1x32xf32, #tpu.memory_space<vmem>>, vector<1x32xf32>
      %54 = vector.broadcast %53 : vector<1x32xf32> to vector<8x32xf32>
      %55 = arith.addf %2, %54 : vector<8x32xf32>
      %c0_29 = arith.constant 0 : index
      %c0_30 = arith.constant 0 : index
      %56 = vector.load %arg11[%c0_29, %c0_30] : memref<8x32xf32, #tpu.memory_space<vmem>>, vector<8x32xf32>
      tpu.vector_store %arg11[%c0_29, %c0_30], %55 {strides = array<i32>} : memref<8x32xf32, #tpu.memory_space<vmem>>, vector<8x32xf32>,
    } else {
    }
    %c0_3 = arith.constant 0 : index
    %c0_4 = arith.constant 0 : index
    %6 = vector.load %arg4[%c0_3, %c0_4] : memref<1x32xf32, #tpu.memory_space<vmem>>, vector<1x32xf32>
    %c0_5 = arith.constant 0 : index
    %c0_6 = arith.constant 0 : index
    %7 = vector.load %arg5[%c0_5, %c0_6] : memref<1x32xf32, #tpu.memory_space<vmem>>, vector<1x32xf32>
    %cst = arith.constant dense<0.000000e+00> : vector<8xf32>
    %8 = vector.multi_reduction <add>, %2, %cst [1] : vector<8x32xf32> to vector<8xf32>
    %9 = vector.shape_cast %8 : vector<8xf32> to vector<8x1xf32>
    %cst_7 = arith.constant 3.200000e+01 : f32
    %10 = vector.broadcast %cst_7 : f32 to vector<8x1xf32>
    %11 = arith.divf %9, %10 : vector<8x1xf32>
    %12 = vector.broadcast %11 : vector<8x1xf32> to vector<8x32xf32>
    %13 = arith.subf %2, %12 : vector<8x32xf32>
    %14 = arith.mulf %13, %13 : vector<8x32xf32>
    %cst_8 = arith.constant dense<0.000000e+00> : vector<8xf32>
    %15 = vector.multi_reduction <add>, %14, %cst_8 [1] : vector<8x32xf32> to vector<8xf32>
    %16 = vector.shape_cast %15 : vector<8xf32> to vector<8x1xf32>
    %cst_9 = arith.constant 3.200000e+01 : f32
    %17 = vector.broadcast %cst_9 : f32 to vector<8x1xf32>
    %18 = arith.divf %16, %17 : vector<8x1xf32>
    %19 = vector.broadcast %11 : vector<8x1xf32> to vector<8x32xf32>
    %20 = arith.subf %2, %19 : vector<8x32xf32>
    %cst_10 = arith.constant 9.99999974E-6 : f32
    %21 = vector.broadcast %cst_10 : f32 to vector<8x1xf32>
    %22 = arith.addf %18, %21 : vector<8x1xf32>
    %23 = math.rsqrt %22 : vector<8x1xf32>
    %24 = vector.broadcast %23 : vector<8x1xf32> to vector<8x32xf32>
    %25 = arith.mulf %20, %24 : vector<8x32xf32>
    %26 = vector.broadcast %6 : vector<1x32xf32> to vector<8x32xf32>
    %27 = arith.mulf %25, %26 : vector<8x32xf32>
    %28 = vector.broadcast %7 : vector<1x32xf32> to vector<8x32xf32>
    %29 = arith.addf %27, %28 : vector<8x32xf32>
    %30 = arith.truncf %29 : vector<8x32xf32> to vector<8x32xbf16>
    %c0_11 = arith.constant 0 : index
    %c0_12 = arith.constant 0 : index
    %31 = vector.load %arg6[%c0_11, %c0_12] : memref<32x128xbf16, #tpu.memory_space<vmem>>, vector<32x128xbf16>
    %cst_13 = arith.constant dense<0.000000e+00> : vector<8x128xf32>
    %32 = tpu.matmul %30, %31, %cst_13 {dimension_numbers = #tpu.dot_dimension_numbers<[1], [0], [0], [1], [0, 0, 1, 1], [], []>} : vector<8x32xbf16>, vector<32x128xbf16>, vector<8x128xf32> -> vector<8x128xf32>
    %c0_14 = arith.constant 0 : index
    %c0_15 = arith.constant 0 : index
    %33 = vector.load %arg7[%c0_14, %c0_15] : memref<1x128xf32, #tpu.memory_space<vmem>>, vector<1x128xf32>
    %34 = vector.broadcast %33 : vector<1x128xf32> to vector<8x128xf32>
    %35 = arith.addf %32, %34 : vector<8x128xf32>
    %cst_16 = arith.constant 1.702000e+00 : f32
    %36 = vector.broadcast %cst_16 : f32 to vector<8x128xf32>
    %37 = arith.mulf %36, %35 : vector<8x128xf32>
    %38 = arith.negf %37 : vector<8x128xf32>
    %39 = math.exp %38 : vector<8x128xf32>
    %cst_17 = arith.constant 1.000000e+00 : f32
    %40 = vector.broadcast %cst_17 : f32 to vector<8x128xf32>
    %41 = arith.addf %40, %39 : vector<8x128xf32>
    %42 = arith.divf %40, %41 : vector<8x128xf32>
    %43 = arith.mulf %35, %42 : vector<8x128xf32>
    %44 = arith.truncf %43 : vector<8x128xf32> to vector<8x128xbf16>
    %c0_18 = arith.constant 0 : index
    %c0_19 = arith.constant 0 : index
    %45 = vector.load %arg11[%c0_18, %c0_19] : memref<8x32xf32, #tpu.memory_space<vmem>>, vector<8x32xf32>
    %c0_20 = arith.constant 0 : index
    %c0_21 = arith.constant 0 : index
    %46 = vector.load %arg8[%c0_20, %c0_21] : memref<128x32xbf16, #tpu.memory_space<vmem>>, vector<128x32xbf16>
    %cst_22 = arith.constant dense<0.000000e+00> : vector<8x32xf32>
    %47 = tpu.matmul %44, %46, %cst_22 {dimension_numbers = #tpu.dot_dimension_numbers<[1], [0], [0], [1], [0, 0, 1, 1], [], []>} : vector<8x128xbf16>, vector<128x32xbf16>, vector<8x32xf32> -> vector<8x32xf32>
    %48 = arith.addf %45, %47 : vector<8x32xf32>
    %c0_23 = arith.constant 0 : index
    %c0_24 = arith.constant 0 : index
    %49 = vector.load %arg11[%c0_23, %c0_24] : memref<8x32xf32, #tpu.memory_space<vmem>>, vector<8x32xf32>
    tpu.vector_store %arg11[%c0_23, %c0_24], %48 {strides = array<i32>} : memref<8x32xf32, #tpu.memory_space<vmem>>, vector<8x32xf32>,
    %c0_i32_25 = arith.constant 0 : i32
    %50 = arith.cmpi eq, %arg2, %c0_i32_25 : i32
    %51 = arith.extui %50 : i1 to i32
    %c0_i32_26 = arith.constant 0 : i32
    %52 = arith.cmpi ne, %51, %c0_i32_26 : i32
    scf.if %52 {
      %c0_27 = arith.constant 0 : index
      %c0_28 = arith.constant 0 : index
      %53 = vector.load %arg11[%c0_27, %c0_28] : memref<8x32xf32, #tpu.memory_space<vmem>>, vector<8x32xf32>
      %54 = arith.truncf %53 : vector<8x32xf32> to vector<8x32xbf16>
      %c0_29 = arith.constant 0 : index
      %c0_30 = arith.constant 0 : index
      %c0_31 = arith.constant 0 : index
      %55 = vector.load %arg10[%c0_29, %c0_30, %c0_31] : memref<1x8x32xbf16, #tpu.memory_space<vmem>>, vector<1x8x32xbf16>
      %56 = vector.shape_cast %55 : vector<1x8x32xbf16> to vector<8x32xbf16>
      %57 = vector.shape_cast %54 : vector<8x32xbf16> to vector<1x8x32xbf16>
      tpu.vector_store %arg10[%c0_29, %c0_30, %c0_31], %57 {strides = array<i32>} : memref<1x8x32xbf16, #tpu.memory_space<vmem>>, vector<1x8x32xbf16>,
    } else {
    }
    return
  }
  func.func @transform_0(%arg0: i32, %arg1: i32, %arg2: i32) -> (i32, i32, i32) {
    %c0_i32 = arith.constant 0 : i32
    %c0_i32_0 = arith.constant 0 : i32
    return %arg0, %arg1, %c0_i32 : i32, i32, i32
  }
  func.func @transform_1(%arg0: i32, %arg1: i32, %arg2: i32) -> (i32, i32) {
    %c0_i32 = arith.constant 0 : i32
    %c0_i32_0 = arith.constant 0 : i32
    %c0_i32_1 = arith.constant 0 : i32
    return %c0_i32, %c0_i32_0 : i32, i32
  }
  func.func @transform_2(%arg0: i32, %arg1: i32, %arg2: i32) -> (i32, i32) {
    %c0_i32 = arith.constant 0 : i32
    %c0_i32_0 = arith.constant 0 : i32
    %c0_i32_1 = arith.constant 0 : i32
    return %c0_i32, %c0_i32_0 : i32, i32
  }
  func.func @transform_3(%arg0: i32, %arg1: i32, %arg2: i32) -> (i32, i32) {
    %c0_i32 = arith.constant 0 : i32
    %c0_i32_0 = arith.constant 0 : i32
    return %c0_i32, %arg2 : i32, i32
  }
  func.func @transform_4(%arg0: i32, %arg1: i32, %arg2: i32) -> (i32, i32) {
    %c0_i32 = arith.constant 0 : i32
    %c0_i32_0 = arith.constant 0 : i32
    return %c0_i32, %arg2 : i32, i32
  }
  func.func @transform_5(%arg0: i32, %arg1: i32, %arg2: i32) -> (i32, i32) {
    %c0_i32 = arith.constant 0 : i32
    %c0_i32_0 = arith.constant 0 : i32
    return %arg2, %c0_i32 : i32, i32
  }
  func.func @transform_6(%arg0: i32, %arg1: i32, %arg2: i32) -> (i32, i32) {
    %c0_i32 = arith.constant 0 : i32
    %c0_i32_0 = arith.constant 0 : i32
    %c0_i32_1 = arith.constant 0 : i32
    return %c0_i32, %c0_i32_0 : i32, i32
  }
  func.func @transform_7(%arg0: i32, %arg1: i32, %arg2: i32) -> (i32, i32, i32) {
    %c0_i32 = arith.constant 0 : i32
    %c0_i32_0 = arith.constant 0 : i32
    return %arg0, %arg1, %c0_i32 : i32, i32, i32
  }
}

module attributes {stable_mosaic.version = 11 : i64} {
  func.func @ln_proj_kernel(%arg0: memref<2x32xbf16, #tpu.memory_space<vmem>>, %arg1: memref<1x32xf32, #tpu.memory_space<vmem>>, %arg2: memref<1x32xf32, #tpu.memory_space<vmem>>, %arg3: memref<32x16xbf16, #tpu.memory_space<vmem>>, %arg4: memref<2x16xf32, #tpu.memory_space<vmem>>) attributes {dimension_semantics = [], scalar_prefetch = 0 : i64, scratch_operands = 0 : i64, tpu.core_type = #tpu.core_type<tc>} {
    %c0 = arith.constant 0 : index
    %c0_0 = arith.constant 0 : index
    %0 = vector.load %arg0[%c0, %c0_0] : memref<2x32xbf16, #tpu.memory_space<vmem>>, vector<2x32xbf16>
    %1 = arith.extf %0 : vector<2x32xbf16> to vector<2x32xf32>
    %c0_1 = arith.constant 0 : index
    %c0_2 = arith.constant 0 : index
    %2 = vector.load %arg1[%c0_1, %c0_2] : memref<1x32xf32, #tpu.memory_space<vmem>>, vector<1x32xf32>
    %c0_3 = arith.constant 0 : index
    %c0_4 = arith.constant 0 : index
    %3 = vector.load %arg2[%c0_3, %c0_4] : memref<1x32xf32, #tpu.memory_space<vmem>>, vector<1x32xf32>
    %cst = arith.constant dense<0.000000e+00> : vector<2xf32>
    %4 = vector.multi_reduction <add>, %1, %cst [1] : vector<2x32xf32> to vector<2xf32>
    %5 = vector.shape_cast %4 : vector<2xf32> to vector<2x1xf32>
    %cst_5 = arith.constant 3.200000e+01 : f32
    %6 = vector.broadcast %cst_5 : f32 to vector<2x1xf32>
    %7 = arith.divf %5, %6 : vector<2x1xf32>
    %8 = vector.broadcast %7 : vector<2x1xf32> to vector<2x32xf32>
    %9 = arith.subf %1, %8 : vector<2x32xf32>
    %10 = arith.mulf %9, %9 : vector<2x32xf32>
    %cst_6 = arith.constant dense<0.000000e+00> : vector<2xf32>
    %11 = vector.multi_reduction <add>, %10, %cst_6 [1] : vector<2x32xf32> to vector<2xf32>
    %12 = vector.shape_cast %11 : vector<2xf32> to vector<2x1xf32>
    %cst_7 = arith.constant 3.200000e+01 : f32
    %13 = vector.broadcast %cst_7 : f32 to vector<2x1xf32>
    %14 = arith.divf %12, %13 : vector<2x1xf32>
    %15 = vector.broadcast %7 : vector<2x1xf32> to vector<2x32xf32>
    %16 = arith.subf %1, %15 : vector<2x32xf32>
    %cst_8 = arith.constant 9.99999974E-6 : f32
    %17 = vector.broadcast %cst_8 : f32 to vector<2x1xf32>
    %18 = arith.addf %14, %17 : vector<2x1xf32>
    %19 = math.rsqrt %18 : vector<2x1xf32>
    %20 = vector.broadcast %19 : vector<2x1xf32> to vector<2x32xf32>
    %21 = arith.mulf %16, %20 : vector<2x32xf32>
    %22 = vector.broadcast %2 : vector<1x32xf32> to vector<2x32xf32>
    %23 = arith.mulf %21, %22 : vector<2x32xf32>
    %24 = vector.broadcast %3 : vector<1x32xf32> to vector<2x32xf32>
    %25 = arith.addf %23, %24 : vector<2x32xf32>
    %26 = arith.truncf %25 : vector<2x32xf32> to vector<2x32xbf16>
    %c0_9 = arith.constant 0 : index
    %c0_10 = arith.constant 0 : index
    %27 = vector.load %arg3[%c0_9, %c0_10] : memref<32x16xbf16, #tpu.memory_space<vmem>>, vector<32x16xbf16>
    %cst_11 = arith.constant dense<0.000000e+00> : vector<2x16xf32>
    %28 = tpu.matmul %26, %27, %cst_11 {dimension_numbers = #tpu.dot_dimension_numbers<[1], [0], [0], [1], [0, 0, 1, 1], [], []>} : vector<2x32xbf16>, vector<32x16xbf16>, vector<2x16xf32> -> vector<2x16xf32>
    %c0_12 = arith.constant 0 : index
    %c0_13 = arith.constant 0 : index
    %29 = vector.load %arg4[%c0_12, %c0_13] : memref<2x16xf32, #tpu.memory_space<vmem>>, vector<2x16xf32>
    tpu.vector_store %arg4[%c0_12, %c0_13], %28 {strides = array<i32>} : memref<2x16xf32, #tpu.memory_space<vmem>>, vector<2x16xf32>,
    return
  }
}

</mosaic_0001>

<bundles_post_ra>
// kernel: image_encoder_forward.9
= control target key start
LH: loop header
LB: loop body
LE: loop exit
PB: predicated region body
PF: predicated region fallthrough
CT: control target
= control target key end

     0   :  { %s1343_s0 = inlined_call_operand.hbm [shape: bf16[2,4,256], index: 0, kind: input, shape index: {}]   ;;  %s1344_s1 = inlined_call_operand.hbm [shape: bf16[256,32], index: 1, kind: input, shape index: {}]   ;;  %s1345_s2 = inlined_call_operand.hbm [shape: f32[2,4,1], index: 2, kind: input, shape index: {}]   ;;  %s1346_s3 = inlined_call_operand.hbm [shape: f32[1,4,32], index: 3, kind: input, shape index: {}]   ;;  %s1347_s4 = inlined_call_operand.hbm [shape: bf16[2,4,32], index: 4, kind: output, shape index: {}]  }
   0x1   :  { %1358 = sst [smem:[#allocation18_spill]] %s1344_s1 }
   0x2   :  { %9 = vsyncpa [#allocation3], 0 }
   0x3   :  { %11 = vsyncpa [#allocation3 + $0x1], 0 }
   0x4   :  { %12 = vsyncpa [#allocation6], 0 }
   0x5   :  { %13 = vsyncpa [#allocation4], 0 }
   0x6   :  { %15 = vsyncpa [#allocation4 + $0x1], 0  ;;  %s1056_s15 = smov 0   ;;  %s1058_s16 = smov 0  }
   0x7   :  { %s1060_s17 = smov 0   ;;  %s1062_s18 = smov 0  }
   0x8   :  { %s1064_s19 = smov 0   ;;  %s1066_s20 = smov 0  }
   0x9 LB: > { %1359 = sst [smem:[#allocation15_spill]] %s1017_s19  ;;  %s1087_s21 = sadd.s32 4294967295, %s1021_s20   ;;  %s1021_s20 = sphi %s1066_s20, %s21_s20   ;;  %s1017_s19 = sphi %s1064_s19, %s1387_s19   ;;  %s1013_s18 = sphi %s1062_s18, %s1386_s18   ;;  %s1009_s17 = sphi %s1060_s17, %s1390_s17   ;;  %s1005_s16 = sphi %s1058_s16, %s1389_s16   ;;  %s1001_s15 = sphi %s1056_s15, %s1388_s15  }
   0xa   : > { %s643_s22 = sadd.s32 4294967294, %s1021_s20   ;;  %p55_p0 = scmp.ne.s32.totalorder %s1005_s16, %s1001_s15 }
   0xb   : > { %p1348_p1 = scmp.eq.s32.totalorder %s1087_s21, 0  ;;  %p162_p3 = scmp.eq.s32.totalorder %s643_s22, 1 }
   0xc   : > { %p644_p5 = scmp.ge.s32.totalorder %s1021_s20, 1  ;;  %p169_p7 = scmp.lt.s32.totalorder %s1021_s20, 3 }
   0xd   : > { %p1096_p4 = por %p1348_p1, %p55_p0  ;;  %p1101_p6 = por %p162_p3, %p55_p0 }
   0xe   : > { %p1106_p8 = pnand %p644_p5, %p169_p7  ;;  %s1023_s26 = smov [#allocation5]  }
   0xf   : > { %s1360_s23 = scalar_select %p1096_p4, 1, 0 }
  0x10   : > { %s1361_s24 = scalar_select %p1101_p6, 1, 0 }
  0x11   : > { %s1362_s25 = scalar_select %p1106_p8, 1, 0 }
  0x12   : > { %s181_s27 = sshll.u32 %s1023_s26, 4  ;;  %p717_p9 = pneg %p1106_p8  ;;  %s182_s27 = int_to_ptr.vmem [resolvable:$true] %s181_s27 }
  0x13   : > { %s33_s29 = sadd.s32 1, %s1017_s19  ;;  %s1364_s1 = sld [smem:[#allocation18_spill]] }
  0x14   : > { %p1115_p11 = pnand %p717_p9, %p1348_p1 }
  0x16   : > { %p1353_p13 = pneg %p1115_p11 }
  0x19   : > { %s811_s6 = scalar_lea.hbm %s1364_s1, 2048 }
  0x1a   : > { %p812_p12 = scmp.ne.s32.totalorder %s1364_s1, %s811_s6  ;;  %p818_p5 = scmp.lt.u32.totalorder %s811_s6, %s1364_s1 }
  0x1c   : > { %p814_p0 = pnand %p1353_p13, %p812_p12 }
  0x1e   : > { %p815_p3 = pneg %p814_p0 }
  0x20   : > { %p820_p7 = pnand %p818_p5, %p815_p3 }
  0x22   : > { %823 = shalt.err (!%p820_p7)
}
  0x23   : > { %s824_s11 = scalar_lea.vmem %s182_s27, 2048  ;;  %p832_p2 = scmp.lt.s32.totalorder %s182_s27, %s182_s27 }
  0x24   : > { %p825_p9 = scmp.ne.s32.totalorder %s182_s27, %s824_s11  ;;  %p833_p6 = scmp.lt.s32.totalorder %s824_s11, %s824_s11 }
  0x26   : > { %p827_p10 = pnand %p825_p9, %p1353_p13  ;;  %p834_p4 = por %p833_p6, %p832_p2 }
  0x28   : > { %p828_p1 = pneg %p827_p10 }
  0x2a   : > { %p835_p8 = pnand %p834_p4, %p828_p1 }
  0x2c   : > { %838 = shalt.err (!%p835_p8)
}
  0x2d   : > { %s1024_s12 = smov 64   ;;  %s1025_s13 = smov 4  }
  0x2e   : > { %720 = dma.hbm_to_vmem [thread:$0]  (!%p1115_p11), %s1364_s1, 2048, %s182_s27, [#allocation6], %s1024_s12, %s1024_s12, %s1025_s13  }
  0x2f   : > { %p35_p1 = scmp.ge.s32.totalorder %s33_s29, 2  ;;  %s42_s26 = sadd.s32 1, %s1009_s17 }
  0x30   : > { %p49_p2 = scmp.ne.s32.totalorder %s1009_s17, %s1005_s16  ;;  %p50_p4 = scmp.eq.s32.totalorder %s1021_s20, 0 }
  0x31   : > { %s1392_s29 = smov (%p35_p1, %s33_s29), 0  ;;  %p1367_p8 = scmp.eq.s32.totalorder %s1087_s21, 1 }
  0x32   : > { %1365 = sst [smem:[#allocation16_spill]] %s1392_s29  ;;  %p1148_p6 = por %p50_p4, %p49_p2 }
  0x33   : > { %p1154_p10 = por %p1367_p8, %p49_p2  ;;  %s37_s6 = ssub.s32 %s1017_s19, %s1392_s29 }
  0x34   : > { %p737_p12 = scmp.lt.s32.totalorder %s1021_s20, 2  ;;  %p40_p0 = scmp.eq.s32.totalorder %s37_s6, 0 }
  0x35   : > { %s1368_s5 = scalar_select %p1154_p10, 1, 0 }
  0x36   : > { %s208_s27 = sand.u32 1, %s1021_s20   ;;  %s210_s7 = sand.u32 1, %s1009_s17  }
  0x37   : > { %s1164_s8 = scalar_select %p40_p0, %s1009_s17, %s42_s26  }
  0x38   : > { %s1166_s9 = sshll.u32 %s210_s7, 2  ;;  %s680_s10 = sshll.u32 %s1017_s19, 6 }
  0x39   : > { %1369 = sst [smem:[#allocation17_spill]] %s1164_s8  ;;  %s1172_s13 = scalar_lea.hbm %s1343_s0, %s680_s10 }
  0x3a   : > { %s212_s14 = scalar_lea.vmem [#allocation2], %s1166_s9  ;;  %p1177_p3 = pnand %p737_p12, %p1148_p6 }
  0x3b   : > { %s222_s22 = sshll.u32 %s212_s14, 4  ;;  %s1186_s11 = scalar_lea.hbm %s1345_s2, %s680_s10  ;;  %s1181_s22 = int_to_ptr.vmem [resolvable:$true] %s222_s22 }
  0x3c   : > { %s1370_s6 = scalar_select %p1177_p3, 1, 0 }
  0x3d   : > { %s1188_s12 = scalar_lea.sflag [#allocation3], %s208_s27  ;;  %s839_s1 = scalar_lea.hbm %s1172_s13, 64 }
  0x3e   : > { %p840_p5 = scmp.ne.s32.totalorder %s1172_s13, %s839_s1  ;;  %p1355_p7 = pneg %p1177_p3 }
  0x3f   : > { %s844_s29 = scalar_lea.hbm %s1343_s0, 128  ;;  %p845_p2 = scmp.lt.u32.totalorder %s1172_s13, %s1343_s0 }
  0x40   : > { %p842_p9 = pnand %p1355_p7, %p840_p5  ;;  %p846_p4 = scmp.lt.u32.totalorder %s844_s29, %s839_s1 }
  0x41   : > { %p848_p8 = scmp.lt.u32.totalorder %s839_s1, %s1172_s13 }
  0x42   : > { %p843_p1 = pneg %p842_p9  ;;  %p847_p6 = por %p846_p4, %p845_p2 }
  0x44   : > { %p849_p12 = por %p848_p8, %p847_p6 }
  0x46   : > { %p850_p0 = pnand %p849_p12, %p843_p1 }
  0x48   : > { %853 = shalt.err (!%p850_p0)
}
  0x49   : > { %s854_s27 = scalar_lea.vmem %s1181_s22, 64  ;;  %s1026_s10 = smov [#allocation2]  }
  0x4a   : > { %p855_p5 = scmp.ne.s32.totalorder %s1181_s22, %s854_s27  ;;  %s859_s26 = sshll.u32 %s1026_s10, 4  ;;  %s860_s26 = int_to_ptr.vmem [resolvable:$false] %s859_s26 }
  0x4b   : > { %s861_s19 = scalar_lea.vmem %s860_s26, 128  ;;  %p862_p10 = scmp.lt.s32.totalorder %s1181_s22, %s860_s26 }
  0x4c   : > { %p857_p9 = pnand %p855_p5, %p1355_p7  ;;  %p863_p2 = scmp.lt.s32.totalorder %s861_s19, %s854_s27 }
  0x4e   : > { %p858_p13 = pneg %p857_p9  ;;  %p864_p4 = por %p863_p2, %p862_p10 }
  0x50   : > { %p865_p6 = pnand %p864_p4, %p858_p13 }
  0x52   : > { %868 = shalt.err (!%p865_p6)
}
  0x53   : > { %727 = dma.hbm_to_vmem [thread:$0]  (!%p1177_p3), %s1172_s13, 64, %s1181_s22, %s1188_s12  }
  0x54   : > { %s233_s1 = scalar_lea.vmem [#allocation7], %s1166_s9  ;;  %s1027_s8 = smov [#allocation8]  }
  0x55   : > { %s241_s29 = sshll.u32 %s233_s1, 4  ;;  %s197_s7 = sshll.u32 %s1027_s8, 4  ;;  %s1217_s29 = int_to_ptr.vmem [resolvable:$true] %s241_s29  ;;  %s198_s7 = int_to_ptr.vmem [resolvable:$true] %s197_s7 }
  0x56   : > { %s869_s27 = scalar_lea.hbm %s1346_s3, 64  ;;  %p1371_p10 = pneg %p1115_p11 }
  0x57   : > { %p870_p13 = scmp.ne.s32.totalorder %s1346_s3, %s869_s27  ;;  %p876_p12 = scmp.lt.u32.totalorder %s869_s27, %s1346_s3 }
  0x59   : > { %p872_p1 = pnand %p870_p13, %p1371_p10 }
  0x5b   : > { %p873_p8 = pneg %p872_p1 }
  0x5d   : > { %p878_p0 = pnand %p876_p12, %p873_p8 }
  0x5f   : > { %881 = shalt.err (!%p878_p0)
}
  0x60   : > { %s882_s22 = scalar_lea.vmem %s198_s7, 64  ;;  %p1372_p9 = pmov %p1371_p10 }
  0x61   : > { %p883_p5 = scmp.ne.s32.totalorder %s198_s7, %s882_s22  ;;  %p890_p6 = scmp.lt.s32.totalorder %s198_s7, %s198_s7 }
  0x62   : > { %p891_p7 = scmp.lt.s32.totalorder %s882_s22, %s882_s22 }
  0x63   : > { %p885_p2 = pnand %p883_p5, %p1372_p9 }
  0x64   : > { %p892_p3 = por %p891_p7, %p890_p6 }
  0x65   : > { %p886_p4 = pneg %p885_p2 }
  0x67   : > { %p893_p10 = pnand %p892_p3, %p886_p4 }
  0x69   : > { %896 = shalt.err (!%p893_p10)
}
  0x6a   : > { %723 = dma.hbm_to_vmem [thread:$0]  (!%p1115_p11), %s1346_s3, 64, %s198_s7, [#allocation6]  }
  0x6b   : > { %s897_s8 = scalar_lea.hbm %s1186_s11, 64  ;;  %p1373_p1 = scmp.ne.s32.totalorder %s1370_s6, 0 }
  0x6c   : > { %p898_p13 = scmp.ne.s32.totalorder %s1186_s11, %s897_s8  ;;  %s902_s27 = scalar_lea.hbm %s1345_s2, 128 }
  0x6d   : > { %p1374_p8 = pneg %p1373_p1  ;;  %p903_p3 = scmp.lt.u32.totalorder %s1186_s11, %s1345_s2 }
  0x6e   : > { %p904_p7 = scmp.lt.u32.totalorder %s902_s27, %s897_s8  ;;  %p906_p9 = scmp.lt.u32.totalorder %s897_s8, %s1186_s11 }
  0x6f   : > { %p900_p12 = pnand %p898_p13, %p1374_p8 }
  0x70   : > { %p905_p5 = por %p904_p7, %p903_p3 }
  0x71   : > { %p901_p0 = pneg %p900_p12 }
  0x72   : > { %p907_p2 = por %p906_p9, %p905_p5 }
  0x74   : > { %p908_p4 = pnand %p907_p2, %p901_p0 }
  0x76   : > { %911 = shalt.err (!%p908_p4)
}
  0x77   : > { %s912_s7 = scalar_lea.vmem %s1217_s29, 64  ;;  %p1375_p6 = pmov %p1374_p8 }
  0x78   : > { %p913_p11 = scmp.ne.s32.totalorder %s1217_s29, %s912_s7  ;;  %s1028_s26 = smov [#allocation7]  }
  0x79   : > { %s917_s13 = sshll.u32 %s1028_s26, 4  ;;  %s918_s13 = int_to_ptr.vmem [resolvable:$false] %s917_s13 }
  0x7a   : > { %p915_p10 = pnand %p913_p11, %p1375_p6  ;;  %s919_s9 = scalar_lea.vmem %s918_s13, 128 }
  0x7b   : > { %p920_p8 = scmp.lt.s32.totalorder %s1217_s29, %s918_s13  ;;  %p921_p12 = scmp.lt.s32.totalorder %s919_s9, %s912_s7 }
  0x7c   : > { %p916_p13 = pneg %p915_p10 }
  0x7d   : > { %p922_p3 = por %p921_p12, %p920_p8 }
  0x7f   : > { %p923_p7 = pnand %p922_p3, %p916_p13 }
  0x81   : > { %926 = shalt.err (!%p923_p7)
}
  0x82   : > { %730 = dma.hbm_to_vmem [thread:$0]  (!%p1373_p1), %s1186_s11, 64, %s1217_s29, %s1188_s12  }
  0x83   : > { %p1376_p0 = scmp.ne.s32.totalorder %s1362_s25, 0 }
  0x84   : > { %s252_s22 = sand.u32 (!%p1376_p0), 1, %s1087_s21   ;;  %s1267_s19 = sand.u32 (!%p1376_p0), 1, %s1005_s16  }
  0x85   : > { %250 = sbr.rel (%p1376_p0) target bundleno = 418 (0x1a2), region = 36  ;;  %s654_s1 = sshll.u32 (!%p1376_p0), %s1267_s19, 2 }
  0x86   : > { %s253_s8 = scalar_lea.sflag (!%p1376_p0), [#allocation3], %s252_s22  ;;  %s1270_s30 = scalar_lea.vmem (!%p1376_p0), [#allocation2], %s654_s1 }
  0x87   : > { %p1377_p5 = scmp.ne.s32.totalorder (!%p1376_p0), %s1360_s23, 0 }
  0x8c   : > { %980 = dma.done.wait (%p1377_p5), %s253_s8, 64  }
  0x8d   : > { %982 = vsyncadd (%p1377_p5), %s253_s8, 4294967232  ;;  %p1378_p1 = scmp.eq.s32.totalorder %s1087_s21, 0 }
  0x8f   : > { %984 = dma.done.wait (%p1378_p1), [#allocation6], 2048   ;;  %p1379_p9 = pmov %p1378_p1 }
  0x90   : > { %s269_s25 = scalar_lea.vmem [#allocation7], %s654_s1 }
  0x91   : > { %986 = vsyncadd (%p1379_p9), [#allocation6], 4294965248 }
  0x92   : > { %988 = dma.done.wait (%p1377_p5), %s253_s8, 64  }
  0x93   : > { %990 = vsyncadd (%p1377_p5), %s253_s8, 4294967232  ;;  %p1380_p2 = pmov %p1378_p1 }
  0x94   : > { %p1381_p4 = pmov %p1378_p1 }
  0x95   : > { %992 = dma.done.wait (%p1380_p2), [#allocation6], 64  }
  0x96   : > { %994 = vsyncadd (%p1381_p4), [#allocation6], 4294967232  ;;  %v1029_v0 = vmov 0   ;;  %v795_v1 = vld [vmem:[#allocation5 + $0x40] sm:$0xff]   ;;  %v797_v3 = vld [vmem:[#allocation5 + $0x48] sm:$0xff]   ;;  %s658_s21 = sshll.u32 %s1267_s19, 1 }
  0x97   : > { %794 = vset.pattern.permute.xlu0 %v1029_v0  ;;  %v796_v2 = vld [vmem:[#allocation5] sm:$0xff]   ;;  %681 = vmatprep.subr.bf16.mxu0 %v795_v1  ;;  %v798_v4 = vld [vmem:[#allocation5 + $0x8] sm:$0xff]   ;;  %v799_v5 = vld [vmem:[#allocation5 + $0x50] sm:$0xff]   ;;  %s677_s23 = sshll.u32 %s1013_s18, 5  ;;  %s302_s6 = scalar_lea.vmem [#allocation9], %s658_s21  ;;  %vm501_vm0 = vcmask 254976  }
  0x98   : > { %682 = vmatpush3.bf16.msra.mxu0 %v796_v2  ;;  %v800_v6 = vld [vmem:[#allocation5 + $0x10] sm:$0xff]   ;;  %v801_v7 = vld [vmem:[#allocation5 + $0x58] sm:$0xff]   ;;  %v803_v9 = vld [vmem:[#allocation5 + $0x60] sm:$0xff]   ;;  %s518_s11 = sshll.u32 %s302_s6, 4  ;;  %s1294_s14 = scalar_lea.hbm %s1347_s4, %s677_s23  ;;  %s1296_s11 = int_to_ptr.vmem [resolvable:$true] %s518_s11 }
  0x99   : > { %683 = vmatprep.subr.bf16.mxu0 %v797_v3  ;;  %v802_v8 = vld [vmem:[#allocation5 + $0x18] sm:$0xff]   ;;  %v804_v10 = vld [vmem:[#allocation5 + $0x20] sm:$0xff]   ;;  %v805_v11 = vld [vmem:[#allocation5 + $0x68] sm:$0xff]   ;;  %s504_s27 = scalar_lea.sflag [#allocation4], %s1267_s19  ;;  %s927_s28 = scalar_lea.vmem %s1296_s11, 32 }
  0x9a   : > { %v659_v12 = vld.sshfl [vmem:[%s1270_s30] sm:$0x33 pattern:$0x76325410]  ;;  %v484_v13 = vld [vmem:[%s269_s25] sm:$0xf]  ;;  %p928_p11 = scmp.ne.s32.totalorder %s1296_s11, %s927_s28 }
  0x9b   : > { %v345_v14 = vcombine.high %v659_v12, %v659_v12  ;;  %487 = vperm.xlu0 %794, %v484_v13   ;;  %v492_v15 = vsub.f32 1.0, %v484_v13  ;;  %v806_v16 = vld [vmem:[#allocation5 + $0x28] sm:$0xff]   ;;  %v807_v17 = vld [vmem:[#allocation5 + $0x70] sm:$0xff]   ;;  %v809_v19 = vld [vmem:[#allocation5 + $0x78] sm:$0xff]   ;;  %p1382_p6 = scmp.ne.s32.totalorder %s1368_s5, 0  ;;  %s1030_s18 = smov [#allocation9]  }
  0x9c   : > { %684 = vmatpush3.bf16.msra.mxu0 %v798_v4  ;;  %v808_v18 = vld [vmem:[#allocation5 + $0x30] sm:$0xff]   ;;  %v810_v20 = vld [vmem:[#allocation5 + $0x38] sm:$0xff]   ;;  %v491_v23 = vld [vmem:[#allocation8] sm:$0xf]  ;;  %s931_s10 = sshll.u32 %s1030_s18, 4  ;;  %s932_s10 = int_to_ptr.vmem [resolvable:$false] %s931_s10 }
  0x9d   : > { %685 = vmatprep.subr.bf16.mxu0 %v799_v5  ;;  %476 = vmatprep.mubr.bf16.mxu0 %v345_v14  ;;  %p929_p10 = pnand %p928_p11, %p1382_p6  ;;  %s933_s7 = scalar_lea.vmem %s932_s10, 64 }
  0x9e   : > { %p934_p8 = scmp.lt.s32.totalorder %s1296_s11, %s932_s10  ;;  %p935_p12 = scmp.lt.s32.totalorder %s933_s7, %s927_s28 }
  0x9f   : > { %495 = vperm.xlu0 %794, %v492_v15   ;;  %p930_p13 = pneg %p929_p10 }
  0xa0   : > { %686 = vmatpush3.bf16.msra.mxu0 %v800_v6  ;;  %p936_p3 = por %p935_p12, %p934_p8 }
  0xa1   : > { %687 = vmatprep.subr.bf16.mxu0 %v801_v7 }
  0xa2   : > { %p937_p7 = pnand %p936_p3, %p930_p13 }
  0xa4   : > { %688 = vmatpush3.bf16.msra.mxu0 %v802_v8 }
  0xa5   : > { %689 = vmatprep.subr.bf16.mxu0 %v803_v9 }
  0xa8   : > { %690 = vmatpush3.bf16.msra.mxu0 %v804_v10 }
  0xa9   : > { %691 = vmatprep.subr.bf16.mxu0 %v805_v11 }
  0xac   : > { %692 = vmatpush3.bf16.msra.mxu0 %v806_v16 }
  0xad   : > { %693 = vmatprep.subr.bf16.mxu0 %v807_v17 }
  0xb0   : > { %694 = vmatpush3.bf16.msra.mxu0 %v808_v18 }
  0xb1   : > { %695 = vmatprep.subr.bf16.mxu0 %v809_v19 }
  0xb4   : > { %696 = vmatpush3.bf16.msra.mxu0 %v810_v20 }
  0xb7   : > { %477 = vmatmul.mubr.bf16.vlgmr.msra.gmra.mrb[0].mxu0 %v659_v12 }
 0x11a   : > { %v488_v21 = vpop.permute.xlu0 %487 }
 0x11e   : > { %v496_v24 = vpop.permute.xlu0 %495 }
 0x11f   : > { %v498_v29 = vmul.f32 %v496_v24, %v491_v23 }
 0x18a   : > { %v697_v22 = vpop.f32.mrb[0].mxu0 }
 0x18b   : > { %v698_v25 = vpop.f32.mrb[1].mxu0 }
 0x18c   : > { %v699_v26 = vadd.f32 %v698_v25, %v697_v22  ;;  %v700_v27 = vpop.f32.mrb[2].mxu0 }
 0x18d   : > { %v701_v28 = vpop.f32.mrb[3].mxu0 }
 0x18e   : > { %v490_v30 = vmul.f32 %v699_v26, %v488_v21 }
 0x190   : > { %v499_v31 = vadd.f32 %v498_v29, %v490_v30 }
 0x192   : > { %v500_v32 = vpack.c.bf16 %v499_v31, %v499_v31 }
 0x194   : > { %502 = vst.msk [vmem:[%s302_s6] sm:$0x3] %vm501_vm0, %v500_v32 }
 0x195   : > { %940 = shalt.err (!%p937_p7)
}
 0x196   : > { %s941_s26 = scalar_lea.hbm %s1294_s14, 32  ;;  %s945_s22 = scalar_lea.hbm %s1347_s4, 64 }
 0x197   : > { %p942_p0 = scmp.ne.s32.totalorder %s1294_s14, %s941_s26  ;;  %p946_p9 = scmp.lt.u32.totalorder %s1294_s14, %s1347_s4 }
 0x198   : > { %p947_p2 = scmp.lt.u32.totalorder %s945_s22, %s941_s26  ;;  %p949_p11 = scmp.lt.u32.totalorder %s941_s26, %s1294_s14 }
 0x199   : > { %p943_p5 = pnand %p942_p0, %p1382_p6 }
 0x19a   : > { %p948_p4 = por %p947_p2, %p946_p9 }
 0x19b   : > { %p944_p1 = pneg %p943_p5 }
 0x19c   : > { %p950_p10 = por %p949_p11, %p948_p4 }
 0x19e   : > { %p951_p13 = pnand %p950_p10, %p944_p1 }
 0x1a0   : > { %954 = shalt.err (!%p951_p13)
}
 0x1a1   : > { %715 = dma.vmem_to_hbm [thread:$0]  (%p1382_p6), %s1296_s11, 32, %s1294_s14, %s504_s27  }
 0x1a2 PF: > { %s530_s8 = sand.u32 1, %s1001_s15   ;;  %p1383_p8 = scmp.ne.s32.totalorder %s1361_s24, 0 }
 0x1a3   : > { %p1384_p12 = scmp.ge.s32.totalorder %s1021_s20, 2  ;;  %s531_s30 = scalar_lea.sflag [#allocation4], %s530_s8 }
 0x1a5   : > { %p732_p3 = pnand %p1384_p12, %p1383_p8 }
 0x1a7   : > { %996 = dma.done.wait (!%p732_p3), %s531_s30, 32  }
 0x1a8   : > { %998 = vsyncadd (!%p732_p3), %s531_s30, 4294967264  ;;  %s21_s20 = sadd.s32 1, %s1021_s20   ;;  %s1385_s5 = sld [smem:[#allocation17_spill]] }
 0x1a9   : > { %p18_p7 = scmp.ge.s32.totalorder %s21_s20, 4   ;;  %s1386_s18 = sld [smem:[#allocation15_spill]] }
 0x1aa   : > { %s1387_s19 = sld [smem:[#allocation16_spill]]  ;;  %s1388_s15 = smov %s1005_s16 }
 0x1ab   : > { %s1389_s16 = smov %s1009_s17  ;;  %20 = sbr.rel (!%p18_p7) target bundleno = 9 (0x9), region = 101 }
 0x1ae   : > { %s1390_s17 = smov %s1385_s5 }
 0x1b2   :  { %536 = vsyncpa [#allocation3], 1 }
 0x1b3   :  { %538 = vsyncpa [#allocation3 + $0x1], 1 }
 0x1b4   :  { %539 = vsyncpa [#allocation6], 1 }
 0x1b5   :  { %540 = vsyncpa [#allocation4], 1 }
 0x1b6   :  { %542 = vsyncpa [#allocation4 + $0x1], 1 }

// kernel: image_encoder_forward.11
= control target key start
LH: loop header
LB: loop body
LE: loop exit
PB: predicated region body
PF: predicated region fallthrough
CT: control target
= control target key end

     0   :  { %s1624_s0 = inlined_call_operand.hbm [shape: bf16[2,8,32], index: 0, kind: input, shape index: {}]   ;;  %s1625_s1 = inlined_call_operand.hbm [shape: f32[1,32], index: 1, kind: input, shape index: {}]   ;;  %s1626_s2 = inlined_call_operand.hbm [shape: f32[1,32], index: 2, kind: input, shape index: {}]   ;;  %s1627_s3 = inlined_call_operand.hbm [shape: bf16[32,96], index: 3, kind: input, shape index: {}]   ;;  %s1628_s4 = inlined_call_operand.hbm [shape: f32[1,96], index: 4, kind: input, shape index: {}]   ;;  %s1629_s5 = inlined_call_operand.hbm [shape: bf16[2,8,32], index: 5, kind: output, shape index: {0}]   ;;  %s1630_s6 = inlined_call_operand.hbm [shape: bf16[2,8,32], index: 6, kind: output, shape index: {1}]   ;;  %s1631_s7 = inlined_call_operand.hbm [shape: bf16[2,8,32], index: 7, kind: output, shape index: {2}]  }
   0x1   :  { %1636 = sst [smem:[#allocation20_spill]] %s1625_s1 }
   0x2   :  { %1637 = sst [smem:[#allocation21_spill]] %s1626_s2 }
   0x3   :  { %13 = vsyncpa [#allocation3], 0 }
   0x4   :  { %15 = vsyncpa [#allocation3 + $0x1], 0 }
   0x5   :  { %16 = vsyncpa [#allocation6], 0 }
   0x6   :  { %17 = vsyncpa [#allocation9], 0 }
   0x7   :  { %18 = vsyncpa [#allocation4], 0 }
   0x8   :  { %20 = vsyncpa [#allocation4 + $0x1], 0 }
   0x9   :  { %21 = vsyncpa [#allocation13], 0 }
   0xa   :  { %23 = vsyncpa [#allocation13 + $0x1], 0  ;;  %s1251_s24 = smov 0   ;;  %s1253_s25 = smov 0  }
   0xb   :  { %s1255_s26 = smov 0   ;;  %s1257_s27 = smov 0  }
   0xc   :  { %s1259_s28 = smov 0   ;;  %s1261_s29 = smov 0  }
   0xd LB: > { %s1282_s30 = sadd.s32 4294967295, %s1195_s29   ;;  %p736_p0 = scmp.ge.s32.totalorder %s1195_s29, 1  ;;  %s1195_s29 = sphi %s1261_s29, %s29_s29   ;;  %s1191_s28 = sphi %s1259_s28, %s1662_s28   ;;  %s1187_s27 = sphi %s1257_s27, %s1661_s27   ;;  %s1183_s26 = sphi %s1255_s26, %s1660_s26   ;;  %s1179_s25 = sphi %s1253_s25, %s1659_s25   ;;  %s1175_s24 = sphi %s1251_s24, %s1658_s24  }
   0xe   : > { %p1632_p1 = scmp.eq.s32.totalorder %s1282_s30, 0  ;;  %p242_p2 = scmp.lt.s32.totalorder %s1195_s29, 3 }
   0xf   : > { %s1197_s9 = smov [#allocation5]   ;;  %s1198_s11 = smov [#allocation8]  }
  0x10   : > { %p1287_p3 = pnand %p736_p0, %p242_p2  ;;  %s255_s10 = sshll.u32 %s1197_s9, 4  ;;  %s256_s10 = int_to_ptr.vmem [resolvable:$true] %s255_s10 }
  0x11   : > { %s276_s12 = sshll.u32 %s1198_s11, 4  ;;  %s1199_s14 = smov [#allocation7]   ;;  %s1300_s12 = int_to_ptr.vmem [resolvable:$true] %s276_s12 }
  0x12   : > { %s1638_s8 = scalar_select %p1287_p3, 1, 0 }
  0x13   : > { %p804_p5 = pneg %p1287_p3  ;;  %s1302_s15 = sshll.u32 %s1199_s14, 4  ;;  %s267_s15 = int_to_ptr.vmem [resolvable:$true] %s1302_s15 }
  0x14   : > { %s1640_s1 = sld [smem:[#allocation20_spill]] }
  0x15   : > { %p1296_p6 = pnand %p804_p5, %p1632_p1 }
  0x17   : > { %p1312_p8 = pneg %p1296_p6 }
  0x1a   : > { %s903_s18 = scalar_lea.hbm %s1640_s1, 16 }
  0x1b   : > { %p904_p7 = scmp.ne.s32.totalorder %s1640_s1, %s903_s18  ;;  %p910_p11 = scmp.lt.u32.totalorder %s903_s18, %s1640_s1 }
  0x1d   : > { %p906_p9 = pnand %p1312_p8, %p904_p7 }
  0x1f   : > { %p907_p10 = pneg %p906_p9 }
  0x21   : > { %p912_p12 = pnand %p910_p11, %p907_p10 }
  0x23   : > { %915 = shalt.err (!%p912_p12)
}
  0x24   : > { %s916_s9 = scalar_lea.vmem %s256_s10, 16  ;;  %s923_s11 = scalar_lea.vmem %s256_s10, 32 }
  0x25   : > { %p917_p13 = scmp.ne.s32.totalorder %s256_s10, %s916_s9  ;;  %p924_p5 = scmp.lt.s32.totalorder %s256_s10, %s256_s10 }
  0x26   : > { %p925_p4 = scmp.lt.s32.totalorder %s923_s11, %s916_s9 }
  0x27   : > { %p919_p0 = pnand %p917_p13, %p1312_p8 }
  0x28   : > { %p926_p1 = por %p925_p4, %p924_p5 }
  0x29   : > { %p920_p2 = pneg %p919_p0 }
  0x2b   : > { %p927_p3 = pnand %p926_p1, %p920_p2 }
  0x2d   : > { %930 = shalt.err (!%p927_p3)
}
  0x2e   : > { %807 = dma.hbm_to_vmem [thread:$0]  (!%p1296_p6), %s1640_s1, 16, %s256_s10, [#allocation6]  }
  0x2f   : > { %s931_s19 = scalar_lea.hbm %s1627_s3, 256 }
  0x30   : > { %p932_p7 = scmp.ne.s32.totalorder %s1627_s3, %s931_s19  ;;  %p938_p1 = scmp.lt.u32.totalorder %s931_s19, %s1627_s3 }
  0x32   : > { %p934_p9 = pnand %p932_p7, %p1312_p8 }
  0x34   : > { %p935_p4 = pneg %p934_p9 }
  0x36   : > { %p940_p3 = pnand %p938_p1, %p935_p4 }
  0x38   : > { %943 = shalt.err (!%p940_p3)
}
  0x39   : > { %s944_s10 = scalar_lea.vmem %s1300_s12, 256  ;;  %p952_p13 = scmp.lt.s32.totalorder %s1300_s12, %s1300_s12 }
  0x3a   : > { %p945_p10 = scmp.ne.s32.totalorder %s1300_s12, %s944_s10  ;;  %p953_p0 = scmp.lt.s32.totalorder %s944_s10, %s944_s10 }
  0x3c   : > { %p947_p11 = pnand %p945_p10, %p1312_p8  ;;  %p954_p2 = por %p953_p0, %p952_p13 }
  0x3e   : > { %p948_p12 = pneg %p947_p11 }
  0x40   : > { %p955_p5 = pnand %p954_p2, %p948_p12 }
  0x42   : > { %958 = shalt.err (!%p955_p5)
}
  0x43   : > { %s1200_s11 = smov 64   ;;  %s1201_s14 = smov 4  }
  0x44   : > { %813 = dma.hbm_to_vmem [thread:$0]  (!%p1296_p6), %s1627_s3, 256, %s1300_s12, [#allocation9], %s1200_s11, %s1200_s11, %s1201_s14  }
  0x45   : > { %s1642_s2 = sld [smem:[#allocation21_spill]] }
  0x4b   : > { %s959_s20 = scalar_lea.hbm %s1642_s2, 16 }
  0x4c   : > { %p960_p7 = scmp.ne.s32.totalorder %s1642_s2, %s959_s20  ;;  %p966_p1 = scmp.lt.u32.totalorder %s959_s20, %s1642_s2 }
  0x4e   : > { %p962_p9 = pnand %p960_p7, %p1312_p8 }
  0x50   : > { %p963_p4 = pneg %p962_p9 }
  0x52   : > { %p968_p3 = pnand %p966_p1, %p963_p4 }
  0x54   : > { %971 = shalt.err (!%p968_p3)
}
  0x55   : > { %s972_s16 = scalar_lea.vmem %s267_s15, 16  ;;  %s979_s12 = scalar_lea.vmem %s267_s15, 32 }
  0x56   : > { %p973_p10 = scmp.ne.s32.totalorder %s267_s15, %s972_s16  ;;  %p980_p13 = scmp.lt.s32.totalorder %s267_s15, %s267_s15 }
  0x57   : > { %p981_p0 = scmp.lt.s32.totalorder %s979_s12, %s972_s16 }
  0x58   : > { %p975_p11 = pnand %p973_p10, %p1312_p8 }
  0x59   : > { %p982_p2 = por %p981_p0, %p980_p13 }
  0x5a   : > { %p976_p12 = pneg %p975_p11 }
  0x5c   : > { %p983_p5 = pnand %p982_p2, %p976_p12 }
  0x5e   : > { %986 = shalt.err (!%p983_p5)
}
  0x5f   : > { %810 = dma.hbm_to_vmem [thread:$0]  (!%p1296_p6), %s1642_s2, 16, %s267_s15, [#allocation6]  }
  0x60   : > { %s1202_s17 = smov [#allocation10]   ;;  %s987_s22 = scalar_lea.hbm %s1628_s4, 16 }
  0x61   : > { %s290_s18 = sshll.u32 %s1202_s17, 4  ;;  %p988_p7 = scmp.ne.s32.totalorder %s1628_s4, %s987_s22  ;;  %s291_s18 = int_to_ptr.vmem [resolvable:$true] %s290_s18 }
  0x62   : > { %p994_p1 = scmp.lt.u32.totalorder %s987_s22, %s1628_s4 }
  0x63   : > { %p990_p9 = pnand %p988_p7, %p1312_p8 }
  0x65   : > { %p991_p4 = pneg %p990_p9 }
  0x67   : > { %p996_p3 = pnand %p994_p1, %p991_p4 }
  0x69   : > { %999 = shalt.err (!%p996_p3)
}
  0x6a   : > { %s1000_s15 = scalar_lea.vmem %s291_s18, 16  ;;  %s1007_s12 = scalar_lea.vmem %s291_s18, 32 }
  0x6b   : > { %p1001_p10 = scmp.ne.s32.totalorder %s291_s18, %s1000_s15  ;;  %p1008_p13 = scmp.lt.s32.totalorder %s291_s18, %s291_s18 }
  0x6c   : > { %p1009_p0 = scmp.lt.s32.totalorder %s1007_s12, %s1000_s15 }
  0x6d   : > { %p1003_p11 = pnand %p1001_p10, %p1312_p8 }
  0x6e   : > { %p1010_p2 = por %p1009_p0, %p1008_p13 }
  0x6f   : > { %p1004_p12 = pneg %p1003_p11 }
  0x71   : > { %p1011_p5 = pnand %p1010_p2, %p1004_p12 }
  0x73   : > { %1014 = shalt.err (!%p1011_p5)
}
  0x74   : > { %816 = dma.hbm_to_vmem [thread:$0]  (!%p1296_p6), %s1628_s4, 16, %s291_s18, [#allocation9]  }
  0x75   : > { %s1634_s21 = sadd.s32 4294967294, %s1195_s29   ;;  %s41_s17 = sadd.s32 1, %s1191_s28 }
  0x76   : > { %p43_p8 = scmp.ge.s32.totalorder %s41_s17, 2  ;;  %s50_s13 = sadd.s32 1, %s1183_s26 }
  0x77   : > { %p57_p7 = scmp.ne.s32.totalorder %s1183_s26, %s1179_s25  ;;  %p58_p9 = scmp.eq.s32.totalorder %s1195_s29, 0 }
  0x78   : > { %s1664_s17 = smov (%p43_p8, %s41_s17), 0  ;;  %p63_p1 = scmp.ne.s32.totalorder %s1179_s25, %s1175_s24 }
  0x79   : > { %p1396_p4 = por %p58_p9, %p57_p7  ;;  %s45_s18 = ssub.s32 %s1191_s28, %s1664_s17 }
  0x7a   : > { %p173_p6 = scmp.eq.s32.totalorder %s1282_s30, 1  ;;  %p48_p3 = scmp.eq.s32.totalorder %s45_s18, 0 }
  0x7b   : > { %p1644_p10 = scmp.eq.s32.totalorder %s1282_s30, 0  ;;  %p179_p13 = scmp.eq.s32.totalorder %s1634_s21, 1 }
  0x7c   : > { %p1411_p12 = por %p173_p6, %p57_p7  ;;  %p835_p2 = scmp.lt.s32.totalorder %s1195_s29, 2 }
  0x7d   : > { %p1407_p11 = por %p1644_p10, %p63_p1  ;;  %p1420_p0 = por %p179_p13, %p63_p1 }
  0x7e   : > { %s1646_s22 = scalar_select %p1411_p12, 1, 0 }
  0x7f   : > { %s1418_s23 = scalar_select %p48_p3, %s1183_s26, %s50_s13  }
  0x80   : > { %s1647_s9 = scalar_select %p1420_p0, 1, 0 }
  0x81   : > { %s301_s10 = sand.u32 1, %s1183_s26   ;;  %s743_s16 = sshll.u32 %s1191_s28, 6 }
  0x82   : > { %s742_s15 = sshll.u32 %s301_s10, 2  ;;  %s1430_s14 = scalar_lea.hbm %s1624_s0, %s743_s16 }
  0x83   : > { %s305_s18 = scalar_lea.vmem [#allocation2], %s742_s15  ;;  %p1434_p5 = pnand %p835_p2, %p1396_p4 }
  0x84   : > { %s313_s13 = sshll.u32 %s305_s18, 4  ;;  %s302_s1 = scalar_lea.sflag [#allocation3], %s301_s10  ;;  %s1438_s13 = int_to_ptr.vmem [resolvable:$true] %s313_s13 }
  0x85   : > { %s1015_s2 = scalar_lea.hbm %s1430_s14, 64  ;;  %p1017_p7 = pneg %p1434_p5 }
  0x86   : > { %p1016_p8 = scmp.ne.s32.totalorder %s1430_s14, %s1015_s2  ;;  %s1020_s19 = scalar_lea.hbm %s1624_s0, 128 }
  0x87   : > { %p1021_p4 = scmp.lt.u32.totalorder %s1430_s14, %s1624_s0  ;;  %p1022_p6 = scmp.lt.u32.totalorder %s1020_s19, %s1015_s2 }
  0x88   : > { %p1018_p9 = pnand %p1017_p7, %p1016_p8  ;;  %p1024_p10 = scmp.lt.u32.totalorder %s1015_s2, %s1430_s14 }
  0x89   : > { %p1023_p3 = por %p1022_p6, %p1021_p4 }
  0x8a   : > { %p1019_p1 = pneg %p1018_p9 }
  0x8b   : > { %p1025_p13 = por %p1024_p10, %p1023_p3 }
  0x8d   : > { %p1026_p2 = pnand %p1025_p13, %p1019_p1 }
  0x8f   : > { %1029 = shalt.err (!%p1026_p2)
}
  0x90   : > { %s1030_s10 = scalar_lea.vmem %s1438_s13, 64  ;;  %s1203_s18 = smov [#allocation2]  }
  0x91   : > { %p1031_p8 = scmp.ne.s32.totalorder %s1438_s13, %s1030_s10  ;;  %s1035_s16 = sshll.u32 %s1203_s18, 4  ;;  %s1036_s16 = int_to_ptr.vmem [resolvable:$false] %s1035_s16 }
  0x92   : > { %s1037_s15 = scalar_lea.vmem %s1036_s16, 128  ;;  %p1038_p12 = scmp.lt.s32.totalorder %s1438_s13, %s1036_s16 }
  0x93   : > { %p1033_p9 = pnand %p1031_p8, %p1017_p7  ;;  %p1039_p4 = scmp.lt.s32.totalorder %s1037_s15, %s1030_s10 }
  0x95   : > { %p1034_p0 = pneg %p1033_p9  ;;  %p1040_p6 = por %p1039_p4, %p1038_p12 }
  0x97   : > { %p1041_p3 = pnand %p1040_p6, %p1034_p0 }
  0x99   : > { %1044 = shalt.err (!%p1041_p3)
}
  0x9a   : > { %820 = dma.hbm_to_vmem [thread:$0]  (!%p1434_p5), %s1430_s14, 64, %s1438_s13, %s302_s1  }
  0x9b   : > { %p1649_p1 = scmp.ne.s32.totalorder %s1638_s8, 0 }
  0x9c   : > { %s1468_s2 = sand.u32 (!%p1649_p1), 1, %s1179_s25  }
  0x9d   : > { %322 = sbr.rel (%p1649_p1) target bundleno = 858 (0x35a), region = 40  ;;  %s1471_s19 = sshll.u32 (!%p1649_p1), %s1468_s2, 2 }
  0x9e   : > { %s325_s12 = scalar_lea.sflag (!%p1649_p1), [#allocation3], %s1468_s2  ;;  %s328_s11 = scalar_lea.vmem (!%p1649_p1), [#allocation2], %s1471_s19 }
  0xa4   : > { %1154 = dma.done.wait (%p1407_p11), %s325_s12, 64  }
  0xa5   : > { %1156 = vsyncadd (%p1407_p11), %s325_s12, 4294967232  ;;  %p1650_p12 = scmp.eq.s32.totalorder %s1282_s30, 0 }
  0xa7   : > { %1158 = dma.done.wait (%p1650_p12), [#allocation6], 32   ;;  %p1651_p0 = pmov %p1650_p12 }
  0xa9   : > { %1160 = vsyncadd (%p1651_p0), [#allocation6], 4294967264  ;;  %p1652_p5 = pmov %p1651_p0 }
  0xaa   : > { %p1653_p7 = pmov %p1651_p0 }
  0xab   : > { %1162 = dma.done.wait (%p1652_p5), [#allocation9], 272  }
  0xac   : > { %1164 = vsyncadd (%p1653_p7), [#allocation9], 4294967024  ;;  %vm390_vm0 = vcmask 261120   ;;  %v386_v0 = vld [vmem:[%s328_s11] sm:$0xf]  ;;  %v899_v8 = vld [vmem:[#allocation8] sm:$0xff]  }
  0xad   : > { %v387_v1 = vunpack.c.l.bf16 %v386_v0  ;;  %v1204_v9 = vmov 0.0   ;;  %v900_v10 = vld [vmem:[#allocation8 + $0x8] sm:$0xff]   ;;  %vm1205_vm1 = vmmov 0   ;;  %v753_v15 = vld [vmem:[#allocation5] ss:$0 sm:$0xff]  ;;  %s1491_s1 = sshll.u32 %s1187_s27, 6 }
  0xae   : > { %772 = vmatprep.subr.bf16.mxu0 %v1204_v9  ;;  %776 = vmatprep.mubr.msk.bf16.mxu0 %vm1205_vm1, %v1204_v9  ;;  %v754_v17 = vld [vmem:[#allocation7] ss:$0 sm:$0xff]  ;;  %v755_v21 = vld [vmem:[#allocation10] ss:$0 sm:$0xff]  ;;  %s370_s8 = scalar_lea.vmem [#allocation11], %s1471_s19  ;;  %vm487_vm2 = vcmask 257024   ;;  %s1498_s13 = scalar_lea.hbm %s1629_s5, %s1491_s1 }
  0xaf   : > { %v391_v2 = vsel %vm390_vm0, %v387_v1, 0.0  ;;  %773 = vmatpush3.bf16.msra.mxu0 %v899_v8  ;;  %s525_s21 = sshll.u32 %s370_s8, 4  ;;  %s1206_s27 = smov 96   ;;  %s1500_s21 = int_to_ptr.vmem [resolvable:$true] %s525_s21 }
  0xb0   : > { %392 = vadd.xlane.f32.xlu0 %v391_v2  ;;  %774 = vmatprep.subr.bf16.mxu0 %v1204_v9  ;;  %s501_s10 = scalar_lea.sflag [#allocation4], %s1468_s2  ;;  %s1045_s18 = scalar_lea.vmem %s1500_s21, 64 }
  0xb1   : > { %p1046_p11 = scmp.ne.s32.totalorder %s1500_s21, %s1045_s18  ;;  %p1654_p10 = scmp.ne.s32.totalorder %s1646_s22, 0 }
  0xb2   : > { %s1207_s16 = smov [#allocation11]  }
  0xb3   : > { %775 = vmatpush3.bf16.msra.mxu0 %v900_v10  ;;  %p1047_p13 = pnand %p1046_p11, %p1654_p10  ;;  %s1049_s15 = sshll.u32 %s1207_s16, 4  ;;  %s1050_s15 = int_to_ptr.vmem [resolvable:$false] %s1049_s15 }
  0xb4   : > { %s1051_s12 = scalar_lea.vmem %s1050_s15, 128  ;;  %p1052_p8 = scmp.lt.s32.totalorder %s1500_s21, %s1050_s15 }
  0xb5   : > { %p1048_p2 = pneg %p1047_p13  ;;  %p1053_p9 = scmp.lt.s32.totalorder %s1051_s12, %s1045_s18 }
  0xb7   : > { %p1054_p4 = por %p1053_p9, %p1052_p8 }
  0xb9   : > { %p1055_p6 = pnand %p1054_p4, %p1048_p2 }
 0x13d   : > { %v393_v3 = vpop.xlane.xlu0 %392 }
 0x13e   : > { %v395_v4 = vmul.f32 0.03125, %v393_v3 }
 0x140   : > { %v396_v5 = vsub.f32 %v387_v1, %v395_v4 }
 0x142   : > { %v397_v6 = vmul.f32 %v396_v5, %v396_v5 }
 0x144   : > { %v398_v7 = vsel %vm390_vm0, %v397_v6, 0.0 }
 0x145   : > { %399 = vadd.xlane.f32.xlu0 %v398_v7 }
 0x1d2   : > { %v400_v11 = vpop.xlane.xlu0 %399 }
 0x1d3   : > { %v401_v12 = vmul.f32 0.03125, %v400_v11 }
 0x1d5   : > { %v402_v13 = vadd.f32 1e-05, %v401_v12 }
 0x1d7   : > { %901 = vrsqrt.f32 %v402_v13 }
 0x1e1   : > { %v902_v14 = vpop.eup %901 }
 0x1e2   : > { %v404_v16 = vmul.f32 %v902_v14, %v396_v5 }
 0x1e4   : > { %v411_v18 = vmul.f32 %v753_v15, %v404_v16 }
 0x1e6   : > { %v418_v19 = vadd.f32 %v754_v17, %v411_v18 }
 0x1e8   : > { %v419_v20 = vpack.c.bf16 %v418_v19, %v418_v19 }
 0x1ea   : > { %777 = vmatmul.mubr.msk.bf16.vlgmr.msra.gmra.mrb[0].mxu0 %vm390_vm0, %v419_v20 }
 0x2bd   : > { %v480_v22 = vpop.f32.mrb[0].mxu0 }
 0x2be   : > { %v481_v23 = vadd.f32 %v755_v21, %v480_v22  ;;  %v778_v24 = vpop.f32.mrb[1].mxu0 }
 0x2bf   : > { %v483_v25 = vpop.f32.mrb[2].mxu0 }
 0x2c0   : > { %v486_v26 = vpack.c.bf16 %v481_v23, %v481_v23  ;;  %v779_v27 = vpop.f32.mrb[3].mxu0 }
 0x2c2   : > { %492 = vrot.lane.b32.xlu1 %v486_v26, %s1206_s27  ;;  %488 = vst.msk [vmem:[%s370_s8] sm:$0xf] %vm487_vm2, %v486_v26 }
 0x2c3   : > { %1058 = shalt.err (!%p1055_p6)
}
 0x2c4   : > { %s1059_s2 = scalar_lea.hbm %s1498_s13, 64  ;;  %s1063_s20 = scalar_lea.hbm %s1629_s5, 128 }
 0x2c5   : > { %p1060_p3 = scmp.ne.s32.totalorder %s1498_s13, %s1059_s2  ;;  %p1064_p0 = scmp.lt.u32.totalorder %s1498_s13, %s1629_s5 }
 0x2c6   : > { %p1065_p5 = scmp.lt.u32.totalorder %s1063_s20, %s1059_s2  ;;  %p1067_p11 = scmp.lt.u32.totalorder %s1059_s2, %s1498_s13 }
 0x2c7   : > { %p1061_p1 = pnand %p1060_p3, %p1654_p10 }
 0x2c8   : > { %p1066_p7 = por %p1065_p5, %p1064_p0 }
 0x2c9   : > { %p1062_p12 = pneg %p1061_p1 }
 0x2ca   : > { %p1068_p13 = por %p1067_p11, %p1066_p7 }
 0x2cc   : > { %p1069_p2 = pnand %p1068_p13, %p1062_p12 }
 0x2ce   : > { %1072 = shalt.err (!%p1069_p2)
}
 0x2cf   : > { %798 = dma.vmem_to_hbm [thread:$0]  (%p1654_p10), %s1500_s21, 64, %s1498_s13, %s501_s10  }
 0x2d0   : > { %s1208_s18 = smov 64   ;;  %s505_s16 = sand.u32 1, %s1282_s30  }
 0x2d1   : > { %496 = vrot.lane.b32.xlu1 %v486_v26, %s1208_s18  ;;  %s377_s15 = scalar_lea.vmem [#allocation12], %s1471_s19  ;;  %s1531_s8 = scalar_lea.hbm %s1630_s6, %s1491_s1 }
 0x2d2   : > { %s539_s12 = sshll.u32 %s377_s15, 4  ;;  %s384_s20 = scalar_lea.vmem [#allocation14], %s1471_s19  ;;  %s1533_s12 = int_to_ptr.vmem [resolvable:$true] %s539_s12 }
 0x2d3   : > { %s1538_s14 = sshll.u32 %s384_s20, 4  ;;  %s1541_s30 = scalar_lea.sflag [#allocation13], %s505_s16  ;;  %s1572_s14 = int_to_ptr.vmem [resolvable:$true] %s1538_s14 }
 0x2d4   : > { %s1073_s21 = scalar_lea.vmem %s1533_s12, 64  ;;  %s1209_s13 = smov [#allocation12]  }
 0x2d5   : > { %p1074_p8 = scmp.ne.s32.totalorder %s1533_s12, %s1073_s21  ;;  %s1077_s10 = sshll.u32 %s1209_s13, 4  ;;  %s1078_s10 = int_to_ptr.vmem [resolvable:$false] %s1077_s10 }
 0x2d6   : > { %s1079_s27 = scalar_lea.vmem %s1078_s10, 128  ;;  %p1080_p6 = scmp.lt.s32.totalorder %s1533_s12, %s1078_s10 }
 0x2d7   : > { %p1075_p9 = pnand %p1074_p8, %p1654_p10  ;;  %p1081_p3 = scmp.lt.s32.totalorder %s1079_s27, %s1073_s21 }
 0x2d9   : > { %p1076_p4 = pneg %p1075_p9  ;;  %p1082_p1 = por %p1081_p3, %p1080_p6 }
 0x2db   : > { %p1083_p12 = pnand %p1082_p1, %p1076_p4 }
 0x334   : > { %v493_v28 = vpop.permute.xlu1 %492 }
 0x335   : > { %495 = vst.msk [vmem:[%s377_s15] sm:$0xf] %vm487_vm2, %v493_v28 }
 0x336   : > { %1086 = shalt.err (!%p1083_p12)
}
 0x337   : > { %s1087_s18 = scalar_lea.hbm %s1531_s8, 64  ;;  %s1091_s2 = scalar_lea.hbm %s1630_s6, 128 }
 0x338   : > { %p1088_p0 = scmp.ne.s32.totalorder %s1531_s8, %s1087_s18  ;;  %p1092_p11 = scmp.lt.u32.totalorder %s1531_s8, %s1630_s6 }
 0x339   : > { %p1093_p13 = scmp.lt.u32.totalorder %s1091_s2, %s1087_s18  ;;  %p1095_p8 = scmp.lt.u32.totalorder %s1087_s18, %s1531_s8 }
 0x33a   : > { %p1089_p5 = pnand %p1088_p0, %p1654_p10 }
 0x33b   : > { %p1094_p2 = por %p1093_p13, %p1092_p11 }
 0x33c   : > { %p1090_p7 = pneg %p1089_p5 }
 0x33d   : > { %p1096_p9 = por %p1095_p8, %p1094_p2 }
 0x33f   : > { %p1097_p4 = pnand %p1096_p9, %p1090_p7 }
 0x341   : > { %1100 = shalt.err (!%p1097_p4)
}
 0x342   : > { %799 = dma.vmem_to_hbm [thread:$0]  (%p1654_p10), %s1533_s12, 64, %s1531_s8, %s1541_s30  }
 0x343   : > { %s1569_s27 = scalar_lea.hbm %s1631_s7, %s1491_s1  ;;  %v497_v29 = vpop.permute.xlu1 %496  ;;  %s1101_s18 = scalar_lea.vmem %s1572_s14, 64 }
 0x344   : > { %499 = vst.msk [vmem:[%s384_s20] sm:$0xf] %vm487_vm2, %v497_v29  ;;  %p1102_p6 = scmp.ne.s32.totalorder %s1572_s14, %s1101_s18  ;;  %s1210_s12 = smov [#allocation14]  }
 0x345   : > { %s1105_s8 = sshll.u32 %s1210_s12, 4  ;;  %s1106_s8 = int_to_ptr.vmem [resolvable:$false] %s1105_s8 }
 0x346   : > { %p1103_p3 = pnand %p1102_p6, %p1654_p10  ;;  %s1107_s16 = scalar_lea.vmem %s1106_s8, 128 }
 0x347   : > { %p1108_p12 = scmp.lt.s32.totalorder %s1572_s14, %s1106_s8  ;;  %p1109_p0 = scmp.lt.s32.totalorder %s1107_s16, %s1101_s18 }
 0x348   : > { %p1104_p1 = pneg %p1103_p3 }
 0x349   : > { %p1110_p5 = por %p1109_p0, %p1108_p12 }
 0x34b   : > { %p1111_p7 = pnand %p1110_p5, %p1104_p1 }
 0x34d   : > { %1114 = shalt.err (!%p1111_p7)
}
 0x34e   : > { %s1115_s19 = scalar_lea.hbm %s1569_s27, 64  ;;  %s1119_s15 = scalar_lea.hbm %s1631_s7, 128 }
 0x34f   : > { %p1116_p11 = scmp.ne.s32.totalorder %s1569_s27, %s1115_s19  ;;  %p1120_p8 = scmp.lt.u32.totalorder %s1569_s27, %s1631_s7 }
 0x350   : > { %p1121_p9 = scmp.lt.u32.totalorder %s1119_s15, %s1115_s19  ;;  %p1123_p6 = scmp.lt.u32.totalorder %s1115_s19, %s1569_s27 }
 0x351   : > { %p1117_p13 = pnand %p1116_p11, %p1654_p10 }
 0x352   : > { %p1122_p4 = por %p1121_p9, %p1120_p8 }
 0x353   : > { %p1118_p2 = pneg %p1117_p13 }
 0x354   : > { %p1124_p3 = por %p1123_p6, %p1122_p4 }
 0x356   : > { %p1125_p1 = pnand %p1124_p3, %p1118_p2 }
 0x358   : > { %1128 = shalt.err (!%p1125_p1)
}
 0x359   : > { %800 = dma.vmem_to_hbm [thread:$0]  (%p1654_p10), %s1572_s14, 64, %s1569_s27, %s1541_s30  }
 0x35a PF: > { %s565_s13 = sand.u32 1, %s1175_s24   ;;  %p1655_p12 = scmp.ne.s32.totalorder %s1647_s9, 0 }
 0x35b   : > { %p1656_p0 = scmp.ge.s32.totalorder %s1195_s29, 2  ;;  %s566_s21 = scalar_lea.sflag [#allocation4], %s565_s13 }
 0x35d   : > { %p822_p5 = pnand %p1656_p0, %p1655_p12 }
 0x35f   : > { %1166 = dma.done.wait (!%p822_p5), %s566_s21, 64  }
 0x360   : > { %1168 = vsyncadd (!%p822_p5), %s566_s21, 4294967232  ;;  %s1657_s10 = sadd.s32 4294967294, %s1195_s29  }
 0x361   : > { %s574_s18 = sand.u32 1, %s1657_s10  }
 0x362   : > { %s575_s12 = scalar_lea.sflag [#allocation13], %s574_s18 }
 0x363   : > { %1170 = dma.done.wait (!%p822_p5), %s575_s12, 128  }
 0x364   : > { %1172 = vsyncadd (!%p822_p5), %s575_s12, 4294967168  ;;  %s29_s29 = sadd.s32 1, %s1195_s29   ;;  %s1658_s24 = smov %s1179_s25 }
 0x365   : > { %p26_p10 = scmp.ge.s32.totalorder %s29_s29, 4   ;;  %s1659_s25 = smov %s1183_s26 }
 0x366   : > { %s1660_s26 = smov %s1418_s23  ;;  %s1661_s27 = smov %s1191_s28 }
 0x367   : > { %s1662_s28 = smov %s1664_s17  ;;  %28 = sbr.rel (!%p26_p10) target bundleno = 13 (0xd), region = 133 }
 0x36e   :  { %589 = vsyncpa [#allocation3], 1 }
 0x36f   :  { %591 = vsyncpa [#allocation3 + $0x1], 1 }
 0x370   :  { %592 = vsyncpa [#allocation6], 1 }
 0x371   :  { %593 = vsyncpa [#allocation9], 1 }
 0x372   :  { %594 = vsyncpa [#allocation4], 1 }
 0x373   :  { %596 = vsyncpa [#allocation4 + $0x1], 1 }
 0x374   :  { %597 = vsyncpa [#allocation13], 1 }
 0x375   :  { %599 = vsyncpa [#allocation13 + $0x1], 1 }

// kernel: image_encoder_forward.10
= control target key start
LH: loop header
LB: loop body
LE: loop exit
PB: predicated region body
PF: predicated region fallthrough
CT: control target
= control target key end

     0   :  { %9 = vsyncpa [#allocation3], 0  ;;  %s1069_s0 = inlined_call_operand.hbm [shape: bf16[2,8,32], index: 0, kind: input, shape index: {}]   ;;  %s1070_s1 = inlined_call_operand.hbm [shape: f32[1,8,32], index: 1, kind: input, shape index: {}]   ;;  %s1071_s2 = inlined_call_operand.hbm [shape: f32[1,32], index: 2, kind: input, shape index: {}]   ;;  %s1072_s3 = inlined_call_operand.hbm [shape: f32[1,32], index: 3, kind: input, shape index: {}]   ;;  %s1073_s4 = inlined_call_operand.hbm [shape: bf16[2,8,32], index: 4, kind: output, shape index: {}]  }
   0x1   :  { %11 = vsyncpa [#allocation3 + $0x1], 0 }
   0x2   :  { %12 = vsyncpa [#allocation6], 0 }
   0x3   :  { %13 = vsyncpa [#allocation9], 0 }
   0x4   :  { %14 = vsyncpa [#allocation4], 0 }
   0x5   :  { %16 = vsyncpa [#allocation4 + $0x1], 0  ;;  %s791_s15 = smov 0   ;;  %s793_s16 = smov 0  }
   0x6   :  { %s795_s17 = smov 0   ;;  %s797_s18 = smov 0  }
   0x7   :  { %s799_s19 = smov 0   ;;  %s801_s20 = smov 0  }
   0x8 LB: > { %s439_s21 = sadd.s32 4294967295, %s759_s20   ;;  %s440_s22 = sadd.s32 4294967294, %s759_s20   ;;  %s759_s20 = sphi %s801_s20, %s22_s20   ;;  %s755_s19 = sphi %s799_s19, %s1097_s19   ;;  %s751_s18 = sphi %s797_s18, %s1096_s18   ;;  %s747_s17 = sphi %s795_s17, %s1095_s17   ;;  %s743_s16 = sphi %s793_s16, %s1094_s16   ;;  %s739_s15 = sphi %s791_s15, %s1093_s15  }
   0x9   : > { %p56_p0 = scmp.ne.s32.totalorder %s743_s16, %s739_s15  ;;  %p825_p1 = scmp.eq.s32.totalorder %s439_s21, 0 }
   0xa   : > { %p829_p2 = scmp.eq.s32.totalorder %s439_s21, 1  ;;  %p156_p3 = scmp.eq.s32.totalorder %s440_s22, 1 }
   0xb   : > { %s1078_s23 = scalar_select %p825_p1, 1, 0 }
   0xc   : > { %s1079_s24 = scalar_select %p829_p2, 1, 0 }
   0xd   : > { %p835_p4 = por %p825_p1, %p56_p0  ;;  %p441_p5 = scmp.ge.s32.totalorder %s759_s20, 1 }
   0xe   : > { %p840_p6 = por %p156_p3, %p56_p0  ;;  %p163_p7 = scmp.lt.s32.totalorder %s759_s20, 3 }
   0xf   : > { %s1080_s25 = scalar_select %p835_p4, 1, 0 }
  0x10   : > { %s1081_s26 = scalar_select %p840_p6, 1, 0 }
  0x11   : > { %p845_p8 = pnand %p441_p5, %p163_p7  ;;  %s761_s28 = smov [#allocation5]  }
  0x12   : > { %s178_s29 = sshll.u32 %s761_s28, 4  ;;  %s762_s30 = smov [#allocation7]   ;;  %s179_s29 = int_to_ptr.vmem [resolvable:$true] %s178_s29 }
  0x13   : > { %s1082_s27 = scalar_select %p845_p8, 1, 0 }
  0x14   : > { %p476_p10 = pneg %p845_p8  ;;  %s189_s5 = sshll.u32 %s762_s30, 4  ;;  %s858_s5 = int_to_ptr.vmem [resolvable:$true] %s189_s5 }
  0x15   : > { %s763_s7 = smov [#allocation8]   ;;  %s555_s11 = scalar_lea.hbm %s1070_s1, 128 }
  0x16   : > { %p854_p11 = pnand %p476_p10, %p825_p1  ;;  %s200_s8 = sshll.u32 %s763_s7, 4  ;;  %s860_s8 = int_to_ptr.vmem [resolvable:$true] %s200_s8 }
  0x17   : > { %p556_p12 = scmp.ne.s32.totalorder %s1070_s1, %s555_s11  ;;  %p562_p5 = scmp.lt.u32.totalorder %s555_s11, %s1070_s1 }
  0x18   : > { %p870_p13 = pneg %p854_p11 }
  0x1a   : > { %p558_p0 = pnand %p870_p13, %p556_p12 }
  0x1c   : > { %p559_p3 = pneg %p558_p0 }
  0x1e   : > { %p564_p7 = pnand %p562_p5, %p559_p3 }
  0x20   : > { %567 = shalt.err (!%p564_p7)
}
  0x21   : > { %s568_s28 = scalar_lea.vmem %s179_s29, 128  ;;  %p576_p1 = scmp.lt.s32.totalorder %s179_s29, %s179_s29 }
  0x22   : > { %p569_p10 = scmp.ne.s32.totalorder %s179_s29, %s568_s28  ;;  %p577_p4 = scmp.lt.s32.totalorder %s568_s28, %s568_s28 }
  0x24   : > { %p571_p9 = pnand %p569_p10, %p870_p13  ;;  %p578_p8 = por %p577_p4, %p576_p1 }
  0x26   : > { %p572_p6 = pneg %p571_p9 }
  0x28   : > { %p579_p2 = pnand %p578_p8, %p572_p6 }
  0x2a   : > { %582 = shalt.err (!%p579_p2)
}
  0x2b   : > { %479 = dma.hbm_to_vmem [thread:$0]  (!%p854_p11), %s1070_s1, 128, %s179_s29, [#allocation6]  }
  0x2c   : > { %s583_s11 = scalar_lea.hbm %s1071_s2, 16 }
  0x2d   : > { %p584_p9 = scmp.ne.s32.totalorder %s1071_s2, %s583_s11  ;;  %p590_p2 = scmp.lt.u32.totalorder %s583_s11, %s1071_s2 }
  0x2f   : > { %p586_p12 = pnand %p584_p9, %p870_p13 }
  0x31   : > { %p587_p1 = pneg %p586_p12 }
  0x33   : > { %p592_p4 = pnand %p590_p2, %p587_p1 }
  0x35   : > { %595 = shalt.err (!%p592_p4)
}
  0x36   : > { %s596_s29 = scalar_lea.vmem %s858_s5, 16  ;;  %s603_s28 = scalar_lea.vmem %s858_s5, 32 }
  0x37   : > { %p597_p6 = scmp.ne.s32.totalorder %s858_s5, %s596_s29  ;;  %p604_p3 = scmp.lt.s32.totalorder %s858_s5, %s858_s5 }
  0x38   : > { %p605_p5 = scmp.lt.s32.totalorder %s603_s28, %s596_s29 }
  0x39   : > { %p599_p8 = pnand %p597_p6, %p870_p13 }
  0x3a   : > { %p606_p7 = por %p605_p5, %p604_p3 }
  0x3b   : > { %p600_p0 = pneg %p599_p8 }
  0x3d   : > { %p607_p10 = pnand %p606_p7, %p600_p0 }
  0x3f   : > { %610 = shalt.err (!%p607_p10)
}
  0x40   : > { %482 = dma.hbm_to_vmem [thread:$0]  (!%p854_p11), %s1071_s2, 16, %s858_s5, [#allocation6]  }
  0x41   : > { %s611_s11 = scalar_lea.hbm %s1072_s3, 16 }
  0x42   : > { %p612_p9 = scmp.ne.s32.totalorder %s1072_s3, %s611_s11  ;;  %p618_p2 = scmp.lt.u32.totalorder %s611_s11, %s1072_s3 }
  0x44   : > { %p614_p12 = pnand %p612_p9, %p870_p13 }
  0x46   : > { %p615_p1 = pneg %p614_p12 }
  0x48   : > { %p620_p4 = pnand %p618_p2, %p615_p1 }
  0x4a   : > { %623 = shalt.err (!%p620_p4)
}
  0x4b   : > { %s624_s5 = scalar_lea.vmem %s860_s8, 16  ;;  %s631_s29 = scalar_lea.vmem %s860_s8, 32 }
  0x4c   : > { %p625_p6 = scmp.ne.s32.totalorder %s860_s8, %s624_s5  ;;  %p632_p3 = scmp.lt.s32.totalorder %s860_s8, %s860_s8 }
  0x4d   : > { %p633_p5 = scmp.lt.s32.totalorder %s631_s29, %s624_s5 }
  0x4e   : > { %p627_p8 = pnand %p625_p6, %p870_p13 }
  0x4f   : > { %p634_p7 = por %p633_p5, %p632_p3 }
  0x50   : > { %p628_p0 = pneg %p627_p8 }
  0x52   : > { %p635_p10 = pnand %p634_p7, %p628_p0 }
  0x54   : > { %638 = shalt.err (!%p635_p10)
}
  0x55   : > { %485 = dma.hbm_to_vmem [thread:$0]  (!%p854_p11), %s1072_s3, 16, %s860_s8, [#allocation9]  }
  0x56   : > { %s43_s14 = sadd.s32 1, %s747_s17  ;;  %s34_s7 = sadd.s32 1, %s755_s19 }
  0x57   : > { %p50_p13 = scmp.ne.s32.totalorder %s747_s17, %s743_s16  ;;  %p36_p9 = scmp.ge.s32.totalorder %s34_s7, 2 }
  0x58   : > { %p51_p12 = scmp.eq.s32.totalorder %s759_s20, 0  ;;  %p1085_p1 = scmp.ne.s32.totalorder %s1079_s24, 0 }
  0x59   : > { %p497_p4 = scmp.lt.s32.totalorder %s759_s20, 2  ;;  %s1099_s7 = smov (%p36_p9, %s34_s7), 0 }
  0x5a   : > { %p941_p2 = por %p1085_p1, %p50_p13  ;;  %p52_p6 = por %p51_p12, %p50_p13 }
  0x5b   : > { %s211_s9 = sand.u32 1, %s747_s17   ;;  %s38_s10 = ssub.s32 %s755_s19, %s1099_s7 }
  0x5c   : > { %p41_p8 = scmp.eq.s32.totalorder %s38_s10, 0  ;;  %s446_s8 = sshll.u32 %s211_s9, 2 }
  0x5d   : > { %s447_s11 = sshll.u32 %s755_s19, 6  ;;  %s215_s22 = scalar_lea.vmem [#allocation2], %s446_s8 }
  0x5e   : > { %s953_s12 = scalar_select %p41_p8, %s747_s17, %s43_s14  }
  0x5f   : > { %s958_s24 = scalar_lea.hbm %s1069_s0, %s447_s11  ;;  %s223_s5 = sshll.u32 %s215_s22, 4  ;;  %s960_s5 = int_to_ptr.vmem [resolvable:$true] %s223_s5 }
  0x60   : > { %p964_p11 = pnand %p497_p4, %p52_p6  ;;  %s212_s28 = scalar_lea.sflag [#allocation3], %s211_s9 }
  0x61   : > { %s639_s30 = scalar_lea.hbm %s958_s24, 64  ;;  %s644_s8 = scalar_lea.hbm %s1069_s0, 128 }
  0x62   : > { %p640_p0 = scmp.ne.s32.totalorder %s958_s24, %s639_s30  ;;  %p641_p3 = pneg %p964_p11 }
  0x63   : > { %p645_p10 = scmp.lt.u32.totalorder %s958_s24, %s1069_s0  ;;  %p646_p13 = scmp.lt.u32.totalorder %s644_s8, %s639_s30 }
  0x64   : > { %p642_p5 = pnand %p641_p3, %p640_p0  ;;  %p648_p12 = scmp.lt.u32.totalorder %s639_s30, %s958_s24 }
  0x65   : > { %p647_p9 = por %p646_p13, %p645_p10 }
  0x66   : > { %p643_p7 = pneg %p642_p5 }
  0x67   : > { %p649_p1 = por %p648_p12, %p647_p9 }
  0x69   : > { %p650_p4 = pnand %p649_p1, %p643_p7 }
  0x6b   : > { %653 = shalt.err (!%p650_p4)
}
  0x6c   : > { %s654_s9 = scalar_lea.vmem %s960_s5, 64  ;;  %s764_s21 = smov [#allocation2]  }
  0x6d   : > { %p655_p6 = scmp.ne.s32.totalorder %s960_s5, %s654_s9  ;;  %s659_s22 = sshll.u32 %s764_s21, 4  ;;  %s660_s22 = int_to_ptr.vmem [resolvable:$false] %s659_s22 }
  0x6e   : > { %s661_s14 = scalar_lea.vmem %s660_s22, 128  ;;  %p662_p5 = scmp.lt.s32.totalorder %s960_s5, %s660_s22 }
  0x6f   : > { %p657_p8 = pnand %p655_p6, %p641_p3  ;;  %p663_p10 = scmp.lt.s32.totalorder %s661_s14, %s654_s9 }
  0x71   : > { %p658_p0 = pneg %p657_p8  ;;  %p664_p13 = por %p663_p10, %p662_p5 }
  0x73   : > { %p665_p9 = pnand %p664_p13, %p658_p0 }
  0x75   : > { %668 = shalt.err (!%p665_p9)
}
  0x76   : > { %489 = dma.hbm_to_vmem [thread:$0]  (!%p964_p11), %s958_s24, 64, %s960_s5, %s212_s28  }
  0x77   : > { %p1088_p7 = scmp.ne.s32.totalorder %s1082_s27, 0 }
  0x78   : > { %s996_s30 = sand.u32 (!%p1088_p7), 1, %s743_s16   ;;  %p1089_p3 = scmp.ne.s32.totalorder (!%p1088_p7), %s1080_s25, 0 }
  0x79   : > { %232 = sbr.rel (%p1088_p7) target bundleno = 468 (0x1d4), region = 36  ;;  %s449_s10 = sshll.u32 (!%p1088_p7), %s996_s30, 2 }
  0x7a   : > { %s235_s8 = scalar_lea.sflag (!%p1088_p7), [#allocation3], %s996_s30  ;;  %s238_s11 = scalar_lea.vmem (!%p1088_p7), [#allocation2], %s449_s10 }
  0x80   : > { %722 = dma.done.wait (%p1089_p3), %s235_s8, 64  }
  0x81   : > { %724 = vsyncadd (%p1089_p3), %s235_s8, 4294967232  ;;  %p1090_p11 = scmp.ne.s32.totalorder %s1078_s23, 0 }
  0x83   : > { %726 = dma.done.wait (%p1090_p11), [#allocation6], 144  }
  0x84   : > { %728 = vsyncadd (%p1090_p11), [#allocation6], 4294967152 }
  0x85   : > { %730 = dma.done.wait (%p1090_p11), [#allocation9], 16  }
  0x86   : > { %732 = vsyncadd (%p1090_p11), [#allocation9], 4294967280  ;;  %v275_v0 = vld [vmem:[%s238_s11] sm:$0xf]  ;;  %v277_v1 = vld [vmem:[#allocation5] sm:$0xff]  ;;  %vm281_vm0 = vcmask 261120  }
  0x87   : > { %v276_v2 = vunpack.c.l.bf16 %v275_v0  ;;  %v454_v14 = vld [vmem:[#allocation7] ss:$0 sm:$0xff]  ;;  %v455_v16 = vld [vmem:[#allocation8] ss:$0 sm:$0xff]  ;;  %s457_s23 = sshll.u32 %s751_s18, 6  ;;  %s274_s25 = scalar_lea.vmem [#allocation10], %s449_s10 }
  0x88   : > { %s328_s27 = sshll.u32 %s274_s25, 4  ;;  %vm311_vm1 = vcmask 257024   ;;  %s1020_s29 = scalar_lea.hbm %s1073_s4, %s457_s23  ;;  %s1022_s27 = int_to_ptr.vmem [resolvable:$true] %s328_s27 }
  0x89   : > { %v278_v3 = vadd.f32 %v277_v1, %v276_v2  ;;  %s314_s28 = scalar_lea.sflag [#allocation4], %s996_s30  ;;  %s669_s13 = scalar_lea.vmem %s1022_s27, 64 }
  0x8a   : > { %p670_p12 = scmp.ne.s32.totalorder %s1022_s27, %s669_s13  ;;  %s765_s18 = smov [#allocation10]  }
  0x8b   : > { %v282_v4 = vsel %vm281_vm0, %v278_v3, 0.0  ;;  %s673_s9 = sshll.u32 %s765_s18, 4  ;;  %s674_s9 = int_to_ptr.vmem [resolvable:$false] %s673_s9 }
  0x8c   : > { %283 = vadd.xlane.f32.xlu0 %v282_v4  ;;  %p671_p1 = pnand %p670_p12, %p941_p2  ;;  %s675_s21 = scalar_lea.vmem %s674_s9, 128 }
  0x8d   : > { %p676_p6 = scmp.lt.s32.totalorder %s1022_s27, %s674_s9  ;;  %p677_p8 = scmp.lt.s32.totalorder %s675_s21, %s669_s13 }
  0x8e   : > { %p672_p4 = pneg %p671_p1 }
  0x8f   : > { %p678_p0 = por %p677_p8, %p676_p6 }
  0x91   : > { %p679_p5 = pnand %p678_p0, %p672_p4 }
 0x119   : > { %v284_v5 = vpop.xlane.xlu0 %283 }
 0x11a   : > { %v286_v6 = vmul.f32 0.03125, %v284_v5 }
 0x11c   : > { %v287_v7 = vsub.f32 %v278_v3, %v286_v6 }
 0x11e   : > { %v288_v8 = vmul.f32 %v287_v7, %v287_v7 }
 0x120   : > { %v289_v9 = vsel %vm281_vm0, %v288_v8, 0.0 }
 0x121   : > { %290 = vadd.xlane.f32.xlu0 %v289_v9 }
 0x1ae   : > { %v291_v10 = vpop.xlane.xlu0 %290 }
 0x1af   : > { %v292_v11 = vmul.f32 0.03125, %v291_v10 }
 0x1b1   : > { %v293_v12 = vadd.f32 1e-05, %v292_v11 }
 0x1b3   : > { %553 = vrsqrt.f32 %v293_v12 }
 0x1bd   : > { %v554_v13 = vpop.eup %553 }
 0x1be   : > { %v295_v15 = vmul.f32 %v554_v13, %v287_v7 }
 0x1c0   : > { %v302_v17 = vmul.f32 %v454_v14, %v295_v15 }
 0x1c2   : > { %v309_v18 = vadd.f32 %v455_v16, %v302_v17 }
 0x1c4   : > { %v310_v19 = vpack.c.bf16 %v309_v18, %v309_v18 }
 0x1c6   : > { %312 = vst.msk [vmem:[%s274_s25] sm:$0xf] %vm311_vm1, %v310_v19 }
 0x1c7   : > { %682 = shalt.err (!%p679_p5)
}
 0x1c8   : > { %s683_s22 = scalar_lea.hbm %s1020_s29, 64  ;;  %s687_s10 = scalar_lea.hbm %s1073_s4, 128 }
 0x1c9   : > { %p684_p10 = scmp.ne.s32.totalorder %s1020_s29, %s683_s22  ;;  %p688_p7 = scmp.lt.u32.totalorder %s1020_s29, %s1073_s4 }
 0x1ca   : > { %p689_p3 = scmp.lt.u32.totalorder %s687_s10, %s683_s22  ;;  %p691_p12 = scmp.lt.u32.totalorder %s683_s22, %s1020_s29 }
 0x1cb   : > { %p685_p13 = pnand %p684_p10, %p941_p2 }
 0x1cc   : > { %p690_p11 = por %p689_p3, %p688_p7 }
 0x1cd   : > { %p686_p9 = pneg %p685_p13 }
 0x1ce   : > { %p692_p1 = por %p691_p12, %p690_p11 }
 0x1d0   : > { %p693_p4 = pnand %p692_p1, %p686_p9 }
 0x1d2   : > { %696 = shalt.err (!%p693_p4)
}
 0x1d3   : > { %474 = dma.vmem_to_hbm [thread:$0]  (%p941_p2), %s1022_s27, 64, %s1020_s29, %s314_s28  }
 0x1d4 PF: > { %s340_s23 = sand.u32 1, %s739_s15   ;;  %p1091_p6 = scmp.ne.s32.totalorder %s1081_s26, 0 }
 0x1d5   : > { %p1092_p8 = scmp.ge.s32.totalorder %s759_s20, 2  ;;  %s341_s25 = scalar_lea.sflag [#allocation4], %s340_s23 }
 0x1d7   : > { %p491_p0 = pnand %p1092_p8, %p1091_p6 }
 0x1d9   : > { %734 = dma.done.wait (!%p491_p0), %s341_s25, 64  }
 0x1da   : > { %736 = vsyncadd (!%p491_p0), %s341_s25, 4294967232  ;;  %s22_s20 = sadd.s32 1, %s759_s20   ;;  %s1093_s15 = smov %s743_s16 }
 0x1db   : > { %p19_p5 = scmp.ge.s32.totalorder %s22_s20, 4   ;;  %s1094_s16 = smov %s747_s17 }
 0x1dc   : > { %s1095_s17 = smov %s953_s12  ;;  %s1096_s18 = smov %s755_s19 }
 0x1dd   : > { %s1097_s19 = smov %s1099_s7  ;;  %21 = sbr.rel (!%p19_p5) target bundleno = 8 (0x8), region = 94 }
 0x1e4   :  { %346 = vsyncpa [#allocation3], 1 }
 0x1e5   :  { %348 = vsyncpa [#allocation3 + $0x1], 1 }
 0x1e6   :  { %349 = vsyncpa [#allocation6], 1 }
 0x1e7   :  { %350 = vsyncpa [#allocation9], 1 }
 0x1e8   :  { %351 = vsyncpa [#allocation4], 1 }
 0x1e9   :  { %353 = vsyncpa [#allocation4 + $0x1], 1 }

// kernel: image_encoder_forward.12
= control target key start
LH: loop header
LB: loop body
LE: loop exit
PB: predicated region body
PF: predicated region fallthrough
CT: control target
= control target key end

     0   :  { %s2309_s0 = inlined_call_operand.hbm [shape: bf16[2,8,32], index: 0, kind: input, shape index: {}]   ;;  %s2310_s1 = inlined_call_operand.hbm [shape: bf16[2,8,32], index: 1, kind: input, shape index: {}]   ;;  %s2311_s2 = inlined_call_operand.hbm [shape: bf16[2,8,32], index: 2, kind: input, shape index: {}]   ;;  %s2312_s3 = inlined_call_operand.hbm [shape: bf16[4,8,32], index: 3, kind: input, shape index: {}]   ;;  %s2313_s4 = inlined_call_operand.hbm [shape: f32[1,32], index: 4, kind: input, shape index: {}]   ;;  %s2314_s5 = inlined_call_operand.hbm [shape: bf16[2,8,32], index: 5, kind: input, shape index: {}]   ;;  %s2315_s6 = inlined_call_operand.hbm [shape: bf16[2,8,32], index: 6, kind: output, shape index: {}]  }
   0x1   :  { %2332 = sst [smem:[#allocation24_spill]] %s2310_s1 }
   0x2   :  { %2333 = sst [smem:[#allocation25_spill]] %s2312_s3 }
   0x3   :  { %2334 = sst [smem:[#allocation26_spill]] %s2313_s4 }
   0x4   :  { %11 = vsyncpa [#allocation3], 0 }
   0x5   :  { %13 = vsyncpa [#allocation3 + $0x1], 0 }
   0x6   :  { %14 = vsyncpa [#allocation6], 0 }
   0x7   :  { %16 = vsyncpa [#allocation6 + $0x1], 0 }
   0x8   :  { %17 = vsyncpa [#allocation9], 0 }
   0x9   :  { %18 = vsyncpa [#allocation12], 0 }
   0xa   :  { %20 = vsyncpa [#allocation12 + $0x1], 0 }
   0xb   :  { %21 = vsyncpa [#allocation4], 0 }
   0xc   :  { %23 = vsyncpa [#allocation4 + $0x1], 0  ;;  %s1869_s21 = smov 0   ;;  %s1871_s22 = smov 0  }
   0xd   :  { %s1873_s23 = smov 0   ;;  %s1875_s24 = smov 0  }
   0xe   :  { %s1877_s25 = smov 0   ;;  %s1879_s26 = smov 0  }
   0xf LB: > { %2335 = sst [smem:[#allocation19_spill]] %s1806_s23  ;;  %s1900_s27 = sadd.s32 4294967295, %s1818_s26   ;;  %s1818_s26 = sphi %s1879_s26, %s29_s26   ;;  %s1814_s25 = sphi %s1877_s25, %s2369_s25   ;;  %s1810_s24 = sphi %s1875_s24, %s2368_s24   ;;  %s1806_s23 = sphi %s1873_s23, %s2367_s23   ;;  %s1802_s22 = sphi %s1871_s22, %s2371_s22   ;;  %s1798_s21 = sphi %s1869_s21, %s2370_s21  }
  0x10   : > { %2336 = sst [smem:[#allocation20_spill]] %s1814_s25  ;;  %s1274_s28 = sadd.s32 4294967294, %s1818_s26  }
  0x11   : > { %2337 = sst [smem:[#allocation21_spill]] %s1818_s26  ;;  %p63_p0 = scmp.ne.s32.totalorder %s1802_s22, %s1798_s21 }
  0x12   : > { %p2316_p1 = scmp.eq.s32.totalorder %s1900_s27, 0  ;;  %p217_p3 = scmp.eq.s32.totalorder %s1274_s28, 1 }
  0x13   : > { %p1275_p5 = scmp.ge.s32.totalorder %s1818_s26, 1  ;;  %p224_p7 = scmp.lt.s32.totalorder %s1818_s26, 3 }
  0x14   : > { %p1909_p4 = por %p2316_p1, %p63_p0  ;;  %p1914_p6 = por %p217_p3, %p63_p0 }
  0x15   : > { %p1919_p8 = pnand %p1275_p5, %p224_p7  ;;  %s1820_s8 = smov [#allocation8]  }
  0x16   : > { %s2338_s29 = scalar_select %p1909_p4, 1, 0 }
  0x17   : > { %s2339_s30 = scalar_select %p1914_p6, 1, 0 }
  0x18   : > { %s2340_s7 = scalar_select %p1919_p8, 1, 0 }
  0x19   : > { %s236_s9 = sshll.u32 %s1820_s8, 4  ;;  %p1442_p9 = pneg %p1919_p8  ;;  %s237_s9 = int_to_ptr.vmem [resolvable:$true] %s236_s9 }
  0x1a   : > { %s41_s11 = sadd.s32 1, %s1814_s25  ;;  %s2342_s3 = sld [smem:[#allocation25_spill]] }
  0x1b   : > { %p1928_p11 = pnand %p1442_p9, %p2316_p1 }
  0x1d   : > { %s2341_s10 = scalar_select %p1928_p11, 1, 0 }
  0x1e   : > { %p2324_p13 = pneg %p1928_p11 }
  0x20   : > { %s1548_s14 = scalar_lea.hbm %s2342_s3, 256 }
  0x21   : > { %p1549_p12 = scmp.ne.s32.totalorder %s2342_s3, %s1548_s14  ;;  %p1555_p5 = scmp.lt.u32.totalorder %s1548_s14, %s2342_s3 }
  0x23   : > { %p1551_p0 = pnand %p2324_p13, %p1549_p12 }
  0x25   : > { %p1552_p3 = pneg %p1551_p0 }
  0x27   : > { %p1557_p7 = pnand %p1555_p5, %p1552_p3 }
  0x29   : > { %1560 = shalt.err (!%p1557_p7)
}
  0x2a   : > { %s1561_s19 = scalar_lea.vmem %s237_s9, 256  ;;  %p1569_p2 = scmp.lt.s32.totalorder %s237_s9, %s237_s9 }
  0x2b   : > { %p1562_p9 = scmp.ne.s32.totalorder %s237_s9, %s1561_s19  ;;  %p1570_p6 = scmp.lt.s32.totalorder %s1561_s19, %s1561_s19 }
  0x2d   : > { %p1564_p10 = pnand %p1562_p9, %p2324_p13  ;;  %p1571_p4 = por %p1570_p6, %p1569_p2 }
  0x2f   : > { %p1565_p1 = pneg %p1564_p10 }
  0x31   : > { %p1572_p8 = pnand %p1571_p4, %p1565_p1 }
  0x33   : > { %1575 = shalt.err (!%p1572_p8)
}
  0x34   : > { %s1821_s20 = smov 64   ;;  %s1822_s28 = smov 4  }
  0x35   : > { %1445 = dma.hbm_to_vmem [thread:$0]  (!%p1928_p11), %s2342_s3, 256, %s237_s9, [#allocation9], %s1821_s20, %s1821_s20, %s1822_s28  }
  0x36   : > { %p43_p1 = scmp.ge.s32.totalorder %s41_s11, 2  ;;  %s50_s13 = sadd.s32 1, %s1806_s23 }
  0x37   : > { %p57_p2 = scmp.ne.s32.totalorder %s1806_s23, %s1802_s22  ;;  %p58_p4 = scmp.eq.s32.totalorder %s1818_s26, 0 }
  0x38   : > { %s2373_s11 = smov (%p43_p1, %s41_s11), 0  ;;  %p2344_p8 = scmp.eq.s32.totalorder %s1900_s27, 1 }
  0x39   : > { %2343 = sst [smem:[#allocation22_spill]] %s2373_s11  ;;  %p59_p6 = por %p58_p4, %p57_p2 }
  0x3a   : > { %p1963_p10 = por %p2344_p8, %p57_p2  ;;  %s45_s15 = ssub.s32 %s1814_s25, %s2373_s11 }
  0x3b   : > { %p1468_p12 = scmp.lt.s32.totalorder %s1818_s26, 2  ;;  %p48_p0 = scmp.eq.s32.totalorder %s45_s15, 0 }
  0x3c   : > { %s2345_s14 = scalar_select %p1963_p10, 1, 0 }
  0x3d   : > { %s1971_s16 = sand.u32 1, %s1806_s23   ;;  %s1977_s17 = sshll.u32 %s1814_s25, 6 }
  0x3e   : > { %s1974_s9 = sshll.u32 %s1971_s16, 2  ;;  %p1982_p3 = pnand %p1468_p12, %p59_p6 }
  0x3f   : > { %s1980_s18 = scalar_select %p48_p0, %s1806_s23, %s50_s13  }
  0x40   : > { %s2347_s19 = scalar_select %p1982_p3, 1, 0 }
  0x41   : > { %2346 = sst [smem:[#allocation23_spill]] %s1980_s18  ;;  %s280_s20 = sand.u32 1, %s1818_s26  }
  0x42   : > { %s2348_s1 = sld [smem:[#allocation24_spill]]  ;;  %s284_s15 = scalar_lea.vmem [#allocation5], %s1974_s9 }
  0x43   : > { %s291_s3 = sshll.u32 %s284_s15, 4  ;;  %s1823_s13 = smov [#allocation10]   ;;  %s1994_s3 = int_to_ptr.vmem [resolvable:$true] %s291_s3 }
  0x44   : > { %s1996_s11 = sshll.u32 %s1823_s13, 4  ;;  %s1998_s25 = scalar_lea.sflag [#allocation6], %s280_s20  ;;  %s251_s11 = int_to_ptr.vmem [resolvable:$true] %s1996_s11 }
  0x45   : > { %p2004_p7 = pneg %p1982_p3 }
  0x47   : > { %s2349_s28 = scalar_select %p2004_p7, 1, 0 }
  0x48   : > { %s1991_s12 = scalar_lea.hbm %s2348_s1, %s1977_s17  ;;  %s1581_s23 = scalar_lea.hbm %s2348_s1, 128 }
  0x49   : > { %s1576_s18 = scalar_lea.hbm %s1991_s12, 64  ;;  %p1582_p2 = scmp.lt.u32.totalorder %s1991_s12, %s2348_s1 }
  0x4a   : > { %p1577_p5 = scmp.ne.s32.totalorder %s1991_s12, %s1576_s18  ;;  %p1583_p4 = scmp.lt.u32.totalorder %s1581_s23, %s1576_s18 }
  0x4b   : > { %p1585_p8 = scmp.lt.u32.totalorder %s1576_s18, %s1991_s12 }
  0x4c   : > { %p1579_p9 = pnand %p2004_p7, %p1577_p5  ;;  %p1584_p6 = por %p1583_p4, %p1582_p2 }
  0x4e   : > { %p1580_p1 = pneg %p1579_p9  ;;  %p1586_p12 = por %p1585_p8, %p1584_p6 }
  0x50   : > { %p1587_p0 = pnand %p1586_p12, %p1580_p1 }
  0x52   : > { %1590 = shalt.err (!%p1587_p0)
}
  0x53   : > { %s1591_s20 = scalar_lea.vmem %s1994_s3, 64  ;;  %s1824_s8 = smov [#allocation5]  }
  0x54   : > { %p1592_p5 = scmp.ne.s32.totalorder %s1994_s3, %s1591_s20  ;;  %s1596_s15 = sshll.u32 %s1824_s8, 4  ;;  %s1597_s15 = int_to_ptr.vmem [resolvable:$false] %s1596_s15 }
  0x55   : > { %s1598_s26 = scalar_lea.vmem %s1597_s15, 128  ;;  %p1599_p10 = scmp.lt.s32.totalorder %s1994_s3, %s1597_s15 }
  0x56   : > { %p1594_p9 = pnand %p1592_p5, %p2004_p7  ;;  %p1600_p11 = scmp.lt.s32.totalorder %s1598_s26, %s1591_s20 }
  0x58   : > { %p1595_p13 = pneg %p1594_p9  ;;  %p1601_p2 = por %p1600_p11, %p1599_p10 }
  0x5a   : > { %p1602_p4 = pnand %p1601_p2, %p1595_p13 }
  0x5c   : > { %1605 = shalt.err (!%p1602_p4)
}
  0x5d   : > { %1455 = dma.hbm_to_vmem [thread:$0]  (!%p1982_p3), %s1991_s12, 64, %s1994_s3, %s1998_s25  }
  0x5e   : > { %s2350_s4 = sld [smem:[#allocation26_spill]]  ;;  %p2351_p11 = scmp.ne.s32.totalorder %s2341_s10, 0 }
  0x60   : > { %p2352_p13 = pneg %p2351_p11 }
  0x64   : > { %s1606_s13 = scalar_lea.hbm %s2350_s4, 16 }
  0x65   : > { %p1607_p1 = scmp.ne.s32.totalorder %s2350_s4, %s1606_s13  ;;  %p1613_p8 = scmp.lt.u32.totalorder %s1606_s13, %s2350_s4 }
  0x67   : > { %p1609_p10 = pnand %p1607_p1, %p2352_p13 }
  0x69   : > { %p1610_p6 = pneg %p1609_p10 }
  0x6b   : > { %p1615_p12 = pnand %p1613_p8, %p1610_p6 }
  0x6d   : > { %1618 = shalt.err (!%p1615_p12)
}
  0x6e   : > { %s1619_s3 = scalar_lea.vmem %s251_s11, 16  ;;  %p2353_p5 = pmov %p2352_p13 }
  0x6f   : > { %p1620_p0 = scmp.ne.s32.totalorder %s251_s11, %s1619_s3  ;;  %s1626_s12 = scalar_lea.vmem %s251_s11, 32 }
  0x70   : > { %p1627_p4 = scmp.lt.s32.totalorder %s251_s11, %s251_s11  ;;  %p1628_p3 = scmp.lt.s32.totalorder %s1626_s12, %s1619_s3 }
  0x71   : > { %p1622_p9 = pnand %p1620_p0, %p2353_p5 }
  0x72   : > { %p1629_p7 = por %p1628_p3, %p1627_p4 }
  0x73   : > { %p1623_p2 = pneg %p1622_p9 }
  0x75   : > { %p1630_p1 = pnand %p1629_p7, %p1623_p2 }
  0x77   : > { %1633 = shalt.err (!%p1630_p1)
}
  0x78   : > { %1448 = dma.hbm_to_vmem [thread:$0]  (!%p2351_p11), %s2350_s4, 16, %s251_s11, [#allocation9]  }
  0x79   : > { %s2053_s13 = scalar_lea.hbm %s2309_s0, %s1977_s17  ;;  %s265_s8 = scalar_lea.vmem [#allocation2], %s1974_s9 }
  0x7a   : > { %s273_s10 = sshll.u32 %s265_s8, 4  ;;  %s2062_s3 = scalar_lea.hbm %s2311_s2, %s1977_s17  ;;  %s2056_s10 = int_to_ptr.vmem [resolvable:$true] %s273_s10 }
  0x7b   : > { %s262_s12 = scalar_lea.sflag [#allocation3], %s1971_s16  ;;  %s1634_s11 = scalar_lea.hbm %s2053_s13, 64 }
  0x7c   : > { %p1635_p3 = scmp.ne.s32.totalorder %s2053_s13, %s1634_s11  ;;  %p2354_p7 = scmp.ne.s32.totalorder %s2349_s28, 0 }
  0x7d   : > { %s1639_s23 = scalar_lea.hbm %s2309_s0, 128  ;;  %p1640_p10 = scmp.lt.u32.totalorder %s2053_s13, %s2309_s0 }
  0x7e   : > { %p1637_p11 = pnand %p1635_p3, %p2354_p7  ;;  %p1641_p6 = scmp.lt.u32.totalorder %s1639_s23, %s1634_s11 }
  0x7f   : > { %p1643_p12 = scmp.lt.u32.totalorder %s1634_s11, %s2053_s13 }
  0x80   : > { %p1638_p13 = pneg %p1637_p11  ;;  %p1642_p8 = por %p1641_p6, %p1640_p10 }
  0x82   : > { %p1644_p0 = por %p1643_p12, %p1642_p8 }
  0x84   : > { %p1645_p5 = pnand %p1644_p0, %p1638_p13 }
  0x86   : > { %1648 = shalt.err (!%p1645_p5)
}
  0x87   : > { %s1649_s8 = scalar_lea.vmem %s2056_s10, 64  ;;  %s1825_s20 = smov [#allocation2]  }
  0x88   : > { %p1650_p9 = scmp.ne.s32.totalorder %s2056_s10, %s1649_s8  ;;  %s1654_s15 = sshll.u32 %s1825_s20, 4  ;;  %s1655_s15 = int_to_ptr.vmem [resolvable:$false] %s1654_s15 }
  0x89   : > { %s1656_s4 = scalar_lea.vmem %s1655_s15, 128  ;;  %p1657_p1 = scmp.lt.s32.totalorder %s2056_s10, %s1655_s15 }
  0x8a   : > { %p1652_p2 = pnand %p1650_p9, %p2354_p7  ;;  %p1658_p3 = scmp.lt.s32.totalorder %s1656_s4, %s1649_s8 }
  0x8c   : > { %p1653_p4 = pneg %p1652_p2  ;;  %p1659_p11 = por %p1658_p3, %p1657_p1 }
  0x8e   : > { %p1660_p10 = pnand %p1659_p11, %p1653_p4 }
  0x90   : > { %1663 = shalt.err (!%p1660_p10)
}
  0x91   : > { %p2355_p13 = scmp.ne.s32.totalorder %s2347_s19, 0  ;;  %s302_s11 = scalar_lea.vmem [#allocation7], %s1974_s9 }
  0x92   : > { %s309_s1 = sshll.u32 %s302_s11, 4  ;;  %s1664_s26 = scalar_lea.hbm %s2062_s3, 64  ;;  %s310_s1 = int_to_ptr.vmem [resolvable:$true] %s309_s1 }
  0x93   : > { %1452 = dma.hbm_to_vmem [thread:$0]  (!%p2355_p13), %s2053_s13, 64, %s2056_s10, %s262_s12  }
  0x94   : > { %p1665_p6 = scmp.ne.s32.totalorder %s2062_s3, %s1664_s26  ;;  %s1669_s8 = scalar_lea.hbm %s2311_s2, 128 }
  0x95   : > { %p1670_p0 = scmp.lt.u32.totalorder %s2062_s3, %s2311_s2  ;;  %p1671_p5 = scmp.lt.u32.totalorder %s1669_s8, %s1664_s26 }
  0x96   : > { %p1667_p8 = pnand %p1665_p6, %p2354_p7  ;;  %p1673_p2 = scmp.lt.u32.totalorder %s1664_s26, %s2062_s3 }
  0x97   : > { %p1672_p9 = por %p1671_p5, %p1670_p0 }
  0x98   : > { %p1668_p12 = pneg %p1667_p8 }
  0x99   : > { %p1674_p4 = por %p1673_p2, %p1672_p9 }
  0x9b   : > { %p1675_p1 = pnand %p1674_p4, %p1668_p12 }
  0x9d   : > { %1678 = shalt.err (!%p1675_p1)
}
  0x9e   : > { %s1679_s13 = scalar_lea.vmem %s310_s1, 64  ;;  %s1826_s10 = smov [#allocation7]  }
  0x9f   : > { %p1680_p3 = scmp.ne.s32.totalorder %s310_s1, %s1679_s13  ;;  %s1684_s12 = sshll.u32 %s1826_s10, 4  ;;  %s1685_s12 = int_to_ptr.vmem [resolvable:$false] %s1684_s12 }
  0xa0   : > { %s1686_s4 = scalar_lea.vmem %s1685_s12, 128  ;;  %p1687_p6 = scmp.lt.s32.totalorder %s310_s1, %s1685_s12 }
  0xa1   : > { %p1682_p11 = pnand %p1680_p3, %p2354_p7  ;;  %p1688_p8 = scmp.lt.s32.totalorder %s1686_s4, %s1679_s13 }
  0xa3   : > { %p1683_p10 = pneg %p1682_p11  ;;  %p1689_p13 = por %p1688_p8, %p1687_p6 }
  0xa5   : > { %p1690_p0 = pnand %p1689_p13, %p1683_p10 }
  0xa7   : > { %1693 = shalt.err (!%p1690_p0)
}
  0xa8   : > { %p2356_p5 = scmp.ne.s32.totalorder %s2347_s19, 0  ;;  %s2109_s23 = scalar_lea.hbm %s2314_s5, %s1977_s17 }
  0xa9   : > { %s320_s18 = scalar_lea.vmem [#allocation11], %s1974_s9  ;;  %s317_s20 = scalar_lea.sflag [#allocation12], %s1971_s16 }
  0xaa   : > { %1458 = dma.hbm_to_vmem [thread:$0]  (!%p2356_p5), %s2062_s3, 64, %s310_s1, %s1998_s25  }
  0xab   : > { %s328_s8 = sshll.u32 %s320_s18, 4  ;;  %s1694_s15 = scalar_lea.hbm %s2109_s23, 64  ;;  %s329_s8 = int_to_ptr.vmem [resolvable:$true] %s328_s8 }
  0xac   : > { %p1695_p13 = scmp.ne.s32.totalorder %s2109_s23, %s1694_s15  ;;  %s1699_s3 = scalar_lea.hbm %s2314_s5, 128 }
  0xad   : > { %p1700_p2 = scmp.lt.u32.totalorder %s2109_s23, %s2314_s5  ;;  %p1701_p4 = scmp.lt.u32.totalorder %s1699_s3, %s1694_s15 }
  0xae   : > { %p1697_p12 = pnand %p1695_p13, %p2354_p7  ;;  %p1703_p3 = scmp.lt.u32.totalorder %s1694_s15, %s2109_s23 }
  0xaf   : > { %p1702_p1 = por %p1701_p4, %p1700_p2 }
  0xb0   : > { %p1698_p9 = pneg %p1697_p12 }
  0xb1   : > { %p1704_p11 = por %p1703_p3, %p1702_p1 }
  0xb3   : > { %p1705_p10 = pnand %p1704_p11, %p1698_p9 }
  0xb5   : > { %1708 = shalt.err (!%p1705_p10)
}
  0xb6   : > { %s1709_s16 = scalar_lea.vmem %s329_s8, 64  ;;  %s1827_s9 = smov [#allocation11]  }
  0xb7   : > { %p1710_p6 = scmp.ne.s32.totalorder %s329_s8, %s1709_s16  ;;  %s1714_s10 = sshll.u32 %s1827_s9, 4  ;;  %s1715_s10 = int_to_ptr.vmem [resolvable:$false] %s1714_s10 }
  0xb8   : > { %s1716_s12 = scalar_lea.vmem %s1715_s10, 128  ;;  %p1717_p13 = scmp.lt.s32.totalorder %s329_s8, %s1715_s10 }
  0xb9   : > { %p1712_p8 = pnand %p1710_p6, %p2354_p7  ;;  %p1718_p12 = scmp.lt.s32.totalorder %s1716_s12, %s1709_s16 }
  0xbb   : > { %p1713_p0 = pneg %p1712_p8  ;;  %p1719_p5 = por %p1718_p12, %p1717_p13 }
  0xbd   : > { %p1720_p2 = pnand %p1719_p5, %p1713_p0 }
  0xbf   : > { %1723 = shalt.err (!%p1720_p2)
}
  0xc0   : > { %p2357_p4 = scmp.ne.s32.totalorder %s2347_s19, 0  ;;  %p2358_p9 = scmp.ne.s32.totalorder %s2340_s7, 0 }
  0xc1   : > { %s2133_s28 = sand.u32 (!%p2358_p9), 1, %s1802_s22   ;;  %p2359_p7 = scmp.ne.s32.totalorder (!%p2358_p9), %s2338_s29, 0 }
  0xc2   : > { %1461 = dma.hbm_to_vmem [thread:$0]  (!%p2357_p4), %s2109_s23, 64, %s329_s8, %s317_s20  }
  0xc3   : > { %337 = sbr.rel (%p2358_p9) target bundleno = 1811 (0x713), region = 44  ;;  %s2136_s4 = sshll.u32 (!%p2358_p9), %s2133_s28, 2 }
  0xc4   : > { %s340_s11 = scalar_lea.sflag (!%p2358_p9), [#allocation3], %s2133_s28  ;;  %s343_s26 = scalar_lea.vmem (!%p2358_p9), [#allocation2], %s2136_s4 }
  0xca   : > { %1777 = dma.done.wait (%p2359_p7), %s340_s11, 64  }
  0xcb   : > { %1779 = vsyncadd (%p2359_p7), %s340_s11, 4294967232  ;;  %s348_s7 = sand.u32 1, %s1900_s27   ;;  %s352_s23 = scalar_lea.vmem [#allocation5], %s2136_s4 }
  0xcc   : > { %s349_s19 = scalar_lea.sflag [#allocation6], %s348_s7 }
  0xcd   : > { %1781 = dma.done.wait (%p2359_p7), %s349_s19, 128  }
  0xce   : > { %1783 = vsyncadd (%p2359_p7), %s349_s19, 4294967168  ;;  %s361_s18 = scalar_lea.vmem [#allocation7], %s2136_s4  ;;  %p2360_p5 = scmp.eq.s32.totalorder %s1900_s27, 0 }
  0xd0   : > { %1785 = dma.done.wait (%p2360_p5), [#allocation9], 272   ;;  %p2361_p1 = pmov %p2360_p5 }
  0xd1   : > { %s375_s8 = scalar_lea.sflag [#allocation12], %s2133_s28  ;;  %s378_s20 = scalar_lea.vmem [#allocation11], %s2136_s4 }
  0xd2   : > { %1787 = vsyncadd (%p2361_p1), [#allocation9], 4294967024 }
  0xd3   : > { %1789 = dma.done.wait (%p2359_p7), %s375_s8, 64  }
  0xd4   : > { %1791 = vsyncadd (%p2359_p7), %s375_s8, 4294967232  ;;  %v1828_v0 = vmov 0.0   ;;  %vm1829_vm0 = vmmov 0   ;;  %vm439_vm1 = vcmask 64512   ;;  %v424_v1 = vld [vmem:[%s352_s23] sm:$0xf]  ;;  %v426_v6 = vlaneseq }
  0xd5   : > { %1339 = vmatprep.subr.bf16.mxu0 %v1828_v0  ;;  %1341 = vmatprep.mubr.msk.bf16.mxu0 %vm1829_vm0, %v1828_v0  ;;  %v444_v2 = vsel %vm439_vm1, %v424_v1, 0  ;;  %v423_v3 = vld [vmem:[%s343_s26] sm:$0xf]  ;;  %s1830_s27 = smov 120   ;;  %v1300_v5 = vcombine.low %v424_v1, %v424_v1  ;;  %s1831_s29 = smov 112   ;;  %vm503_vm3 = vcmask 1043456  }
  0xd6   : > { %1351 = vmatprep.subr.bf16.mxu1 %v1828_v0  ;;  %1353 = vmatprep.mubr.msk.bf16.mxu1 %vm1829_vm0, %v1828_v0  ;;  %v1299_v4 = vcombine.low %v423_v3, %v423_v3  ;;  %v2173_v7 = vand.u32 127, %v426_v6  ;;  %v425_v14 = vld [vmem:[%s361_s18] sm:$0xf]  ;;  %s1832_s15 = smov 104   ;;  %v549_v31 = vld [vmem:[#allocation8] sm:$0xf] }
  0xd7   : > { %1340 = vmatpush3.bf16.xpose.msra.mxu0 %v444_v2  ;;  %v505_v15 = vsel %vm503_vm3, %v425_v14, 0  ;;  %v2184_v16 = vcombine.low %v425_v14, %v425_v14  ;;  %v554_v32 = vsel %vm503_vm3, %v549_v31, 0  ;;  %s1312_s13 = sshll.u32 %s1810_s24, 6  ;;  %s421_s25 = scalar_lea.vmem [#allocation13], %s2136_s4  ;;  %vm1090_vm4 = vcmask 257024  }
  0xd8   : > { %1345 = vmatprep.subr.bf16.mxu0 %v1828_v0  ;;  %600 = vrot.lane.b32.xlu1 %v1299_v4, %s1830_s27  ;;  %vm428_vm2 = vcmp.lt.s32.totalorder %v2173_v7, 5  ;;  %s1107_s3 = sshll.u32 %s421_s25, 4  ;;  %s2260_s16 = scalar_lea.hbm %s2315_s6, %s1312_s13  ;;  %s2262_s3 = int_to_ptr.vmem [resolvable:$true] %s1107_s3 }
  0xd9   : > { %1352 = vmatpush3.bf16.msra.mxu1 %v554_v32  ;;  %s1093_s24 = scalar_lea.sflag [#allocation4], %s2133_s28  ;;  %s1724_s9 = scalar_lea.vmem %s2262_s3, 64 }
  0xda   : > { %1363 = vmatprep.subr.bf16.mxu1 %v1828_v0  ;;  %p1725_p3 = scmp.ne.s32.totalorder %s2262_s3, %s1724_s9  ;;  %p2362_p11 = scmp.ne.s32.totalorder %s2345_s14, 0 }
  0xdb   : > { %s1833_s10 = smov [#allocation13]  }
  0xdc   : > { %769 = vrot.lane.b32.xlu1 %v1300_v5, %s1831_s29  ;;  %p1726_p10 = pnand %p1725_p3, %p2362_p11  ;;  %s1728_s12 = sshll.u32 %s1833_s10, 4  ;;  %s1729_s12 = int_to_ptr.vmem [resolvable:$false] %s1728_s12 }
  0xdd   : > { %s1730_s4 = scalar_lea.vmem %s1729_s12, 128  ;;  %p1731_p8 = scmp.lt.s32.totalorder %s2262_s3, %s1729_s12 }
  0xde   : > { %1342 = vmatmul.mubr.msk.bf16.vlgmr.msra.gmra.mrb[0].mxu0 %vm439_vm1, %v423_v3  ;;  %p1727_p6 = pneg %p1726_p10  ;;  %p1732_p0 = scmp.lt.s32.totalorder %s1730_s4, %s1724_s9 }
  0xdf   : > { %1347 = vmatprep.mubr.msk.bf16.mxu0 %vm1829_vm0, %v1828_v0  ;;  %1346 = vmatpush3.bf16.msra.mxu0 %v505_v15 }
  0xe0   : > { %767 = vrot.lane.b32.xlu1 %v1299_v4, %s1831_s29  ;;  %1357 = vmatprep.subr.bf16.mxu0 %v1828_v0  ;;  %p1733_p13 = por %p1732_p0, %p1731_p8 }
  0xe2   : > { %p1734_p12 = pnand %p1733_p13, %p1727_p6 }
 0x14a   : > { %v601_v22 = vpop.permute.xlu1 %600 }
 0x14e   : > { %v770_v26 = vpop.permute.xlu1 %769 }
 0x14f   : > { %v775_v27 = vsel %vm439_vm1, %v770_v26, 0 }
 0x152   : > { %v768_v28 = vpop.permute.xlu1 %767 }
 0x1b1   : > { %v480_v8 = vpop.f32.mrb[0].mxu0 }
 0x1b2   : > { %v488_v9 = vsel %vm428_vm2, %v480_v8, -1e+30  ;;  %v1343_v10 = vpop.f32.mrb[1].mxu0  ;;  %v719_v8 = vld [vmem:[#allocation8 + $0x4] sm:$0xf] }
 0x1b3   : > { %v483_v11 = vpop.f32.mrb[2].mxu0  ;;  %v489_v12 = vsel %vm439_vm1, %v488_v9, -inf }
 0x1b4   : > { %490 = vmax.xlane.f32.xlu0 %v489_v12  ;;  %v1344_v13 = vpop.f32.mrb[3].mxu0 }
 0x1ca   : > { %605 = vrot.lane.b32.xlu0 %v1300_v5, %s1830_s27 }
 0x1ce   : > { %829 = vrot.lane.b32.xlu0 %v2184_v16, %s1831_s29 }
 0x1d2   : > { %930 = vrot.lane.b32.xlu0 %v1300_v5, %s1832_s15 }
 0x1d6   : > { %928 = vrot.lane.b32.xlu0 %v1299_v4, %s1832_s15 }
 0x241   : > { %v491_v17 = vpop.xlane.xlu0 %490 }
 0x242   : > { %v492_v18 = vsub.f32 %v488_v9, %v491_v17  ;;  %v724_v9 = vsel %vm503_vm3, %v719_v8, 0 }
 0x244   : > { %v493_v19 = vmul.f32 1.442695, %v492_v18 }
 0x245   : > { %v606_v20 = vpop.permute.xlu0 %605 }
 0x246   : > { %1532 = vpow2.f32 %v493_v19  ;;  %v611_v23 = vsel %vm439_vm1, %v606_v20, 0  ;;  %v880_v19 = vld [vmem:[#allocation8 + $0x8] sm:$0xf] }
 0x249   : > { %v830_v29 = vpop.permute.xlu0 %829 }
 0x24a   : > { %v835_v30 = vsel %vm503_vm3, %v830_v29, 0 }
 0x24d   : > { %v931_v33 = vpop.permute.xlu0 %930 }
 0x24e   : > { %v936_v1 = vsel %vm439_vm1, %v931_v33, 0 }
 0x250   : > { %v1533_v21 = vpop.eup %1532 }
 0x251   : > { %v495_v24 = vsel %vm439_vm1, %v1533_v21, 0.0  ;;  %v499_v25 = vpack.c.bf16 %v1533_v21, %v1533_v21  ;;  %v929_v34 = vpop.permute.xlu0 %928 }
 0x252   : > { %496 = vadd.xlane.f32.xlu0 %v495_v24 }
 0x253   : > { %1348 = vmatmul.mubr.msk.bf16.vlgmr.msra.gmra.mrb[4].mxu0 %vm439_vm1, %v499_v25  ;;  %v885_v25 = vsel %vm503_vm3, %v880_v19, 0 }
 0x254   : > { %1358 = vmatpush3.bf16.xpose.msra.mxu0 %v611_v23  ;;  %1359 = vmatprep.mubr.msk.bf16.mxu0 %vm1829_vm0, %v1828_v0 }
 0x255   : > { %1375 = vmatprep.subr.bf16.mxu0 %v1828_v0 }
 0x25b   : > { %1360 = vmatmul.mubr.msk.bf16.vlgmr.msra.gmra.mrb[8].mxu0 %vm439_vm1, %v601_v22 }
 0x25c   : > { %1376 = vmatpush3.bf16.xpose.msra.mxu0 %v775_v27  ;;  %1377 = vmatprep.mubr.msk.bf16.mxu0 %vm1829_vm0, %v1828_v0 }
 0x25d   : > { %1381 = vmatprep.subr.bf16.mxu0 %v1828_v0 }
 0x263   : > { %1378 = vmatmul.mubr.msk.bf16.vlgmr.msra.gmra.mrb[12].mxu0 %vm439_vm1, %v768_v28 }
 0x264   : > { %1382 = vmatpush3.bf16.msra.mxu0 %v835_v30  ;;  %1383 = vmatprep.mubr.msk.bf16.mxu0 %vm1829_vm0, %v1828_v0 }
 0x265   : > { %1393 = vmatprep.subr.bf16.mxu0 %v1828_v0 }
 0x2df   : > { %v497_v35 = vpop.xlane.xlu0 %496 }
 0x2e0   : > { %1534 = vrcp.f32 %v497_v35 }
 0x2ea   : > { %v1535_v36 = vpop.eup %1534 }
 0x326   : > { %v541_v37 = vpop.f32.mrb[4].mxu0 }
 0x327   : > { %v547_v38 = vmul.f32 %v1535_v36, %v541_v37  ;;  %v1349_v39 = vpop.f32.mrb[5].mxu0 }
 0x328   : > { %v544_v40 = vpop.f32.mrb[6].mxu0 }
 0x329   : > { %v548_v41 = vpack.c.bf16 %v547_v38, %v547_v38  ;;  %v1350_v42 = vpop.f32.mrb[7].mxu0 }
 0x32b   : > { %1354 = vmatmul.mubr.msk.bf16.vlgmr.msra.gmra.mrb[0].mxu1 %vm439_vm1, %v548_v41 }
 0x32c   : > { %1365 = vmatprep.mubr.msk.bf16.mxu1 %vm1829_vm0, %v1828_v0 }
 0x32e   : > { %v647_v43 = vpop.f32.mrb[8].mxu0 }
 0x32f   : > { %v1361_v44 = vpop.f32.mrb[9].mxu0  ;;  %v653_v52 = vsel %vm428_vm2, %v647_v43, -1e+30 }
 0x330   : > { %v650_v45 = vpop.f32.mrb[10].mxu0  ;;  %v654_v54 = vsel %vm439_vm1, %v653_v52, -inf }
 0x331   : > { %v1362_v46 = vpop.f32.mrb[11].mxu0 }
 0x336   : > { %v811_v47 = vpop.f32.mrb[12].mxu0 }
 0x337   : > { %v817_v48 = vsel %vm428_vm2, %v811_v47, -1e+30  ;;  %v1379_v49 = vpop.f32.mrb[13].mxu0 }
 0x338   : > { %v814_v50 = vpop.f32.mrb[14].mxu0  ;;  %v818_v51 = vsel %vm439_vm1, %v817_v48, -inf }
 0x339   : > { %819 = vmax.xlane.f32.xlu1 %v818_v51  ;;  %v1380_v53 = vpop.f32.mrb[15].mxu0  ;;  %v429_v51 = vld [vmem:[%s378_s20] sm:$0xf] }
 0x33d   : > { %655 = vmax.xlane.f32.xlu1 %v654_v54 }
 0x34e   : > { %668 = vrot.lane.b32.xlu1 %v2184_v16, %s1830_s27 }
 0x3c6   : > { %v820_v55 = vpop.xlane.xlu1 %819 }
 0x3c7   : > { %v821_v56 = vsub.f32 %v817_v48, %v820_v55 }
 0x3c9   : > { %v822_v57 = vmul.f32 1.442695, %v821_v56 }
 0x3ca   : > { %v656_v58 = vpop.xlane.xlu1 %655 }
 0x3cb   : > { %1536 = vpow2.f32 %v822_v57  ;;  %v657_v59 = vsub.f32 %v653_v52, %v656_v58  ;;  %v1295_v52 = vld [vmem:[#allocation10] ss:$0 sm:$0xff] }
 0x3cd   : > { %v658_v60 = vmul.f32 1.442695, %v657_v59 }
 0x3ce   : > { %v669_v61 = vpop.permute.xlu1 %668 }
 0x3cf   : > { %1538 = vpow2.f32 %v658_v60  ;;  %v674_v62 = vsel %vm503_vm3, %v669_v61, 0 }
 0x3d0   : > { %1364 = vmatpush3.bf16.msra.mxu1 %v674_v62 }
 0x3d1   : > { %1369 = vmatprep.subr.bf16.mxu1 %v1828_v0 }
 0x3d5   : > { %v1537_v63 = vpop.eup %1536 }
 0x3d6   : > { %v824_v2 = vsel %vm439_vm1, %v1537_v63, 0.0  ;;  %v828_v3 = vpack.c.bf16 %v1537_v63, %v1537_v63 }
 0x3d7   : > { %825 = vadd.xlane.f32.xlu1 %v824_v2 }
 0x3d8   : > { %1384 = vmatmul.mubr.msk.bf16.vlgmr.msra.gmra.mrb[16].mxu0 %vm439_vm1, %v828_v3 }
 0x3d9   : > { %v1539_v4 = vpop.eup %1538  ;;  %1394 = vmatpush3.bf16.xpose.msra.mxu0 %v936_v1  ;;  %1395 = vmatprep.mubr.msk.bf16.mxu0 %vm1829_vm0, %v1828_v0 }
 0x3da   : > { %v660_v5 = vsel %vm439_vm1, %v1539_v4, 0.0  ;;  %v664_v6 = vpack.c.bf16 %v1539_v4, %v1539_v4 }
 0x3db   : > { %661 = vadd.xlane.f32.xlu0 %v660_v5 }
 0x3dc   : > { %1366 = vmatmul.mubr.msk.bf16.vlgmr.msra.gmra.mrb[4].mxu1 %vm439_vm1, %v664_v6 }
 0x3dd   : > { %1371 = vmatprep.mubr.msk.bf16.mxu1 %vm1829_vm0, %v1828_v0  ;;  %1370 = vmatpush3.bf16.msra.mxu1 %v724_v9 }
 0x3de   : > { %1387 = vmatprep.subr.bf16.mxu1 %v1828_v0 }
 0x3e0   : > { %1396 = vmatmul.mubr.msk.bf16.vlgmr.msra.gmra.mrb[20].mxu0 %vm439_vm1, %v929_v34 }
 0x464   : > { %v826_v12 = vpop.xlane.xlu1 %825 }
 0x468   : > { %v662_v10 = vpop.xlane.xlu0 %661 }
 0x469   : > { %1540 = vrcp.f32 %v662_v10 }
 0x46a   : > { %1542 = vrcp.f32 %v826_v12 }
 0x473   : > { %v1541_v17 = vpop.eup %1540 }
 0x474   : > { %v1543_v32 = vpop.eup %1542 }
 0x4ab   : > { %v871_v11 = vpop.f32.mrb[16].mxu0 }
 0x4ac   : > { %v1385_v13 = vpop.f32.mrb[17].mxu0  ;;  %v877_v33 = vmul.f32 %v1543_v32, %v871_v11 }
 0x4ad   : > { %v874_v14 = vpop.f32.mrb[18].mxu0 }
 0x4ae   : > { %v1386_v15 = vpop.f32.mrb[19].mxu0  ;;  %v878_v34 = vpack.c.bf16 %v877_v33, %v877_v33 }
 0x4af   : > { %v710_v18 = vpop.f32.mrb[4].mxu1 }
 0x4b0   : > { %v716_v20 = vmul.f32 %v1541_v17, %v710_v18  ;;  %v1367_v21 = vpop.f32.mrb[5].mxu1 }
 0x4b1   : > { %v713_v22 = vpop.f32.mrb[6].mxu1 }
 0x4b2   : > { %v717_v23 = vpack.c.bf16 %v716_v20, %v716_v20  ;;  %v1368_v24 = vpop.f32.mrb[7].mxu1 }
 0x4b3   : > { %v972_v26 = vpop.f32.mrb[20].mxu0 }
 0x4b4   : > { %v978_v27 = vsel %vm428_vm2, %v972_v26, -1e+30  ;;  %1372 = vmatmul.mubr.msk.bf16.vlgmr.msra.gmra.mrb[0].mxu1 %vm439_vm1, %v717_v23  ;;  %v1397_v28 = vpop.f32.mrb[21].mxu0 }
 0x4b5   : > { %v975_v29 = vpop.f32.mrb[22].mxu0  ;;  %v979_v30 = vsel %vm439_vm1, %v978_v27, -inf  ;;  %1388 = vmatpush3.bf16.msra.mxu1 %v885_v25  ;;  %1389 = vmatprep.mubr.msk.bf16.mxu1 %vm1829_vm0, %v1828_v0 }
 0x4b6   : > { %980 = vmax.xlane.f32.xlu0 %v979_v30  ;;  %v1398_v31 = vpop.f32.mrb[23].mxu0  ;;  %1399 = vmatprep.subr.bf16.mxu1 %v1828_v0 }
 0x4c0   : > { %1390 = vmatmul.mubr.msk.bf16.vlgmr.msra.gmra.mrb[0].mxu1 %vm439_vm1, %v878_v34 }
 0x4c1   : > { %1401 = vmatprep.mubr.msk.bf16.mxu1 %vm1829_vm0, %v1828_v0 }
 0x4cc   : > { %990 = vrot.lane.b32.xlu0 %v2184_v16, %s1832_s15  ;;  %v1041_v16 = vld [vmem:[#allocation8 + $0xc] sm:$0xf] }
 0x4cd   : > { %v1046_v42 = vsel %vm503_vm3, %v1041_v16, 0 }
 0x543   : > { %v981_v7 = vpop.xlane.xlu0 %980 }
 0x544   : > { %v982_v35 = vsub.f32 %v978_v27, %v981_v7 }
 0x546   : > { %v983_v36 = vmul.f32 1.442695, %v982_v35 }
 0x547   : > { %v991_v37 = vpop.permute.xlu0 %990 }
 0x548   : > { %1544 = vpow2.f32 %v983_v36  ;;  %v996_v38 = vsel %vm503_vm3, %v991_v37, 0 }
 0x549   : > { %1400 = vmatpush3.bf16.msra.mxu1 %v996_v38 }
 0x54a   : > { %1405 = vmatprep.subr.bf16.mxu1 %v1828_v0 }
 0x552   : > { %v1545_v39 = vpop.eup %1544 }
 0x553   : > { %v985_v40 = vsel %vm439_vm1, %v1545_v39, 0.0  ;;  %v989_v41 = vpack.c.bf16 %v1545_v39, %v1545_v39 }
 0x554   : > { %986 = vadd.xlane.f32.xlu0 %v985_v40 }
 0x555   : > { %1402 = vmatmul.mubr.msk.bf16.vlgmr.msra.gmra.mrb[8].mxu1 %vm439_vm1, %v989_v41 }
 0x556   : > { %1407 = vmatprep.mubr.msk.bf16.mxu1 %vm1829_vm0, %v1828_v0  ;;  %1406 = vmatpush3.bf16.msra.mxu1 %v1046_v42  ;;  %v430_v0 = vunpack.c.l.bf16 %v429_v51 }
 0x558   : > { %v438_v53 = vadd.f32 %v1295_v52, %v430_v0 }
 0x5e1   : > { %v987_v43 = vpop.xlane.xlu0 %986 }
 0x5e2   : > { %1546 = vrcp.f32 %v987_v43 }
 0x5ec   : > { %v1547_v44 = vpop.eup %1546 }
 0x628   : > { %v1032_v45 = vpop.f32.mrb[8].mxu1 }
 0x629   : > { %v1038_v46 = vmul.f32 %v1547_v44, %v1032_v45  ;;  %v1403_v47 = vpop.f32.mrb[9].mxu1 }
 0x62a   : > { %v1035_v48 = vpop.f32.mrb[10].mxu1 }
 0x62b   : > { %v1039_v49 = vpack.c.bf16 %v1038_v46, %v1038_v46  ;;  %v1404_v50 = vpop.f32.mrb[11].mxu1 }
 0x62d   : > { %1408 = vmatmul.mubr.msk.bf16.vlgmr.msra.gmra.mrb[0].mxu1 %vm439_vm1, %v1039_v49 }
 0x700   : > { %v1082_v54 = vpop.f32.mrb[0].mxu1 }
 0x701   : > { %v1411_v55 = vadd.f32 %v1082_v54, %v438_v53  ;;  %v1409_v56 = vpop.f32.mrb[1].mxu1 }
 0x702   : > { %v1085_v57 = vpop.f32.mrb[2].mxu1 }
 0x703   : > { %v1089_v58 = vpack.c.bf16 %v1411_v55, %v1411_v55  ;;  %v1410_v59 = vpop.f32.mrb[3].mxu1 }
 0x705   : > { %1091 = vst.msk [vmem:[%s421_s25] sm:$0xf] %vm1090_vm4, %v1089_v58 }
 0x706   : > { %1737 = shalt.err (!%p1734_p12)
}
 0x707   : > { %s1738_s28 = scalar_lea.hbm %s2260_s16, 64  ;;  %s1742_s7 = scalar_lea.hbm %s2315_s6, 128 }
 0x708   : > { %p1739_p2 = scmp.ne.s32.totalorder %s2260_s16, %s1738_s28  ;;  %p1743_p7 = scmp.lt.u32.totalorder %s2260_s16, %s2315_s6 }
 0x709   : > { %p1744_p5 = scmp.lt.u32.totalorder %s1742_s7, %s1738_s28  ;;  %p1746_p3 = scmp.lt.u32.totalorder %s1738_s28, %s2260_s16 }
 0x70a   : > { %p1740_p4 = pnand %p1739_p2, %p2362_p11 }
 0x70b   : > { %p1745_p1 = por %p1744_p5, %p1743_p7 }
 0x70c   : > { %p1741_p9 = pneg %p1740_p4 }
 0x70d   : > { %p1747_p10 = por %p1746_p3, %p1745_p1 }
 0x70f   : > { %p1748_p6 = pnand %p1747_p10, %p1741_p9 }
 0x711   : > { %1751 = shalt.err (!%p1748_p6)
}
 0x712   : > { %1440 = dma.vmem_to_hbm [thread:$0]  (%p2362_p11), %s2262_s3, 64, %s2260_s16, %s1093_s24  }
 0x713 PF: > { %s2363_s18 = sld [smem:[#allocation21_spill]]  ;;  %s1119_s8 = sand.u32 1, %s1798_s21  }
 0x714   : > { %p2364_p8 = scmp.ne.s32.totalorder %s2339_s30, 0  ;;  %s1120_s20 = scalar_lea.sflag [#allocation4], %s1119_s8 }
 0x719   : > { %p2365_p0 = scmp.ge.s32.totalorder %s2363_s18, 2 }
 0x71b   : > { %p1463_p13 = pnand %p2365_p0, %p2364_p8 }
 0x71d   : > { %1793 = dma.done.wait (!%p1463_p13), %s1120_s20, 64  }
 0x71e   : > { %1795 = vsyncadd (!%p1463_p13), %s1120_s20, 4294967232  ;;  %s29_s26 = sadd.s32 1, %s2363_s18   ;;  %s2366_s27 = sld [smem:[#allocation19_spill]] }
 0x71f   : > { %p26_p12 = scmp.ge.s32.totalorder %s29_s26, 4   ;;  %s2367_s23 = sld [smem:[#allocation23_spill]] }
 0x720   : > { %s2368_s24 = sld [smem:[#allocation20_spill]]  ;;  %s2369_s25 = sld [smem:[#allocation22_spill]] }
 0x721   : > { %s2370_s21 = smov %s1802_s22  ;;  %28 = sbr.rel (!%p26_p12) target bundleno = 15 (0xf), region = 137 }
 0x724   : > { %s2371_s22 = smov %s2366_s27 }
 0x728   :  { %1125 = vsyncpa [#allocation3], 1 }
 0x729   :  { %1127 = vsyncpa [#allocation3 + $0x1], 1 }
 0x72a   :  { %1128 = vsyncpa [#allocation6], 1 }
 0x72b   :  { %1130 = vsyncpa [#allocation6 + $0x1], 1 }
 0x72c   :  { %1131 = vsyncpa [#allocation9], 1 }
 0x72d   :  { %1132 = vsyncpa [#allocation12], 1 }
 0x72e   :  { %1134 = vsyncpa [#allocation12 + $0x1], 1 }
 0x72f   :  { %1135 = vsyncpa [#allocation4], 1 }
 0x730   :  { %1137 = vsyncpa [#allocation4 + $0x1], 1 }

// kernel: image_encoder_forward.17
= control target key start
LH: loop header
LB: loop body
LE: loop exit
PB: predicated region body
PF: predicated region fallthrough
CT: control target
= control target key end

     0   :  { %vm23_vm0 = vcmask 254976   ;;  %s231_s0 = inlined_call_operand.vmem [shape: bf16[2,32], index: 0, kind: input, shape index: {}]   ;;  %s232_s1 = inlined_call_operand.vmem [shape: f32[1,32], index: 1, kind: input, shape index: {}]   ;;  %s233_s2 = inlined_call_operand.vmem [shape: f32[1,32], index: 2, kind: input, shape index: {}]   ;;  %s234_s3 = inlined_call_operand.vmem [shape: bf16[32,16], index: 3, kind: input, shape index: {}]   ;;  %s235_s4 = inlined_call_operand.hbm [shape: f32[2,16], index: 4, kind: output, shape index: {}]  }
   0x1   :  { %v19_v0 = vld [vmem:[%s231_s0] sm:$0x1] }
   0x2   :  { %v20_v1 = vunpack.c.l.bf16 %v19_v0 }
   0x3   :  { %9 = vsyncpa [#allocation3], 0  ;;  %v148_v8 = vld [vmem:[%s234_s3] sm:$0xff]   ;;  %v176_v9 = vmov 0.0   ;;  %v149_v10 = vld [vmem:[%s234_s3 + $0x8] sm:$0xff]   ;;  %vm177_vm1 = vmmov 0  }
   0x4   :  { %v24_v2 = vsel %vm23_vm0, %v20_v1, 0.0  ;;  %137 = vmatprep.subr.bf16.mxu0 %v176_v9  ;;  %141 = vmatprep.mubr.msk.bf16.mxu0 %vm177_vm1, %v176_v9  ;;  %v129_v15 = vld [vmem:[%s232_s1] ss:$0 sm:$0xff]  ;;  %vm69_vm2 = vcmask 261120   ;;  %s178_s3 = smov [#allocation2]   ;;  %vm113_vm3 = vcmask 123904  }
   0x5   :  { %25 = vadd.xlane.f32.xlu0 %v24_v2  ;;  %138 = vmatpush3.bf16.msra.mxu0 %v148_v8  ;;  %v130_v17 = vld [vmem:[%s233_s2] ss:$0 sm:$0xff]  ;;  %s121_s24 = sshll.u32 %s178_s3, 4  ;;  %s122_s24 = int_to_ptr.vmem [resolvable:$true] %s121_s24 }
   0x6   :  { %139 = vmatprep.subr.bf16.mxu0 %v176_v9  ;;  %s152_s25 = scalar_lea.vmem %s122_s24, 32  ;;  %p157_p1 = scmp.lt.s32.totalorder %s122_s24, %s122_s24 }
   0x7   :  { %p153_p0 = scmp.ne.s32.totalorder %s122_s24, %s152_s25  ;;  %p158_p2 = scmp.lt.s32.totalorder %s152_s25, %s152_s25 }
   0x9   :  { %140 = vmatpush3.bf16.msra.mxu0 %v149_v10  ;;  %p159_p3 = por %p158_p2, %p157_p1 }
   0xb   :  { %p160_p4 = pnand %p159_p3, %p153_p0 }
  0x92   :  { %v26_v3 = vpop.xlane.xlu0 %25 }
  0x93   :  { %v28_v4 = vmul.f32 0.03125, %v26_v3 }
  0x95   :  { %v29_v5 = vsub.f32 %v20_v1, %v28_v4 }
  0x97   :  { %v30_v6 = vmul.f32 %v29_v5, %v29_v5 }
  0x99   :  { %v31_v7 = vsel %vm23_vm0, %v30_v6, 0.0 }
  0x9a   :  { %32 = vadd.xlane.f32.xlu0 %v31_v7 }
 0x127   :  { %v33_v11 = vpop.xlane.xlu0 %32 }
 0x128   :  { %v34_v12 = vmul.f32 0.03125, %v33_v11 }
 0x12a   :  { %v35_v13 = vadd.f32 1e-05, %v34_v12 }
 0x12c   :  { %150 = vrsqrt.f32 %v35_v13 }
 0x136   :  { %v151_v14 = vpop.eup %150 }
 0x137   :  { %v37_v16 = vmul.f32 %v151_v14, %v29_v5 }
 0x139   :  { %v44_v18 = vmul.f32 %v129_v15, %v37_v16 }
 0x13b   :  { %v51_v19 = vadd.f32 %v130_v17, %v44_v18 }
 0x13d   :  { %v52_v20 = vpack.c.bf16 %v51_v19, %v51_v19 }
 0x13f   :  { %142 = vmatmul.mubr.msk.bf16.vlgmr.msra.gmra.mrb[0].mxu0 %vm69_vm2, %v52_v20 }
 0x212   :  { %v107_v21 = vpop.f32.mrb[0].mxu0 }
 0x213   :  { %114 = vst.msk [vmem:[#allocation2] sm:$0x3] %vm113_vm3, %v107_v21  ;;  %v143_v22 = vpop.f32.mrb[1].mxu0 }
 0x214   :  { %v110_v23 = vpop.f32.mrb[2].mxu0 }
 0x215   :  { %163 = shalt.err (!%p160_p4)
}
 0x216   :  { %s164_s26 = scalar_lea.hbm %s235_s4, 32 }
 0x217   :  { %p165_p5 = scmp.ne.s32.totalorder %s235_s4, %s164_s26  ;;  %p168_p6 = scmp.lt.u32.totalorder %s164_s26, %s235_s4 }
 0x219   :  { %p170_p7 = pnand %p168_p6, %p165_p5 }
 0x21b   :  { %173 = shalt.err (!%p170_p7)
}
 0x21c   :  { %124 = dma.vmem_to_hbm [thread:$0]  %s122_s24, 32, %s235_s4, [#allocation3]   ;;  %v144_v24 = vpop.f32.mrb[3].mxu0 }
 0x21d   :  { %174 = dma.done.wait [#allocation3], 32  }
 0x21e   :  { %175 = vsyncadd [#allocation3], 4294967264 }
 0x21f   :  { %128 = vsyncpa [#allocation3], 1 }

// kernel: image_encoder_forward.13
= control target key start
LH: loop header
LB: loop body
LE: loop exit
PB: predicated region body
PF: predicated region fallthrough
CT: control target
= control target key end

     0   :  { %s1726_s0 = inlined_call_operand.hbm [shape: bf16[2,8,32], index: 0, kind: input, shape index: {}]   ;;  %s1727_s1 = inlined_call_operand.hbm [shape: f32[1,32], index: 1, kind: input, shape index: {}]   ;;  %s1728_s2 = inlined_call_operand.hbm [shape: f32[1,32], index: 2, kind: input, shape index: {}]   ;;  %s1729_s3 = inlined_call_operand.hbm [shape: bf16[32,128], index: 3, kind: input, shape index: {}]   ;;  %s1730_s4 = inlined_call_operand.hbm [shape: f32[1,128], index: 4, kind: input, shape index: {}]   ;;  %s1731_s5 = inlined_call_operand.hbm [shape: bf16[128,32], index: 5, kind: input, shape index: {}]   ;;  %s1732_s6 = inlined_call_operand.hbm [shape: f32[1,32], index: 6, kind: input, shape index: {}]   ;;  %s1733_s7 = inlined_call_operand.hbm [shape: bf16[2,8,32], index: 7, kind: output, shape index: {}]  }
   0x1   :  { %1739 = sst [smem:[#allocation21_spill]] %s1727_s1 }
   0x2   :  { %1740 = sst [smem:[#allocation22_spill]] %s1729_s3 }
   0x3   :  { %12 = vsyncpa [#allocation4], 0 }
   0x4   :  { %14 = vsyncpa [#allocation4 + $0x1], 0 }
   0x5   :  { %15 = vsyncpa [#allocation7], 0 }
   0x6   :  { %16 = vsyncpa [#allocation10], 0 }
   0x7   :  { %17 = vsyncpa [#allocation13], 0 }
   0x8   :  { %18 = vsyncpa [#allocation5], 0 }
   0x9   :  { %20 = vsyncpa [#allocation5 + $0x1], 0  ;;  %s1389_s24 = smov 0   ;;  %s1391_s25 = smov 0  }
   0xa   :  { %s1393_s26 = smov 0   ;;  %s1395_s27 = smov 0  }
   0xb   :  { %s1397_s28 = smov 0   ;;  %s1399_s29 = smov 0  }
   0xc LB: > { %s1737_s30 = sadd.s32 4294967295, %s1335_s29   ;;  %p821_p0 = scmp.ge.s32.totalorder %s1335_s29, 1  ;;  %s1335_s29 = sphi %s1399_s29, %s26_s29   ;;  %s1331_s28 = sphi %s1397_s28, %s1763_s28   ;;  %s1327_s27 = sphi %s1395_s27, %s1762_s27   ;;  %s1323_s26 = sphi %s1393_s26, %s1761_s26   ;;  %s1319_s25 = sphi %s1391_s25, %s1760_s25   ;;  %s1315_s24 = sphi %s1389_s24, %s1759_s24  }
   0xd   : > { %p1423_p1 = scmp.eq.s32.totalorder %s1737_s30, 0  ;;  %p247_p2 = scmp.lt.s32.totalorder %s1335_s29, 3 }
   0xe   : > { %s1337_s10 = smov [#allocation6]   ;;  %s1338_s12 = smov [#allocation9]  }
   0xf   : > { %s1741_s8 = scalar_select %p1423_p1, 1, 0 }
  0x10   : > { %p1428_p3 = pnand %p821_p0, %p247_p2  ;;  %s260_s11 = sshll.u32 %s1337_s10, 4  ;;  %s261_s11 = int_to_ptr.vmem [resolvable:$true] %s260_s11 }
  0x11   : > { %s283_s13 = sshll.u32 %s1338_s12, 4  ;;  %s1339_s15 = smov [#allocation12]   ;;  %s1441_s13 = int_to_ptr.vmem [resolvable:$true] %s283_s13 }
  0x12   : > { %s1742_s9 = scalar_select %p1428_p3, 1, 0 }
  0x13   : > { %p928_p5 = pneg %p1428_p3  ;;  %s1443_s16 = sshll.u32 %s1339_s15, 4  ;;  %s313_s16 = int_to_ptr.vmem [resolvable:$true] %s1443_s16 }
  0x14   : > { %s1744_s1 = sld [smem:[#allocation21_spill]] }
  0x15   : > { %p1437_p6 = pnand %p928_p5, %p1423_p1 }
  0x17   : > { %p1453_p8 = pneg %p1437_p6 }
  0x1a   : > { %s1043_s19 = scalar_lea.hbm %s1744_s1, 16 }
  0x1b   : > { %p1044_p7 = scmp.ne.s32.totalorder %s1744_s1, %s1043_s19  ;;  %p1050_p11 = scmp.lt.u32.totalorder %s1043_s19, %s1744_s1 }
  0x1d   : > { %p1046_p9 = pnand %p1453_p8, %p1044_p7 }
  0x1f   : > { %p1047_p10 = pneg %p1046_p9 }
  0x21   : > { %p1052_p12 = pnand %p1050_p11, %p1047_p10 }
  0x23   : > { %1055 = shalt.err (!%p1052_p12)
}
  0x24   : > { %s1056_s12 = scalar_lea.vmem %s261_s11, 16  ;;  %s1063_s15 = scalar_lea.vmem %s261_s11, 32 }
  0x25   : > { %p1057_p13 = scmp.ne.s32.totalorder %s261_s11, %s1056_s12  ;;  %p1064_p5 = scmp.lt.s32.totalorder %s261_s11, %s261_s11 }
  0x26   : > { %p1065_p4 = scmp.lt.s32.totalorder %s1063_s15, %s1056_s12 }
  0x27   : > { %p1059_p0 = pnand %p1057_p13, %p1453_p8 }
  0x28   : > { %p1066_p3 = por %p1065_p4, %p1064_p5 }
  0x29   : > { %p1060_p2 = pneg %p1059_p0 }
  0x2b   : > { %p1067_p1 = pnand %p1066_p3, %p1060_p2 }
  0x2d   : > { %1070 = shalt.err (!%p1067_p1)
}
  0x2e   : > { %931 = dma.hbm_to_vmem [thread:$0]  (!%p1437_p6), %s1744_s1, 16, %s261_s11, [#allocation7]  }
  0x2f   : > { %s1746_s3 = sld [smem:[#allocation22_spill]] }
  0x35   : > { %s1071_s21 = scalar_lea.hbm %s1746_s3, 256 }
  0x36   : > { %p1072_p7 = scmp.ne.s32.totalorder %s1746_s3, %s1071_s21  ;;  %p1078_p1 = scmp.lt.u32.totalorder %s1071_s21, %s1746_s3 }
  0x38   : > { %p1074_p9 = pnand %p1072_p7, %p1453_p8 }
  0x3a   : > { %p1075_p4 = pneg %p1074_p9 }
  0x3c   : > { %p1080_p3 = pnand %p1078_p1, %p1075_p4 }
  0x3e   : > { %1083 = shalt.err (!%p1080_p3)
}
  0x3f   : > { %s1084_s11 = scalar_lea.vmem %s1441_s13, 256  ;;  %p1092_p13 = scmp.lt.s32.totalorder %s1441_s13, %s1441_s13 }
  0x40   : > { %p1085_p10 = scmp.ne.s32.totalorder %s1441_s13, %s1084_s11  ;;  %p1093_p0 = scmp.lt.s32.totalorder %s1084_s11, %s1084_s11 }
  0x42   : > { %p1087_p11 = pnand %p1085_p10, %p1453_p8  ;;  %p1094_p2 = por %p1093_p0, %p1092_p13 }
  0x44   : > { %p1088_p12 = pneg %p1087_p11 }
  0x46   : > { %p1095_p5 = pnand %p1094_p2, %p1088_p12 }
  0x48   : > { %1098 = shalt.err (!%p1095_p5)
}
  0x49   : > { %s1340_s17 = smov 64   ;;  %s1341_s18 = smov 4  }
  0x4a   : > { %937 = dma.hbm_to_vmem [thread:$0]  (!%p1437_p6), %s1746_s3, 256, %s1441_s13, [#allocation10], %s1340_s17, %s1340_s17, %s1341_s18  }
  0x4b   : > { %s1099_s10 = scalar_lea.hbm %s1731_s5, 1024 }
  0x4c   : > { %p1100_p7 = scmp.ne.s32.totalorder %s1731_s5, %s1099_s10  ;;  %p1106_p1 = scmp.lt.u32.totalorder %s1099_s10, %s1731_s5 }
  0x4e   : > { %p1102_p9 = pnand %p1100_p7, %p1453_p8 }
  0x50   : > { %p1103_p4 = pneg %p1102_p9 }
  0x52   : > { %p1108_p3 = pnand %p1106_p1, %p1103_p4 }
  0x54   : > { %1111 = shalt.err (!%p1108_p3)
}
  0x55   : > { %s1112_s19 = scalar_lea.vmem %s313_s16, 1024  ;;  %p1120_p13 = scmp.lt.s32.totalorder %s313_s16, %s313_s16 }
  0x56   : > { %p1113_p10 = scmp.ne.s32.totalorder %s313_s16, %s1112_s19  ;;  %p1121_p0 = scmp.lt.s32.totalorder %s1112_s19, %s1112_s19 }
  0x58   : > { %p1115_p11 = pnand %p1113_p10, %p1453_p8  ;;  %p1122_p2 = por %p1121_p0, %p1120_p13 }
  0x5a   : > { %p1116_p12 = pneg %p1115_p11 }
  0x5c   : > { %p1123_p5 = pnand %p1122_p2, %p1116_p12 }
  0x5e   : > { %1126 = shalt.err (!%p1123_p5)
}
  0x5f   : > { %943 = dma.hbm_to_vmem [thread:$0]  (!%p1437_p6), %s1731_s5, 1024, %s313_s16, [#allocation13], %s1340_s17, %s1340_s17, %s1341_s18  }
  0x60   : > { %s1342_s30 = smov [#allocation8]   ;;  %s1343_s23 = smov [#allocation11]  }
  0x61   : > { %s271_s21 = sshll.u32 %s1342_s30, 4  ;;  %s299_s10 = sshll.u32 %s1343_s23, 4  ;;  %s272_s21 = int_to_ptr.vmem [resolvable:$true] %s271_s21  ;;  %s300_s10 = int_to_ptr.vmem [resolvable:$true] %s299_s10 }
  0x62   : > { %s1127_s11 = scalar_lea.hbm %s1728_s2, 16 }
  0x63   : > { %p1128_p7 = scmp.ne.s32.totalorder %s1728_s2, %s1127_s11  ;;  %p1134_p1 = scmp.lt.u32.totalorder %s1127_s11, %s1728_s2 }
  0x65   : > { %p1130_p9 = pnand %p1128_p7, %p1453_p8 }
  0x67   : > { %p1131_p4 = pneg %p1130_p9 }
  0x69   : > { %p1136_p3 = pnand %p1134_p1, %p1131_p4 }
  0x6b   : > { %1139 = shalt.err (!%p1136_p3)
}
  0x6c   : > { %s1140_s16 = scalar_lea.vmem %s272_s21, 16  ;;  %s1147_s17 = scalar_lea.vmem %s272_s21, 32 }
  0x6d   : > { %p1141_p10 = scmp.ne.s32.totalorder %s272_s21, %s1140_s16  ;;  %p1148_p13 = scmp.lt.s32.totalorder %s272_s21, %s272_s21 }
  0x6e   : > { %p1149_p0 = scmp.lt.s32.totalorder %s1147_s17, %s1140_s16 }
  0x6f   : > { %p1143_p11 = pnand %p1141_p10, %p1453_p8 }
  0x70   : > { %p1150_p2 = por %p1149_p0, %p1148_p13 }
  0x71   : > { %p1144_p12 = pneg %p1143_p11 }
  0x73   : > { %p1151_p5 = pnand %p1150_p2, %p1144_p12 }
  0x75   : > { %1154 = shalt.err (!%p1151_p5)
}
  0x76   : > { %934 = dma.hbm_to_vmem [thread:$0]  (!%p1437_p6), %s1728_s2, 16, %s272_s21, [#allocation7]  }
  0x77   : > { %s1155_s30 = scalar_lea.hbm %s1730_s4, 16 }
  0x78   : > { %p1156_p7 = scmp.ne.s32.totalorder %s1730_s4, %s1155_s30  ;;  %p1162_p1 = scmp.lt.u32.totalorder %s1155_s30, %s1730_s4 }
  0x7a   : > { %p1158_p9 = pnand %p1156_p7, %p1453_p8 }
  0x7c   : > { %p1159_p4 = pneg %p1158_p9 }
  0x7e   : > { %p1164_p3 = pnand %p1162_p1, %p1159_p4 }
  0x80   : > { %1167 = shalt.err (!%p1164_p3)
}
  0x81   : > { %s1168_s19 = scalar_lea.vmem %s300_s10, 16  ;;  %s1175_s21 = scalar_lea.vmem %s300_s10, 32 }
  0x82   : > { %p1169_p10 = scmp.ne.s32.totalorder %s300_s10, %s1168_s19  ;;  %p1176_p13 = scmp.lt.s32.totalorder %s300_s10, %s300_s10 }
  0x83   : > { %p1177_p0 = scmp.lt.s32.totalorder %s1175_s21, %s1168_s19 }
  0x84   : > { %p1171_p11 = pnand %p1169_p10, %p1453_p8 }
  0x85   : > { %p1178_p2 = por %p1177_p0, %p1176_p13 }
  0x86   : > { %p1172_p12 = pneg %p1171_p11 }
  0x88   : > { %p1179_p5 = pnand %p1178_p2, %p1172_p12 }
  0x8a   : > { %1182 = shalt.err (!%p1179_p5)
}
  0x8b   : > { %940 = dma.hbm_to_vmem [thread:$0]  (!%p1437_p6), %s1730_s4, 16, %s300_s10, [#allocation10]  }
  0x8c   : > { %s1344_s17 = smov [#allocation14]   ;;  %s1183_s20 = scalar_lea.hbm %s1732_s6, 16 }
  0x8d   : > { %s326_s1 = sshll.u32 %s1344_s17, 4  ;;  %p1184_p7 = scmp.ne.s32.totalorder %s1732_s6, %s1183_s20  ;;  %s327_s1 = int_to_ptr.vmem [resolvable:$true] %s326_s1 }
  0x8e   : > { %p1190_p1 = scmp.lt.u32.totalorder %s1183_s20, %s1732_s6 }
  0x8f   : > { %p1186_p9 = pnand %p1184_p7, %p1453_p8 }
  0x91   : > { %p1187_p4 = pneg %p1186_p9 }
  0x93   : > { %p1192_p3 = pnand %p1190_p1, %p1187_p4 }
  0x95   : > { %1195 = shalt.err (!%p1192_p3)
}
  0x96   : > { %s1196_s10 = scalar_lea.vmem %s327_s1, 16  ;;  %s1203_s11 = scalar_lea.vmem %s327_s1, 32 }
  0x97   : > { %p1197_p10 = scmp.ne.s32.totalorder %s327_s1, %s1196_s10  ;;  %p1204_p13 = scmp.lt.s32.totalorder %s327_s1, %s327_s1 }
  0x98   : > { %p1205_p0 = scmp.lt.s32.totalorder %s1203_s11, %s1196_s10 }
  0x99   : > { %p1199_p11 = pnand %p1197_p10, %p1453_p8 }
  0x9a   : > { %p1206_p2 = por %p1205_p0, %p1204_p13 }
  0x9b   : > { %p1200_p12 = pneg %p1199_p11 }
  0x9d   : > { %p1207_p5 = pnand %p1206_p2, %p1200_p12 }
  0x9f   : > { %1210 = shalt.err (!%p1207_p5)
}
  0xa0   : > { %946 = dma.hbm_to_vmem [thread:$0]  (!%p1437_p6), %s1732_s6, 16, %s327_s1, [#allocation13]  }
  0xa1   : > { %s820_s22 = sadd.s32 4294967294, %s1335_s29   ;;  %s45_s13 = sadd.s32 1, %s1331_s28 }
  0xa2   : > { %p47_p8 = scmp.ge.s32.totalorder %s45_s13, 2  ;;  %s54_s14 = sadd.s32 1, %s1323_s26 }
  0xa3   : > { %p61_p7 = scmp.ne.s32.totalorder %s1323_s26, %s1319_s25  ;;  %p62_p9 = scmp.eq.s32.totalorder %s1335_s29, 0 }
  0xa4   : > { %s1765_s13 = smov (%p47_p8, %s45_s13), 0  ;;  %p67_p1 = scmp.ne.s32.totalorder %s1319_s25, %s1315_s24 }
  0xa5   : > { %p1573_p4 = por %p62_p9, %p61_p7  ;;  %s49_s17 = ssub.s32 %s1331_s28, %s1765_s13 }
  0xa6   : > { %s1748_s1 = sadd.s32 4294967295, %s1335_s29   ;;  %p52_p3 = scmp.eq.s32.totalorder %s49_s17, 0 }
  0xa7   : > { %p234_p6 = scmp.eq.s32.totalorder %s1748_s1, 1  ;;  %p1749_p10 = scmp.ne.s32.totalorder %s1741_s8, 0 }
  0xa8   : > { %p240_p13 = scmp.eq.s32.totalorder %s820_s22, 1  ;;  %p961_p2 = scmp.lt.s32.totalorder %s1335_s29, 2 }
  0xa9   : > { %p1585_p11 = por %p1749_p10, %p67_p1  ;;  %p1589_p12 = por %p234_p6, %p61_p7 }
  0xaa   : > { %s1594_s20 = scalar_select %p52_p3, %s1323_s26, %s54_s14  }
  0xab   : > { %s1751_s3 = scalar_select %p1589_p12, 1, 0 }
  0xac   : > { %p1596_p0 = por %p240_p13, %p67_p1  ;;  %s337_s23 = sand.u32 1, %s1323_s26  }
  0xad   : > { %s830_s12 = sshll.u32 %s1331_s28, 6  ;;  %s829_s15 = sshll.u32 %s337_s23, 2 }
  0xae   : > { %s1752_s30 = scalar_select %p1596_p0, 1, 0 }
  0xaf   : > { %s1606_s19 = scalar_lea.hbm %s1726_s0, %s830_s12  ;;  %s341_s21 = scalar_lea.vmem [#allocation3], %s829_s15 }
  0xb0   : > { %s349_s22 = sshll.u32 %s341_s21, 4  ;;  %p1610_p5 = pnand %p961_p2, %p1573_p4  ;;  %s1614_s22 = int_to_ptr.vmem [resolvable:$true] %s349_s22 }
  0xb1   : > { %s338_s17 = scalar_lea.sflag [#allocation4], %s337_s23  ;;  %s1211_s1 = scalar_lea.hbm %s1606_s19, 64 }
  0xb2   : > { %p1212_p8 = scmp.ne.s32.totalorder %s1606_s19, %s1211_s1  ;;  %p1213_p7 = pneg %p1610_p5 }
  0xb3   : > { %s1216_s16 = scalar_lea.hbm %s1726_s0, 128  ;;  %p1217_p4 = scmp.lt.u32.totalorder %s1606_s19, %s1726_s0 }
  0xb4   : > { %p1214_p9 = pnand %p1213_p7, %p1212_p8  ;;  %p1218_p6 = scmp.lt.u32.totalorder %s1216_s16, %s1211_s1 }
  0xb5   : > { %p1220_p10 = scmp.lt.u32.totalorder %s1211_s1, %s1606_s19 }
  0xb6   : > { %p1215_p1 = pneg %p1214_p9  ;;  %p1219_p3 = por %p1218_p6, %p1217_p4 }
  0xb8   : > { %p1221_p13 = por %p1220_p10, %p1219_p3 }
  0xba   : > { %p1222_p2 = pnand %p1221_p13, %p1215_p1 }
  0xbc   : > { %1225 = shalt.err (!%p1222_p2)
}
  0xbd   : > { %s1226_s23 = scalar_lea.vmem %s1614_s22, 64  ;;  %s1345_s21 = smov [#allocation3]  }
  0xbe   : > { %p1227_p8 = scmp.ne.s32.totalorder %s1614_s22, %s1226_s23  ;;  %s1231_s12 = sshll.u32 %s1345_s21, 4  ;;  %s1232_s12 = int_to_ptr.vmem [resolvable:$false] %s1231_s12 }
  0xbf   : > { %s1233_s15 = scalar_lea.vmem %s1232_s12, 128  ;;  %p1234_p12 = scmp.lt.s32.totalorder %s1614_s22, %s1232_s12 }
  0xc0   : > { %p1229_p9 = pnand %p1227_p8, %p1213_p7  ;;  %p1235_p4 = scmp.lt.s32.totalorder %s1233_s15, %s1226_s23 }
  0xc2   : > { %p1230_p0 = pneg %p1229_p9  ;;  %p1236_p6 = por %p1235_p4, %p1234_p12 }
  0xc4   : > { %p1237_p3 = pnand %p1236_p6, %p1230_p0 }
  0xc6   : > { %1240 = shalt.err (!%p1237_p3)
}
  0xc7   : > { %950 = dma.hbm_to_vmem [thread:$0]  (!%p1610_p5), %s1606_s19, 64, %s1614_s22, %s338_s17  }
  0xc8   : > { %p1754_p1 = scmp.ne.s32.totalorder %s1742_s9, 0 }
  0xc9   : > { %s1644_s1 = sand.u32 (!%p1754_p1), 1, %s1319_s25  }
  0xca   : > { %358 = sbr.rel (%p1754_p1) target bundleno = 1019 (0x3fb), region = 48  ;;  %s832_s16 = sshll.u32 (!%p1754_p1), %s1644_s1, 2 }
  0xcb   : > { %s361_s10 = scalar_lea.sflag (!%p1754_p1), [#allocation4], %s1644_s1  ;;  %s364_s11 = scalar_lea.vmem (!%p1754_p1), [#allocation3], %s832_s16 }
  0xd1   : > { %1294 = dma.done.wait (%p1585_p11), %s361_s10, 64  }
  0xd2   : > { %1296 = vsyncadd (%p1585_p11), %s361_s10, 4294967232  ;;  %p1755_p12 = scmp.ne.s32.totalorder %s1741_s8, 0 }
  0xd4   : > { %1298 = dma.done.wait (%p1755_p12), [#allocation7], 32  }
  0xd5   : > { %1300 = vsyncadd (%p1755_p12), [#allocation7], 4294967264 }
  0xd6   : > { %1302 = dma.done.wait (%p1755_p12), [#allocation10], 272  }
  0xd7   : > { %1304 = vsyncadd (%p1755_p12), [#allocation10], 4294967024 }
  0xd8   : > { %1306 = dma.done.wait (%p1755_p12), [#allocation13], 1040  }
  0xd9   : > { %1308 = vsyncadd (%p1755_p12), [#allocation13], 4294966256  ;;  %vm435_vm0 = vcmask 261120   ;;  %v421_v0 = vld [vmem:[%s364_s11] sm:$0xf]  ;;  %v1027_v10 = vld [vmem:[#allocation9] sm:$0xff]  }
  0xda   : > { %v840_v1 = vld [vmem:[#allocation14] ss:$0 sm:$0xff]  ;;  %v422_v2 = vunpack.c.l.bf16 %v421_v0  ;;  %v1346_v11 = vmov 0.0   ;;  %v1028_v12 = vld [vmem:[#allocation9 + $0x8] sm:$0xff]   ;;  %vm1347_vm1 = vmmov 0   ;;  %v1030_v24 = vld [vmem:[#allocation12 + $0x8] sm:$0xff]  }
  0xdb   : > { %872 = vmatprep.subr.bf16.mxu0 %v1346_v11  ;;  %880 = vmatprep.subr.bf16.mxu1 %v1346_v11  ;;  %v841_v17 = vld [vmem:[#allocation6] ss:$0 sm:$0xff]  ;;  %v842_v19 = vld [vmem:[#allocation8] ss:$0 sm:$0xff]  ;;  %v1029_v23 = vld [vmem:[#allocation12] sm:$0xff]   ;;  %s857_s8 = sshll.u32 %s1327_s27, 6 }
  0xdc   : > { %v440_v3 = vsel %vm435_vm0, %v422_v2, 0.0  ;;  %v434_v4 = vadd.f32 %v840_v1, %v422_v2  ;;  %873 = vmatpush3.bf16.msra.mxu0 %v1027_v10  ;;  %876 = vmatprep.mubr.msk.bf16.mxu0 %vm1347_vm1, %v1346_v11  ;;  %v1031_v25 = vld [vmem:[#allocation12 + $0x10] sm:$0xff]   ;;  %v1032_v26 = vld [vmem:[#allocation12 + $0x18] sm:$0xff]   ;;  %v1033_v27 = vld [vmem:[#allocation12 + $0x20] sm:$0xff]   ;;  %s418_s9 = scalar_lea.vmem [#allocation15], %s832_s16  ;;  %vm656_vm2 = vcmask 257024   ;;  %s1677_s14 = scalar_lea.hbm %s1733_s7, %s857_s8 }
  0xdd   : > { %441 = vadd.xlane.f32.xlu0 %v440_v3  ;;  %874 = vmatprep.subr.bf16.mxu0 %v1346_v11  ;;  %v1034_v28 = vld [vmem:[#allocation12 + $0x28] sm:$0xff]   ;;  %v1035_v29 = vld [vmem:[#allocation12 + $0x30] sm:$0xff]   ;;  %v1036_v30 = vld [vmem:[#allocation12 + $0x38] sm:$0xff]   ;;  %s673_s18 = sshll.u32 %s418_s9, 4  ;;  %s659_s17 = scalar_lea.sflag [#allocation5], %s1644_s1  ;;  %s1679_s18 = int_to_ptr.vmem [resolvable:$true] %s673_s18 }
  0xde   : > { %436 = vst.msk [vmem:[#allocation2] sm:$0xff] %vm435_vm0, %v434_v4  ;;  %896 = vmatprep.mubr.msk.bf16.mxu1 %vm1347_vm1, %v1346_v11  ;;  %881 = vmatpush3.bf16.msra.mxu1 %v1029_v23  ;;  %v843_v31 = vld [vmem:[#allocation11] ss:$0 sm:$0xff]  ;;  %s1241_s23 = scalar_lea.vmem %s1679_s18, 64  ;;  %p1756_p0 = scmp.ne.s32.totalorder %s1751_s3, 0 }
  0xdf   : > { %882 = vmatprep.subr.bf16.mxu1 %v1346_v11  ;;  %p1242_p11 = scmp.ne.s32.totalorder %s1679_s18, %s1241_s23  ;;  %s1348_s27 = smov [#allocation15]  }
  0xe0   : > { %875 = vmatpush3.bf16.msra.mxu0 %v1028_v12  ;;  %s1245_s21 = sshll.u32 %s1348_s27, 4  ;;  %s1246_s21 = int_to_ptr.vmem [resolvable:$false] %s1245_s21 }
  0xe1   : > { %p1243_p5 = pnand %p1242_p11, %p1756_p0  ;;  %s1247_s12 = scalar_lea.vmem %s1246_s21, 128 }
  0xe2   : > { %883 = vmatpush3.bf16.msra.mxu1 %v1030_v24  ;;  %p1248_p10 = scmp.lt.s32.totalorder %s1679_s18, %s1246_s21  ;;  %p1249_p13 = scmp.lt.s32.totalorder %s1247_s12, %s1241_s23 }
  0xe3   : > { %884 = vmatprep.subr.bf16.mxu1 %v1346_v11  ;;  %p1244_p7 = pneg %p1243_p5 }
  0xe4   : > { %p1250_p2 = por %p1249_p13, %p1248_p10 }
  0xe5   : > { %v544_v44 = vld [vmem:[#allocation2] sm:$0xff] }
  0xe6   : > { %885 = vmatpush3.bf16.msra.mxu1 %v1031_v25  ;;  %p1251_p8 = pnand %p1250_p2, %p1244_p7 }
  0xe7   : > { %886 = vmatprep.subr.bf16.mxu1 %v1346_v11 }
  0xea   : > { %887 = vmatpush3.bf16.msra.mxu1 %v1032_v26 }
  0xeb   : > { %888 = vmatprep.subr.bf16.mxu1 %v1346_v11 }
  0xee   : > { %889 = vmatpush3.bf16.msra.mxu1 %v1033_v27 }
  0xef   : > { %890 = vmatprep.subr.bf16.mxu1 %v1346_v11 }
  0xf2   : > { %891 = vmatpush3.bf16.msra.mxu1 %v1034_v28 }
  0xf3   : > { %892 = vmatprep.subr.bf16.mxu1 %v1346_v11 }
  0xf6   : > { %893 = vmatpush3.bf16.msra.mxu1 %v1035_v29 }
  0xf7   : > { %894 = vmatprep.subr.bf16.mxu1 %v1346_v11 }
  0xfa   : > { %895 = vmatpush3.bf16.msra.mxu1 %v1036_v30 }
 0x16a   : > { %v442_v5 = vpop.xlane.xlu0 %441 }
 0x16b   : > { %v444_v6 = vmul.f32 0.03125, %v442_v5 }
 0x16d   : > { %v445_v7 = vsub.f32 %v422_v2, %v444_v6 }
 0x16f   : > { %v446_v8 = vmul.f32 %v445_v7, %v445_v7 }
 0x171   : > { %v447_v9 = vsel %vm435_vm0, %v446_v8, 0.0 }
 0x172   : > { %448 = vadd.xlane.f32.xlu0 %v447_v9 }
 0x1ff   : > { %v449_v13 = vpop.xlane.xlu0 %448 }
 0x200   : > { %v450_v14 = vmul.f32 0.03125, %v449_v13 }
 0x202   : > { %v451_v15 = vadd.f32 1e-05, %v450_v14 }
 0x204   : > { %1037 = vrsqrt.f32 %v451_v15 }
 0x20e   : > { %v1038_v16 = vpop.eup %1037 }
 0x20f   : > { %v453_v18 = vmul.f32 %v1038_v16, %v445_v7 }
 0x211   : > { %v460_v20 = vmul.f32 %v841_v17, %v453_v18 }
 0x213   : > { %v467_v21 = vadd.f32 %v842_v19, %v460_v20 }
 0x215   : > { %v468_v22 = vpack.c.bf16 %v467_v21, %v467_v21 }
 0x217   : > { %877 = vmatmul.mubr.msk.bf16.vlgmr.msra.gmra.mrb[0].mxu0 %vm435_vm0, %v468_v22 }
 0x2ea   : > { %v529_v32 = vpop.f32.mrb[0].mxu0 }
 0x2eb   : > { %v530_v33 = vadd.f32 %v843_v31, %v529_v32  ;;  %v878_v34 = vpop.f32.mrb[1].mxu0 }
 0x2ec   : > { %v532_v35 = vpop.f32.mrb[2].mxu0 }
 0x2ed   : > { %v847_v36 = vmul.f32 -1.702, %v530_v33  ;;  %v879_v37 = vpop.f32.mrb[3].mxu0 }
 0x2ef   : > { %v537_v38 = vmul.f32 1.442695, %v847_v36 }
 0x2f1   : > { %1039 = vpow2.f32 %v537_v38 }
 0x2fb   : > { %v1040_v39 = vpop.eup %1039 }
 0x2fc   : > { %v539_v40 = vadd.f32 1.0, %v1040_v39 }
 0x2fe   : > { %1041 = vrcp.f32 %v539_v40 }
 0x308   : > { %v1042_v41 = vpop.eup %1041 }
 0x309   : > { %v542_v42 = vmul.f32 %v1042_v41, %v530_v33 }
 0x30b   : > { %v543_v43 = vpack.c.bf16 %v542_v42, %v542_v42 }
 0x30d   : > { %897 = vmatmul.mubr.bf16.vlgmr.msra.gmra.mrb[0].mxu1 %v543_v43 }
 0x3e0   : > { %v643_v45 = vpop.f32.mrb[0].mxu1 }
 0x3e1   : > { %v649_v46 = vadd.f32 %v643_v45, %v544_v44  ;;  %v898_v47 = vpop.f32.mrb[1].mxu1 }
 0x3e2   : > { %v646_v48 = vpop.f32.mrb[2].mxu1 }
 0x3e3   : > { %650 = vst.msk [vmem:[#allocation2] sm:$0xff] %vm435_vm0, %v649_v46  ;;  %v899_v49 = vpop.f32.mrb[3].mxu1 }
 0x3ea   : > { %v654_v50 = vld [vmem:[#allocation2] sm:$0xff] }
 0x3eb   : > { %v655_v51 = vpack.c.bf16 %v654_v50, %v654_v50 }
 0x3ed   : > { %657 = vst.msk [vmem:[%s418_s9] sm:$0xf] %vm656_vm2, %v655_v51 }
 0x3ee   : > { %1254 = shalt.err (!%p1251_p8)
}
 0x3ef   : > { %s1255_s15 = scalar_lea.hbm %s1677_s14, 64  ;;  %s1259_s10 = scalar_lea.hbm %s1733_s7, 128 }
 0x3f0   : > { %p1256_p9 = scmp.ne.s32.totalorder %s1677_s14, %s1255_s15  ;;  %p1260_p3 = scmp.lt.u32.totalorder %s1677_s14, %s1733_s7 }
 0x3f1   : > { %p1261_p1 = scmp.lt.u32.totalorder %s1259_s10, %s1255_s15  ;;  %p1263_p11 = scmp.lt.u32.totalorder %s1255_s15, %s1677_s14 }
 0x3f2   : > { %p1257_p4 = pnand %p1256_p9, %p1756_p0 }
 0x3f3   : > { %p1262_p12 = por %p1261_p1, %p1260_p3 }
 0x3f4   : > { %p1258_p6 = pneg %p1257_p4 }
 0x3f5   : > { %p1264_p5 = por %p1263_p11, %p1262_p12 }
 0x3f7   : > { %p1265_p7 = pnand %p1264_p5, %p1258_p6 }
 0x3f9   : > { %1268 = shalt.err (!%p1265_p7)
}
 0x3fa   : > { %926 = dma.vmem_to_hbm [thread:$0]  (%p1756_p0), %s1679_s18, 64, %s1677_s14, %s659_s17  }
 0x3fb PF: > { %s685_s9 = sand.u32 1, %s1315_s24   ;;  %p1757_p10 = scmp.ne.s32.totalorder %s1752_s30, 0 }
 0x3fc   : > { %p1758_p13 = scmp.ge.s32.totalorder %s1335_s29, 2  ;;  %s686_s19 = scalar_lea.sflag [#allocation5], %s685_s9 }
 0x3fe   : > { %p952_p2 = pnand %p1758_p13, %p1757_p10 }
 0x400   : > { %1310 = dma.done.wait (!%p952_p2), %s686_s19, 64  }
 0x401   : > { %1312 = vsyncadd (!%p952_p2), %s686_s19, 4294967232  ;;  %s26_s29 = sadd.s32 1, %s1335_s29   ;;  %s1759_s24 = smov %s1319_s25 }
 0x402   : > { %p23_p8 = scmp.ge.s32.totalorder %s26_s29, 4   ;;  %s1760_s25 = smov %s1323_s26 }
 0x403   : > { %s1761_s26 = smov %s1594_s20  ;;  %s1762_s27 = smov %s1331_s28 }
 0x404   : > { %s1763_s28 = smov %s1765_s13  ;;  %25 = sbr.rel (!%p23_p8) target bundleno = 12 (0xc), region = 128 }
 0x40b   :  { %691 = vsyncpa [#allocation4], 1 }
 0x40c   :  { %693 = vsyncpa [#allocation4 + $0x1], 1 }
 0x40d   :  { %694 = vsyncpa [#allocation7], 1 }
 0x40e   :  { %695 = vsyncpa [#allocation10], 1 }
 0x40f   :  { %696 = vsyncpa [#allocation13], 1 }
 0x410   :  { %697 = vsyncpa [#allocation5], 1 }
 0x411   :  { %699 = vsyncpa [#allocation5 + $0x1], 1 }

</bundles_post_ra>
